<compile_context>
chip_gen: v6e
topology: v6e:2x2x1
jax: 0.10.0
libtpu: 0.0.40
codegen_flags: <defaults>
</compile_context>

<pallas_src>
import functools
from math import pi as PI, log as math_log

import jax
import jax.numpy as jnp
from jax.experimental import pallas as pl
from jax.experimental.pallas import tpu as pltpu

# ---------------- configuration (small, consistent with module defaults) ----
N_NODES = 32          # total nodes (2 graphs x 16 nodes)
NUM_GRAPHS = 2        # independent graphs, stacked on a parallel grid axis
INPUT_DIM = 27        # module default input_dim
HIDDEN = 32           # hidden_channels
NUM_FILTERS = 32      # num_filters
EDGE_CH = 16          # edge_channels (= num_gaussians)
NUM_INTER = 3         # num_interactions (reduced from 6 for a small example)
CUTOFF = 10.0
LOG2 = math_log(2.0)

HP = 128                         # hidden channels padded to full lane width
FP = 128                         # filter channels padded to full lane width
LF = NUM_INTER * NUM_FILTERS     # 96  : batched stage-1 width (contraction K)
LFP = NUM_INTER * FP             # 384 : batched stage-2 width (128 per layer)


def _shifted_softplus(x):
    # softplus(x) - log(2); stable form (exp/log go to the EUP slot).
    return jnp.maximum(x, 0.0) + jnp.log(1.0 + jnp.exp(-jnp.abs(x))) - LOG2


# ------------------------------- kernel -------------------------------------
def schnet_kernel(node_attr_ref, ea_ref, pool_ref, tmat_ref,
                  emb_w_ref, nn1_w_ref, nn2_w_ref, w_stack_ref, bias_ref,
                  out_ref, wedge_scr, *, num_inter, hp, fp, lf):
    f32 = jnp.float32
    L = num_inter

    # Embedding (weights pre-transposed + column-padded to HP lanes).
    h = (jnp.dot(node_attr_ref[...], emb_w_ref[...],
                 preferred_element_type=f32)
         + bias_ref[0:1, :hp])                                   # [npg, HP]

    # Edge-MLP stage 1, batched over all interaction layers:   [n2, L*F]
    t_all = _shifted_softplus(
        jnp.dot(ea_ref[...], nn1_w_ref[...], preferred_element_type=f32)
        + bias_ref[1:2, :lf])

    # Edge-MLP stage 2, batched block-diagonal, hoisted out of the layer loop.
    # Each layer's output block occupies its own 128-lane tile of the scratch.
    wedge_scr[...] = (jnp.dot(t_all, nn2_w_ref[...],
                              preferred_element_type=f32)
                      + bias_ref[2:3, :])                        # [n2, L*FP]

    pool = pool_ref[...]      # [npg, n2] ; pool[i, i*npg+j] = C_ij * mask_ij
    tmat = tmat_ref[...]      # [n2, npg] ; tmat[i*npg+j, j] = 1   (broadcast)

    for l in range(L):        # static unroll over interaction blocks
        w_edge = wedge_scr[:, l * fp:(l + 1) * fp]               # [n2, FP]
        xf = jnp.dot(h, w_stack_ref[l], preferred_element_type=f32)   # lin1
        xj = jnp.dot(tmat, xf, preferred_element_type=f32)       # x_j rows
        agg = jnp.dot(pool, w_edge * xj, preferred_element_type=f32)  # CFConv
        conv = (jnp.dot(agg, w_stack_ref[L + l], preferred_element_type=f32)
                + bias_ref[3 + l:4 + l, :hp])                    # lin2
        upd = (jnp.dot(_shifted_softplus(conv), w_stack_ref[2 * L + l],
                       preferred_element_type=f32)
               + bias_ref[3 + L + l:4 + L + l, :hp])             # lin
        h = h + upd                                              # residual

    out_ref[...] = h          # lane-dense [npg, 128] unmasked store


# ---------------------------- host-side helpers ------------------------------
def init_params(key):
    ks = jax.random.split(key, 11)
    s = 0.1
    return {
        "emb_w": s * jax.random.normal(ks[0], (HIDDEN, INPUT_DIM), jnp.float32),
        "emb_b": s * jax.random.normal(ks[1], (1, HIDDEN), jnp.float32),
        "nn1_w": s * jax.random.normal(ks[2], (NUM_INTER, NUM_FILTERS, EDGE_CH), jnp.float32),
        "nn1_b": s * jax.random.normal(ks[3], (NUM_INTER, 1, NUM_FILTERS), jnp.float32),
        "nn2_w": s * jax.random.normal(ks[4], (NUM_INTER, NUM_FILTERS, NUM_FILTERS), jnp.float32),
        "nn2_b": s * jax.random.normal(ks[5], (NUM_INTER, 1, NUM_FILTERS), jnp.float32),
        "lin1_w": s * jax.random.normal(ks[6], (NUM_INTER, NUM_FILTERS, HIDDEN), jnp.float32),
        "lin2_w": s * jax.random.normal(ks[7], (NUM_INTER, HIDDEN, NUM_FILTERS), jnp.float32),
        "lin2_b": s * jax.random.normal(ks[8], (NUM_INTER, 1, HIDDEN), jnp.float32),
        "lin_w": s * jax.random.normal(ks[9], (NUM_INTER, HIDDEN, HIDDEN), jnp.float32),
        "lin_b": s * jax.random.normal(ks[10], (NUM_INTER, 1, HIDDEN), jnp.float32),
    }


def prepare_params(p):
    """Host-side weight prep: pre-transpose to [in,out], batch nn1/nn2 across
    layers (nn2 as a block-diagonal with 128-lane output blocks), zero-pad all
    channel dims to 128, and pack small weights/biases into slabs."""
    L, F, H, E = NUM_INTER, NUM_FILTERS, HIDDEN, EDGE_CH

    def pad2(w, rows, cols):
        return jnp.pad(w, ((0, rows - w.shape[0]), (0, cols - w.shape[1])))

    emb_w = pad2(p["emb_w"].T, INPUT_DIM, HP)                       # [Din, HP]

    # Stage-1 edge MLP batched over layers: columns l*F:(l+1)*F hold W1_l^T.
    nn1_w = jnp.concatenate([p["nn1_w"][l].T for l in range(L)], 1)  # [E, L*F]
    nn1_b = jnp.concatenate([p["nn1_b"][l] for l in range(L)], 1)    # [1, L*F]

    # Stage-2 edge MLP batched block-diagonal: rows l*F:(l+1)*F, cols
    # l*FP:l*FP+F hold W2_l^T; each layer's output block is a 128-lane tile.
    nn2_w = jnp.zeros((LF, LFP), jnp.float32)
    nn2_b = jnp.zeros((1, LFP), jnp.float32)
    for l in range(L):
        nn2_w = nn2_w.at[l * F:(l + 1) * F, l * FP:l * FP + F].set(p["nn2_w"][l].T)
        nn2_b = nn2_b.at[:, l * FP:l * FP + F].set(p["nn2_b"][l])

    # Per-layer lin1/lin2/lin, padded to [128,128] and packed into one slab.
    lin1 = jnp.stack([pad2(p["lin1_w"][l].T, HP, FP) for l in range(L)])
    lin2 = jnp.stack([pad2(p["lin2_w"][l].T, FP, HP) for l in range(L)])
    lin = jnp.stack([pad2(p["lin_w"][l].T, HP, HP) for l in range(L)])
    w_stack = jnp.concatenate([lin1, lin2, lin], axis=0)          # [3L,128,128]

    # All biases in one slab: row0 emb_b, row1 nn1_b, row2 nn2_b,
    # rows 3..3+L-1 lin2_b, rows 3+L..3+2L-1 lin_b.
    bias_slab = jnp.zeros((3 + 2 * L, LFP), jnp.float32)
    bias_slab = bias_slab.at[0, :H].set(p["emb_b"][0])
    bias_slab = bias_slab.at[1, :LF].set(nn1_b[0])
    bias_slab = bias_slab.at[2, :].set(nn2_b[0])
    for l in range(L):
        bias_slab = bias_slab.at[3 + l, :H].set(p["lin2_b"][l, 0])
        bias_slab = bias_slab.at[3 + L + l, :H].set(p["lin_b"][l, 0])

    return dict(emb_w=emb_w, nn1_w=nn1_w, nn2_w=nn2_w,
                w_stack=w_stack, bias_slab=bias_slab)


def _graph_glue(pos, batch, num_graphs):
    """Plain-JAX glue replacing radius_graph + GaussianSmearing, per graph:
    lane-dense edge features ea [G, npg*npg, E] and a cutoff-weighted pooling
    matrix pool [G, npg, npg*npg] with pool[g,i,i*npg+j] = C_ij*mask_ij."""
    n = pos.shape[0]
    npg = n // num_graphs
    pos_g = pos.reshape(num_graphs, npg, 3)
    batch_g = batch.reshape(num_graphs, npg)

    diff = pos_g[:, :, None, :] - pos_g[:, None, :, :]
    dist = jnp.sqrt(jnp.maximum(jnp.sum(diff * diff, -1), 0.0))   # [G,npg,npg]
    same = batch_g[:, :, None] == batch_g[:, None, :]
    not_self = ~jnp.eye(npg, dtype=bool)[None]
    mask = (same & not_self).astype(jnp.float32)
    c = 0.5 * (jnp.cos(dist * PI / CUTOFF) + 1.0)
    c = c * (dist <= CUTOFF).astype(jnp.float32) * mask

    delta = CUTOFF / (EDGE_CH - 1)
    coeff = -0.5 / (delta ** 2)
    offsets = jnp.linspace(0.0, CUTOFF, EDGE_CH, dtype=jnp.float32)
    ea = jnp.exp(coeff * (dist[..., None] - offsets) ** 2)
    ea = ea.reshape(num_graphs, npg * npg, EDGE_CH)

    pool = (jnp.eye(npg, dtype=jnp.float32)[None, :, :, None]
            * c[:, :, None, :]).reshape(num_graphs, npg, npg * npg)
    return ea, pool


# ------------------------------- wrapper -------------------------------------
def schnet_encoder_pallas(node_attr, pos, batch, params, *, num_graphs=1):
    # Assumes nodes are grouped contiguously into `num_graphs` equal blocks
    # (use num_graphs=1 otherwise).
    n = node_attr.shape[0]
    assert n % num_graphs == 0
    G, npg = num_graphs, n // num_graphs
    n2 = npg * npg

    ea, pool = _graph_glue(pos, batch, G)
    pp = prepare_params(params)
    node_g = node_attr.astype(jnp.float32).reshape(G, npg, INPUT_DIM)
    tmat = jnp.tile(jnp.eye(npg, dtype=jnp.float32), (npg, 1))    # [n2, npg]

    args = (node_g, ea, pool, tmat,
            pp["emb_w"], pp["nn1_w"], pp["nn2_w"], pp["w_stack"],
            pp["bias_slab"])

    kernel = functools.partial(schnet_kernel, num_inter=NUM_INTER,
                               hp=HP, fp=FP, lf=LF)

    cfix = lambda *blk: (lambda g, b=blk: b)   # constant (resident) block
    in_specs = [
        pl.BlockSpec((None, npg, INPUT_DIM), lambda g: (g, 0, 0)),
        pl.BlockSpec((None, n2, EDGE_CH), lambda g: (g, 0, 0)),
        pl.BlockSpec((None, npg, n2), lambda g: (g, 0, 0)),
        pl.BlockSpec((n2, npg), cfix(0, 0)),
        pl.BlockSpec((INPUT_DIM, HP), cfix(0, 0)),
        pl.BlockSpec((EDGE_CH, LF), cfix(0, 0)),
        pl.BlockSpec((LF, LFP), cfix(0, 0)),
        pl.BlockSpec((3 * NUM_INTER, HP, FP), cfix(0, 0, 0)),
        pl.BlockSpec(pp["bias_slab"].shape, cfix(0, 0)),
    ]
    out_specs = pl.BlockSpec((None, npg, HP), lambda g: (g, 0, 0))

    # Advisory cost hints for the XLA scheduler around the custom call.
    L, F, E, Din = NUM_INTER, NUM_FILTERS, EDGE_CH, INPUT_DIM
    per_graph = (2 * npg * Din * HP + 2 * n2 * E * LF + 2 * n2 * LF * LFP
                 + L * (2 * npg * HP * FP + 2 * n2 * npg * FP + n2 * FP
                        + 2 * npg * n2 * FP + 2 * npg * FP * HP
                        + 2 * npg * HP * HP + npg * HP))
    flops = G * per_graph
    transcendentals = G * (2 * n2 * LF + 2 * L * npg * HP)
    bytes_accessed = 4 * (sum(int(a.size) for a in args) + G * npg * HP)

    out = pl.pallas_call(
        kernel,
        out_shape=jax.ShapeDtypeStruct((G, npg, HP), jnp.float32),
        grid_spec=pltpu.PrefetchScalarGridSpec(
            num_scalar_prefetch=0,
            grid=(G,),
            in_specs=in_specs,
            out_specs=out_specs,
            scratch_shapes=[pltpu.VMEM((n2, LFP), jnp.float32)]),
        compiler_params=pltpu.CompilerParams(
            dimension_semantics=("parallel",),
            vmem_limit_bytes=8 * 1024 * 1024),
        cost_estimate=pl.CostEstimate(flops=flops,
                                      transcendentals=transcendentals,
                                      bytes_accessed=bytes_accessed),
    )(*args)
    return out.reshape(n, HP)[:, :HIDDEN]


# ------------------------------ reference ------------------------------------
def schnet_encoder_ref(node_attr, pos, batch, params):
    """Pure-JAX dense reference mirroring the PyTorch forward (smooth=True)."""
    n = node_attr.shape[0]
    diff = pos[:, None, :] - pos[None, :, :]
    dist = jnp.sqrt(jnp.maximum(jnp.sum(diff * diff, -1), 0.0))
    same = batch[:, None] == batch[None, :]
    not_self = ~jnp.eye(n, dtype=bool)
    mask = (same & not_self).astype(jnp.float32)
    c = 0.5 * (jnp.cos(dist * PI / CUTOFF) + 1.0)
    c = c * (dist <= CUTOFF).astype(jnp.float32) * mask
    delta = CUTOFF / (EDGE_CH - 1)
    coeff = -0.5 / (delta ** 2)
    offsets = jnp.linspace(0.0, CUTOFF, EDGE_CH, dtype=jnp.float32)
    ea = jnp.exp(coeff * (dist[:, :, None] - offsets) ** 2).reshape(n * n, EDGE_CH)
    cmask_col = c.reshape(n * n, 1)

    def ssp(x):
        return jax.nn.softplus(x) - LOG2

    h = node_attr @ params["emb_w"].T + params["emb_b"]
    for l in range(NUM_INTER):
        t = ssp(ea @ params["nn1_w"][l].T + params["nn1_b"][l])
        w_edge = (t @ params["nn2_w"][l].T + params["nn2_b"][l]) * cmask_col
        xf = h @ params["lin1_w"][l].T
        agg = jnp.sum(w_edge.reshape(n, n, -1) * xf[None, :, :], axis=1)
        conv = agg @ params["lin2_w"][l].T + params["lin2_b"][l]
        upd = ssp(conv) @ params["lin_w"][l].T + params["lin_b"][l]
        h = h + upd
    return h


if __name__ == "__main__":
    key = jax.random.PRNGKey(0)
    k_attr, k_pos, k_par = jax.random.split(key, 3)

    node_attr = jax.random.normal(k_attr, (N_NODES, INPUT_DIM), jnp.float32)
    pos = jax.random.uniform(k_pos, (N_NODES, 3), jnp.float32) * 6.0
    batch = jnp.concatenate([jnp.zeros(N_NODES // 2, jnp.int32),
                             jnp.ones(N_NODES - N_NODES // 2, jnp.int32)])
    params = init_params(k_par)

    run = jax.jit(functools.partial(schnet_encoder_pallas,
                                    num_graphs=NUM_GRAPHS))
    out = run(node_attr, pos, batch, params)
    jax.block_until_ready(out)

    ref = schnet_encoder_ref(node_attr, pos, batch, params)
    assert out.shape == (N_NODES, HIDDEN)
    assert jnp.allclose(out, ref, rtol=1e-4, atol=1e-4), \
        f"max abs err = {jnp.max(jnp.abs(out - ref))}"

    print("KERNEL_OK")
</pallas_src>

<mosaic_0001>
module attributes {stable_mosaic.version = 11 : i64} {
  func.func @schnet_kernel(%arg0: i32, %arg1: memref<1x16x27xf32, #tpu.memory_space<vmem>>, %arg2: memref<1x256x16xf32, #tpu.memory_space<vmem>>, %arg3: memref<1x16x256xf32, #tpu.memory_space<vmem>>, %arg4: memref<256x16xf32, #tpu.memory_space<vmem>>, %arg5: memref<27x128xf32, #tpu.memory_space<vmem>>, %arg6: memref<16x96xf32, #tpu.memory_space<vmem>>, %arg7: memref<96x384xf32, #tpu.memory_space<vmem>>, %arg8: memref<9x128x128xf32, #tpu.memory_space<vmem>>, %arg9: memref<9x384xf32, #tpu.memory_space<vmem>>, %arg10: memref<1x16x128xf32, #tpu.memory_space<vmem>>, %arg11: memref<256x384xf32, #tpu.memory_space<vmem>>) attributes {dimension_semantics = [#tpu.dimension_semantics<parallel>], iteration_bounds = array<i64: 2>, scalar_prefetch = 0 : i64, scratch_operands = 1 : i64, tpu.core_type = #tpu.core_type<tc>, window_params = [{transform_indices = @transform_0, window_bounds = array<i64: 1, 16, 27>}, {transform_indices = @transform_1, window_bounds = array<i64: 1, 256, 16>}, {transform_indices = @transform_2, window_bounds = array<i64: 1, 16, 256>}, {pipeline_mode = #tpu.pipeline_mode<synchronous>, transform_indices = @transform_3, window_bounds = array<i64: 256, 16>}, {pipeline_mode = #tpu.pipeline_mode<synchronous>, transform_indices = @transform_4, window_bounds = array<i64: 27, 128>}, {pipeline_mode = #tpu.pipeline_mode<synchronous>, transform_indices = @transform_5, window_bounds = array<i64: 16, 96>}, {pipeline_mode = #tpu.pipeline_mode<synchronous>, transform_indices = @transform_6, window_bounds = array<i64: 96, 384>}, {pipeline_mode = #tpu.pipeline_mode<synchronous>, transform_indices = @transform_7, window_bounds = array<i64: 9, 128, 128>}, {pipeline_mode = #tpu.pipeline_mode<synchronous>, transform_indices = @transform_8, window_bounds = array<i64: 9, 384>}, {transform_indices = @transform_9, window_bounds = array<i64: 1, 16, 128>}]} {
    %c0 = arith.constant 0 : index
    %c0_0 = arith.constant 0 : index
    %c0_1 = arith.constant 0 : index
    %0 = vector.load %arg1[%c0, %c0_0, %c0_1] : memref<1x16x27xf32, #tpu.memory_space<vmem>>, vector<1x16x27xf32>
    %1 = vector.shape_cast %0 : vector<1x16x27xf32> to vector<16x27xf32>
    %c0_2 = arith.constant 0 : index
    %c0_3 = arith.constant 0 : index
    %2 = vector.load %arg5[%c0_2, %c0_3] : memref<27x128xf32, #tpu.memory_space<vmem>>, vector<27x128xf32>
    %cst = arith.constant dense<0.000000e+00> : vector<16x128xf32>
    %3 = tpu.matmul %1, %2, %cst {dimension_numbers = #tpu.dot_dimension_numbers<[1], [0], [0], [1], [0, 0, 1, 1], [], []>} : vector<16x27xf32>, vector<27x128xf32>, vector<16x128xf32> -> vector<16x128xf32>
    %c0_4 = arith.constant 0 : index
    %c0_5 = arith.constant 0 : index
    %4 = vector.load %arg9[%c0_4, %c0_5] : memref<9x384xf32, #tpu.memory_space<vmem>>, vector<1x128xf32>
    %5 = vector.broadcast %4 : vector<1x128xf32> to vector<16x128xf32>
    %6 = arith.addf %3, %5 : vector<16x128xf32>
    %c0_6 = arith.constant 0 : index
    %c0_7 = arith.constant 0 : index
    %c0_8 = arith.constant 0 : index
    %7 = vector.load %arg2[%c0_6, %c0_7, %c0_8] : memref<1x256x16xf32, #tpu.memory_space<vmem>>, vector<1x256x16xf32>
    %8 = vector.shape_cast %7 : vector<1x256x16xf32> to vector<256x16xf32>
    %c0_9 = arith.constant 0 : index
    %c0_10 = arith.constant 0 : index
    %9 = vector.load %arg6[%c0_9, %c0_10] : memref<16x96xf32, #tpu.memory_space<vmem>>, vector<16x96xf32>
    %cst_11 = arith.constant dense<0.000000e+00> : vector<256x96xf32>
    %10 = tpu.matmul %8, %9, %cst_11 {dimension_numbers = #tpu.dot_dimension_numbers<[1], [0], [0], [1], [0, 0, 1, 1], [], []>} : vector<256x16xf32>, vector<16x96xf32>, vector<256x96xf32> -> vector<256x96xf32>
    %c1 = arith.constant 1 : index
    %c0_12 = arith.constant 0 : index
    %11 = vector.load %arg9[%c1, %c0_12] : memref<9x384xf32, #tpu.memory_space<vmem>>, vector<1x96xf32>
    %12 = vector.broadcast %11 : vector<1x96xf32> to vector<256x96xf32>
    %13 = arith.addf %10, %12 : vector<256x96xf32>
    %cst_13 = arith.constant 0.000000e+00 : f32
    %14 = vector.broadcast %cst_13 : f32 to vector<256x96xf32>
    %15 = arith.maximumf %13, %14 : vector<256x96xf32>
    %16 = math.absf %13 : vector<256x96xf32>
    %cst_14 = arith.constant 0.000000e+00 : f32
    %17 = vector.broadcast %cst_14 : f32 to vector<256x96xf32>
    %18 = arith.subf %17, %16 : vector<256x96xf32>
    %19 = math.exp %18 : vector<256x96xf32>
    %cst_15 = arith.constant 1.000000e+00 : f32
    %20 = vector.broadcast %cst_15 : f32 to vector<256x96xf32>
    %21 = arith.addf %20, %19 : vector<256x96xf32>
    %22 = math.log %21 : vector<256x96xf32>
    %23 = arith.addf %15, %22 : vector<256x96xf32>
    %cst_16 = arith.constant 0.693147182 : f32
    %24 = vector.broadcast %cst_16 : f32 to vector<256x96xf32>
    %25 = arith.subf %23, %24 : vector<256x96xf32>
    %c0_17 = arith.constant 0 : index
    %c0_18 = arith.constant 0 : index
    %26 = vector.load %arg7[%c0_17, %c0_18] : memref<96x384xf32, #tpu.memory_space<vmem>>, vector<96x384xf32>
    %cst_19 = arith.constant dense<0.000000e+00> : vector<256x384xf32>
    %27 = tpu.matmul %25, %26, %cst_19 {dimension_numbers = #tpu.dot_dimension_numbers<[1], [0], [0], [1], [0, 0, 1, 1], [], []>} : vector<256x96xf32>, vector<96x384xf32>, vector<256x384xf32> -> vector<256x384xf32>
    %c2 = arith.constant 2 : index
    %c0_20 = arith.constant 0 : index
    %28 = vector.load %arg9[%c2, %c0_20] : memref<9x384xf32, #tpu.memory_space<vmem>>, vector<1x384xf32>
    %29 = vector.broadcast %28 : vector<1x384xf32> to vector<256x384xf32>
    %30 = arith.addf %27, %29 : vector<256x384xf32>
    %c0_21 = arith.constant 0 : index
    %c0_22 = arith.constant 0 : index
    %31 = vector.load %arg11[%c0_21, %c0_22] : memref<256x384xf32, #tpu.memory_space<vmem>>, vector<256x384xf32>
    tpu.vector_store %arg11[%c0_21, %c0_22], %30 {strides = array<i32>} : memref<256x384xf32, #tpu.memory_space<vmem>>, vector<256x384xf32>,
    %c0_23 = arith.constant 0 : index
    %c0_24 = arith.constant 0 : index
    %c0_25 = arith.constant 0 : index
    %32 = vector.load %arg3[%c0_23, %c0_24, %c0_25] : memref<1x16x256xf32, #tpu.memory_space<vmem>>, vector<1x16x256xf32>
    %33 = vector.shape_cast %32 : vector<1x16x256xf32> to vector<16x256xf32>
    %c0_26 = arith.constant 0 : index
    %c0_27 = arith.constant 0 : index
    %34 = vector.load %arg4[%c0_26, %c0_27] : memref<256x16xf32, #tpu.memory_space<vmem>>, vector<256x16xf32>
    %c0_28 = arith.constant 0 : index
    %c0_29 = arith.constant 0 : index
    %35 = vector.load %arg11[%c0_28, %c0_29] : memref<256x384xf32, #tpu.memory_space<vmem>>, vector<256x128xf32>
    %c0_30 = arith.constant 0 : index
    %c0_31 = arith.constant 0 : index
    %c0_32 = arith.constant 0 : index
    %36 = vector.load %arg8[%c0_30, %c0_31, %c0_32] : memref<9x128x128xf32, #tpu.memory_space<vmem>>, vector<1x128x128xf32>
    %37 = vector.shape_cast %36 : vector<1x128x128xf32> to vector<128x128xf32>
    %cst_33 = arith.constant dense<0.000000e+00> : vector<16x128xf32>
    %38 = tpu.matmul %6, %37, %cst_33 {dimension_numbers = #tpu.dot_dimension_numbers<[1], [0], [0], [1], [0, 0, 1, 1], [], []>} : vector<16x128xf32>, vector<128x128xf32>, vector<16x128xf32> -> vector<16x128xf32>
    %cst_34 = arith.constant dense<0.000000e+00> : vector<256x128xf32>
    %39 = tpu.matmul %34, %38, %cst_34 {dimension_numbers = #tpu.dot_dimension_numbers<[1], [0], [0], [1], [0, 0, 1, 1], [], []>} : vector<256x16xf32>, vector<16x128xf32>, vector<256x128xf32> -> vector<256x128xf32>
    %40 = arith.mulf %35, %39 : vector<256x128xf32>
    %cst_35 = arith.constant dense<0.000000e+00> : vector<16x128xf32>
    %41 = tpu.matmul %33, %40, %cst_35 {dimension_numbers = #tpu.dot_dimension_numbers<[1], [0], [0], [1], [0, 0, 1, 1], [], []>} : vector<16x256xf32>, vector<256x128xf32>, vector<16x128xf32> -> vector<16x128xf32>
    %c3 = arith.constant 3 : index
    %c0_36 = arith.constant 0 : index
    %c0_37 = arith.constant 0 : index
    %42 = vector.load %arg8[%c3, %c0_36, %c0_37] : memref<9x128x128xf32, #tpu.memory_space<vmem>>, vector<1x128x128xf32>
    %43 = vector.shape_cast %42 : vector<1x128x128xf32> to vector<128x128xf32>
    %cst_38 = arith.constant dense<0.000000e+00> : vector<16x128xf32>
    %44 = tpu.matmul %41, %43, %cst_38 {dimension_numbers = #tpu.dot_dimension_numbers<[1], [0], [0], [1], [0, 0, 1, 1], [], []>} : vector<16x128xf32>, vector<128x128xf32>, vector<16x128xf32> -> vector<16x128xf32>
    %c3_39 = arith.constant 3 : index
    %c0_40 = arith.constant 0 : index
    %45 = vector.load %arg9[%c3_39, %c0_40] : memref<9x384xf32, #tpu.memory_space<vmem>>, vector<1x128xf32>
    %46 = vector.broadcast %45 : vector<1x128xf32> to vector<16x128xf32>
    %47 = arith.addf %44, %46 : vector<16x128xf32>
    %cst_41 = arith.constant 0.000000e+00 : f32
    %48 = vector.broadcast %cst_41 : f32 to vector<16x128xf32>
    %49 = arith.maximumf %47, %48 : vector<16x128xf32>
    %50 = math.absf %47 : vector<16x128xf32>
    %cst_42 = arith.constant 0.000000e+00 : f32
    %51 = vector.broadcast %cst_42 : f32 to vector<16x128xf32>
    %52 = arith.subf %51, %50 : vector<16x128xf32>
    %53 = math.exp %52 : vector<16x128xf32>
    %cst_43 = arith.constant 1.000000e+00 : f32
    %54 = vector.broadcast %cst_43 : f32 to vector<16x128xf32>
    %55 = arith.addf %54, %53 : vector<16x128xf32>
    %56 = math.log %55 : vector<16x128xf32>
    %57 = arith.addf %49, %56 : vector<16x128xf32>
    %cst_44 = arith.constant 0.693147182 : f32
    %58 = vector.broadcast %cst_44 : f32 to vector<16x128xf32>
    %59 = arith.subf %57, %58 : vector<16x128xf32>
    %c6 = arith.constant 6 : index
    %c0_45 = arith.constant 0 : index
    %c0_46 = arith.constant 0 : index
    %60 = vector.load %arg8[%c6, %c0_45, %c0_46] : memref<9x128x128xf32, #tpu.memory_space<vmem>>, vector<1x128x128xf32>
    %61 = vector.shape_cast %60 : vector<1x128x128xf32> to vector<128x128xf32>
    %cst_47 = arith.constant dense<0.000000e+00> : vector<16x128xf32>
    %62 = tpu.matmul %59, %61, %cst_47 {dimension_numbers = #tpu.dot_dimension_numbers<[1], [0], [0], [1], [0, 0, 1, 1], [], []>} : vector<16x128xf32>, vector<128x128xf32>, vector<16x128xf32> -> vector<16x128xf32>
    %c6_48 = arith.constant 6 : index
    %c0_49 = arith.constant 0 : index
    %63 = vector.load %arg9[%c6_48, %c0_49] : memref<9x384xf32, #tpu.memory_space<vmem>>, vector<1x128xf32>
    %64 = vector.broadcast %63 : vector<1x128xf32> to vector<16x128xf32>
    %65 = arith.addf %62, %64 : vector<16x128xf32>
    %66 = arith.addf %6, %65 : vector<16x128xf32>
    %c0_50 = arith.constant 0 : index
    %c128 = arith.constant 128 : index
    %67 = vector.load %arg11[%c0_50, %c128] : memref<256x384xf32, #tpu.memory_space<vmem>>, vector<256x128xf32>
    %c1_51 = arith.constant 1 : index
    %c0_52 = arith.constant 0 : index
    %c0_53 = arith.constant 0 : index
    %68 = vector.load %arg8[%c1_51, %c0_52, %c0_53] : memref<9x128x128xf32, #tpu.memory_space<vmem>>, vector<1x128x128xf32>
    %69 = vector.shape_cast %68 : vector<1x128x128xf32> to vector<128x128xf32>
    %cst_54 = arith.constant dense<0.000000e+00> : vector<16x128xf32>
    %70 = tpu.matmul %66, %69, %cst_54 {dimension_numbers = #tpu.dot_dimension_numbers<[1], [0], [0], [1], [0, 0, 1, 1], [], []>} : vector<16x128xf32>, vector<128x128xf32>, vector<16x128xf32> -> vector<16x128xf32>
    %cst_55 = arith.constant dense<0.000000e+00> : vector<256x128xf32>
    %71 = tpu.matmul %34, %70, %cst_55 {dimension_numbers = #tpu.dot_dimension_numbers<[1], [0], [0], [1], [0, 0, 1, 1], [], []>} : vector<256x16xf32>, vector<16x128xf32>, vector<256x128xf32> -> vector<256x128xf32>
    %72 = arith.mulf %67, %71 : vector<256x128xf32>
    %cst_56 = arith.constant dense<0.000000e+00> : vector<16x128xf32>
    %73 = tpu.matmul %33, %72, %cst_56 {dimension_numbers = #tpu.dot_dimension_numbers<[1], [0], [0], [1], [0, 0, 1, 1], [], []>} : vector<16x256xf32>, vector<256x128xf32>, vector<16x128xf32> -> vector<16x128xf32>
    %c4 = arith.constant 4 : index
    %c0_57 = arith.constant 0 : index
    %c0_58 = arith.constant 0 : index
    %74 = vector.load %arg8[%c4, %c0_57, %c0_58] : memref<9x128x128xf32, #tpu.memory_space<vmem>>, vector<1x128x128xf32>
    %75 = vector.shape_cast %74 : vector<1x128x128xf32> to vector<128x128xf32>
    %cst_59 = arith.constant dense<0.000000e+00> : vector<16x128xf32>
    %76 = tpu.matmul %73, %75, %cst_59 {dimension_numbers = #tpu.dot_dimension_numbers<[1], [0], [0], [1], [0, 0, 1, 1], [], []>} : vector<16x128xf32>, vector<128x128xf32>, vector<16x128xf32> -> vector<16x128xf32>
    %c4_60 = arith.constant 4 : index
    %c0_61 = arith.constant 0 : index
    %77 = vector.load %arg9[%c4_60, %c0_61] : memref<9x384xf32, #tpu.memory_space<vmem>>, vector<1x128xf32>
    %78 = vector.broadcast %77 : vector<1x128xf32> to vector<16x128xf32>
    %79 = arith.addf %76, %78 : vector<16x128xf32>
    %cst_62 = arith.constant 0.000000e+00 : f32
    %80 = vector.broadcast %cst_62 : f32 to vector<16x128xf32>
    %81 = arith.maximumf %79, %80 : vector<16x128xf32>
    %82 = math.absf %79 : vector<16x128xf32>
    %cst_63 = arith.constant 0.000000e+00 : f32
    %83 = vector.broadcast %cst_63 : f32 to vector<16x128xf32>
    %84 = arith.subf %83, %82 : vector<16x128xf32>
    %85 = math.exp %84 : vector<16x128xf32>
    %cst_64 = arith.constant 1.000000e+00 : f32
    %86 = vector.broadcast %cst_64 : f32 to vector<16x128xf32>
    %87 = arith.addf %86, %85 : vector<16x128xf32>
    %88 = math.log %87 : vector<16x128xf32>
    %89 = arith.addf %81, %88 : vector<16x128xf32>
    %cst_65 = arith.constant 0.693147182 : f32
    %90 = vector.broadcast %cst_65 : f32 to vector<16x128xf32>
    %91 = arith.subf %89, %90 : vector<16x128xf32>
    %c7 = arith.constant 7 : index
    %c0_66 = arith.constant 0 : index
    %c0_67 = arith.constant 0 : index
    %92 = vector.load %arg8[%c7, %c0_66, %c0_67] : memref<9x128x128xf32, #tpu.memory_space<vmem>>, vector<1x128x128xf32>
    %93 = vector.shape_cast %92 : vector<1x128x128xf32> to vector<128x128xf32>
    %cst_68 = arith.constant dense<0.000000e+00> : vector<16x128xf32>
    %94 = tpu.matmul %91, %93, %cst_68 {dimension_numbers = #tpu.dot_dimension_numbers<[1], [0], [0], [1], [0, 0, 1, 1], [], []>} : vector<16x128xf32>, vector<128x128xf32>, vector<16x128xf32> -> vector<16x128xf32>
    %c7_69 = arith.constant 7 : index
    %c0_70 = arith.constant 0 : index
    %95 = vector.load %arg9[%c7_69, %c0_70] : memref<9x384xf32, #tpu.memory_space<vmem>>, vector<1x128xf32>
    %96 = vector.broadcast %95 : vector<1x128xf32> to vector<16x128xf32>
    %97 = arith.addf %94, %96 : vector<16x128xf32>
    %98 = arith.addf %66, %97 : vector<16x128xf32>
    %c0_71 = arith.constant 0 : index
    %c256 = arith.constant 256 : index
    %99 = vector.load %arg11[%c0_71, %c256] : memref<256x384xf32, #tpu.memory_space<vmem>>, vector<256x128xf32>
    %c2_72 = arith.constant 2 : index
    %c0_73 = arith.constant 0 : index
    %c0_74 = arith.constant 0 : index
    %100 = vector.load %arg8[%c2_72, %c0_73, %c0_74] : memref<9x128x128xf32, #tpu.memory_space<vmem>>, vector<1x128x128xf32>
    %101 = vector.shape_cast %100 : vector<1x128x128xf32> to vector<128x128xf32>
    %cst_75 = arith.constant dense<0.000000e+00> : vector<16x128xf32>
    %102 = tpu.matmul %98, %101, %cst_75 {dimension_numbers = #tpu.dot_dimension_numbers<[1], [0], [0], [1], [0, 0, 1, 1], [], []>} : vector<16x128xf32>, vector<128x128xf32>, vector<16x128xf32> -> vector<16x128xf32>
    %cst_76 = arith.constant dense<0.000000e+00> : vector<256x128xf32>
    %103 = tpu.matmul %34, %102, %cst_76 {dimension_numbers = #tpu.dot_dimension_numbers<[1], [0], [0], [1], [0, 0, 1, 1], [], []>} : vector<256x16xf32>, vector<16x128xf32>, vector<256x128xf32> -> vector<256x128xf32>
    %104 = arith.mulf %99, %103 : vector<256x128xf32>
    %cst_77 = arith.constant dense<0.000000e+00> : vector<16x128xf32>
    %105 = tpu.matmul %33, %104, %cst_77 {dimension_numbers = #tpu.dot_dimension_numbers<[1], [0], [0], [1], [0, 0, 1, 1], [], []>} : vector<16x256xf32>, vector<256x128xf32>, vector<16x128xf32> -> vector<16x128xf32>
    %c5 = arith.constant 5 : index
    %c0_78 = arith.constant 0 : index
    %c0_79 = arith.constant 0 : index
    %106 = vector.load %arg8[%c5, %c0_78, %c0_79] : memref<9x128x128xf32, #tpu.memory_space<vmem>>, vector<1x128x128xf32>
    %107 = vector.shape_cast %106 : vector<1x128x128xf32> to vector<128x128xf32>
    %cst_80 = arith.constant dense<0.000000e+00> : vector<16x128xf32>
    %108 = tpu.matmul %105, %107, %cst_80 {dimension_numbers = #tpu.dot_dimension_numbers<[1], [0], [0], [1], [0, 0, 1, 1], [], []>} : vector<16x128xf32>, vector<128x128xf32>, vector<16x128xf32> -> vector<16x128xf32>
    %c5_81 = arith.constant 5 : index
    %c0_82 = arith.constant 0 : index
    %109 = vector.load %arg9[%c5_81, %c0_82] : memref<9x384xf32, #tpu.memory_space<vmem>>, vector<1x128xf32>
    %110 = vector.broadcast %109 : vector<1x128xf32> to vector<16x128xf32>
    %111 = arith.addf %108, %110 : vector<16x128xf32>
    %cst_83 = arith.constant 0.000000e+00 : f32
    %112 = vector.broadcast %cst_83 : f32 to vector<16x128xf32>
    %113 = arith.maximumf %111, %112 : vector<16x128xf32>
    %114 = math.absf %111 : vector<16x128xf32>
    %cst_84 = arith.constant 0.000000e+00 : f32
    %115 = vector.broadcast %cst_84 : f32 to vector<16x128xf32>
    %116 = arith.subf %115, %114 : vector<16x128xf32>
    %117 = math.exp %116 : vector<16x128xf32>
    %cst_85 = arith.constant 1.000000e+00 : f32
    %118 = vector.broadcast %cst_85 : f32 to vector<16x128xf32>
    %119 = arith.addf %118, %117 : vector<16x128xf32>
    %120 = math.log %119 : vector<16x128xf32>
    %121 = arith.addf %113, %120 : vector<16x128xf32>
    %cst_86 = arith.constant 0.693147182 : f32
    %122 = vector.broadcast %cst_86 : f32 to vector<16x128xf32>
    %123 = arith.subf %121, %122 : vector<16x128xf32>
    %c8 = arith.constant 8 : index
    %c0_87 = arith.constant 0 : index
    %c0_88 = arith.constant 0 : index
    %124 = vector.load %arg8[%c8, %c0_87, %c0_88] : memref<9x128x128xf32, #tpu.memory_space<vmem>>, vector<1x128x128xf32>
    %125 = vector.shape_cast %124 : vector<1x128x128xf32> to vector<128x128xf32>
    %cst_89 = arith.constant dense<0.000000e+00> : vector<16x128xf32>
    %126 = tpu.matmul %123, %125, %cst_89 {dimension_numbers = #tpu.dot_dimension_numbers<[1], [0], [0], [1], [0, 0, 1, 1], [], []>} : vector<16x128xf32>, vector<128x128xf32>, vector<16x128xf32> -> vector<16x128xf32>
    %c8_90 = arith.constant 8 : index
    %c0_91 = arith.constant 0 : index
    %127 = vector.load %arg9[%c8_90, %c0_91] : memref<9x384xf32, #tpu.memory_space<vmem>>, vector<1x128xf32>
    %128 = vector.broadcast %127 : vector<1x128xf32> to vector<16x128xf32>
    %129 = arith.addf %126, %128 : vector<16x128xf32>
    %130 = arith.addf %98, %129 : vector<16x128xf32>
    %c0_92 = arith.constant 0 : index
    %c0_93 = arith.constant 0 : index
    %c0_94 = arith.constant 0 : index
    %131 = vector.load %arg10[%c0_92, %c0_93, %c0_94] : memref<1x16x128xf32, #tpu.memory_space<vmem>>, vector<1x16x128xf32>
    %132 = vector.shape_cast %131 : vector<1x16x128xf32> to vector<16x128xf32>
    %133 = vector.shape_cast %130 : vector<16x128xf32> to vector<1x16x128xf32>
    tpu.vector_store %arg10[%c0_92, %c0_93, %c0_94], %133 {strides = array<i32>} : memref<1x16x128xf32, #tpu.memory_space<vmem>>, vector<1x16x128xf32>,
    return
  }
  func.func @transform_0(%arg0: i32) -> (i32, i32, i32) {
    %c0_i32 = arith.constant 0 : i32
    %c0_i32_0 = arith.constant 0 : i32
    %c0_i32_1 = arith.constant 0 : i32
    return %arg0, %c0_i32, %c0_i32_0 : i32, i32, i32
  }
  func.func @transform_1(%arg0: i32) -> (i32, i32, i32) {
    %c0_i32 = arith.constant 0 : i32
    %c0_i32_0 = arith.constant 0 : i32
    %c0_i32_1 = arith.constant 0 : i32
    return %arg0, %c0_i32, %c0_i32_0 : i32, i32, i32
  }
  func.func @transform_2(%arg0: i32) -> (i32, i32, i32) {
    %c0_i32 = arith.constant 0 : i32
    %c0_i32_0 = arith.constant 0 : i32
    %c0_i32_1 = arith.constant 0 : i32
    return %arg0, %c0_i32, %c0_i32_0 : i32, i32, i32
  }
  func.func @transform_3(%arg0: i32) -> (i32, i32) {
    %c0_i32 = arith.constant 0 : i32
    %c0_i32_0 = arith.constant 0 : i32
    %c0_i32_1 = arith.constant 0 : i32
    return %c0_i32, %c0_i32_0 : i32, i32
  }
  func.func @transform_4(%arg0: i32) -> (i32, i32) {
    %c0_i32 = arith.constant 0 : i32
    %c0_i32_0 = arith.constant 0 : i32
    %c0_i32_1 = arith.constant 0 : i32
    return %c0_i32, %c0_i32_0 : i32, i32
  }
  func.func @transform_5(%arg0: i32) -> (i32, i32) {
    %c0_i32 = arith.constant 0 : i32
    %c0_i32_0 = arith.constant 0 : i32
    %c0_i32_1 = arith.constant 0 : i32
    return %c0_i32, %c0_i32_0 : i32, i32
  }
  func.func @transform_6(%arg0: i32) -> (i32, i32) {
    %c0_i32 = arith.constant 0 : i32
    %c0_i32_0 = arith.constant 0 : i32
    %c0_i32_1 = arith.constant 0 : i32
    return %c0_i32, %c0_i32_0 : i32, i32
  }
  func.func @transform_7(%arg0: i32) -> (i32, i32, i32) {
    %c0_i32 = arith.constant 0 : i32
    %c0_i32_0 = arith.constant 0 : i32
    %c0_i32_1 = arith.constant 0 : i32
    %c0_i32_2 = arith.constant 0 : i32
    return %c0_i32, %c0_i32_0, %c0_i32_1 : i32, i32, i32
  }
  func.func @transform_8(%arg0: i32) -> (i32, i32) {
    %c0_i32 = arith.constant 0 : i32
    %c0_i32_0 = arith.constant 0 : i32
    %c0_i32_1 = arith.constant 0 : i32
    return %c0_i32, %c0_i32_0 : i32, i32
  }
  func.func @transform_9(%arg0: i32) -> (i32, i32, i32) {
    %c0_i32 = arith.constant 0 : i32
    %c0_i32_0 = arith.constant 0 : i32
    %c0_i32_1 = arith.constant 0 : i32
    return %arg0, %c0_i32, %c0_i32_0 : i32, i32, i32
  }
}

</mosaic_0001>

<bundles_post_ra>
// kernel: sub.17
= control target key start
LH: loop header
LB: loop body
LE: loop exit
PB: predicated region body
PF: predicated region fallthrough
CT: control target
= control target key end

     0   :  { %vm8_vm0 = vcmask 130048   ;;  %s64_s0 = inlined_call_operand.vmem [shape: f32[32,3], index: 0, kind: input, shape index: {}]   ;;  %s65_s1 = inlined_call_operand.vmem [shape: f32[2,16,3], index: 1, kind: output, shape index: {}]  }
   0x1   :  { %v5_v0 = vld [vmem:[%s64_s0] sm:$0xf]  ;;  %s41_s0 = smov 112  }
   0x2   :  { %6 = vst [vmem:[#allocation1] sm:$0xf] %v5_v0 }
   0x9   :  { %v10_v1 = vld [vmem:[#allocation1] sm:$0x7]  }
   0xa   :  { %v7_v2 = vld [vmem:[#allocation1] sm:$0x7]   ;;  %11 = vrot.lane.b32.xlu0 %v10_v1, %s41_s0 }
   0xb   :  { %9 = vst.msk [vmem:[#allocation0] ss:$8 sm:$0x7] %vm8_vm0, %v7_v2  }
  0x7c   :  { %v12_v3 = vpop.permute.xlu0 %11  }
  0x7d   :  { %15 = vst.msk [vmem:[#allocation0 + $0x1] ss:$8 sm:$0x7] %vm8_vm0, %v12_v3  }
  0x84   :  { %v20_v4 = vld [vmem:[#allocation0] sm:$0x3]  ;;  %v25_v5 = vld [vmem:[#allocation0 + $0x8] sm:$0x3]  ;;  %v31_v6 = vld [vmem:[#allocation0 + $0x10] sm:$0x3] }
  0x85   :  { %23 = vst [vmem:[%s65_s1] sm:$0x3] %v20_v4  ;;  %38 = vst [vmem:[%s65_s1 + $0x2] sm:$0x3] %v25_v5 }
  0x86   :  { %39 = vst [vmem:[%s65_s1 + $0x4] sm:$0x3] %v31_v6 }

// kernel: eq.11
= control target key start
LH: loop header
LB: loop body
LE: loop exit
PB: predicated region body
PF: predicated region fallthrough
CT: control target
= control target key end

     0   :  { %vm8_vm0 = vcmask 130048   ;;  %s42_s0 = inlined_call_operand.vmem [shape: s32[32], index: 0, kind: input, shape index: {}]   ;;  %s43_s1 = inlined_call_operand.vmem [shape: s32[2,16], index: 1, kind: output, shape index: {}]  }
   0x1   :  { %v5_v0 = vld [vmem:[%s42_s0] sm:$0x1]  ;;  %s25_s0 = smov 112  }
   0x2   :  { %6 = vst [vmem:[#allocation1] sm:$0x1] %v5_v0 }
   0x9   :  { %v10_v1 = vld [vmem:[#allocation1] sm:$0x1]  }
   0xa   :  { %v7_v2 = vld [vmem:[#allocation1] sm:$0x1]   ;;  %11 = vrot.lane.b32.xlu0 %v10_v1, %s25_s0 }
   0xb   :  { %9 = vst.msk [vmem:[#allocation0] sm:$0x1] %vm8_vm0, %v7_v2  }
  0x7c   :  { %v12_v3 = vpop.permute.xlu0 %11  }
  0x7d   :  { %15 = vst.msk [vmem:[#allocation0 + $0x1] sm:$0x1] %vm8_vm0, %v12_v3  }
  0x84   :  { %v20_v4 = vld [vmem:[#allocation0] sm:$0x3] }
  0x85   :  { %23 = vst [vmem:[%s43_s1] sm:$0x3] %v20_v4 }

// kernel: schnet_encoder_pallas.1
= control target key start
LH: loop header
LB: loop body
LE: loop exit
PB: predicated region body
PF: predicated region fallthrough
CT: control target
= control target key end

     0   :  { %14 = vsyncpa [#allocation4], 0  ;;  %s8037_s0 = inlined_call_operand.vmem [shape: f32[2,16,27], index: 0, kind: input, shape index: {}]   ;;  %s8038_s1 = inlined_call_operand.vmem [shape: f32[2,256,16], index: 1, kind: input, shape index: {}]   ;;  %s8039_s2 = inlined_call_operand.vmem [shape: f32[2,16,256], index: 2, kind: input, shape index: {}]   ;;  %s8040_s3 = inlined_call_operand.vmem [shape: f32[256,16], index: 3, kind: input, shape index: {}]   ;;  %s8041_s4 = inlined_call_operand.vmem [shape: f32[27,128], index: 4, kind: input, shape index: {}]   ;;  %s8042_s5 = inlined_call_operand.vmem [shape: f32[16,96], index: 5, kind: input, shape index: {}]   ;;  %s8043_s6 = inlined_call_operand.vmem [shape: f32[96,384], index: 6, kind: input, shape index: {}]   ;;  %s8044_s7 = inlined_call_operand.vmem [shape: f32[9,128,128], index: 7, kind: input, shape index: {}]   ;;  %s8045_s8 = inlined_call_operand.vmem [shape: f32[9,384], index: 8, kind: input, shape index: {}]   ;;  %s8046_s9 = inlined_call_operand.hbm [shape: f32[2,16,128], index: 9, kind: output, shape index: {}]  }
   0x1   :  { %16 = vsyncpa [#allocation4 + $0x1], 0  ;;  %s5899_s30 = smov 0   ;;  %s5901_s10 = smov 0  }
   0x2   :  { %s5903_s11 = smov 0   ;;  %s5905_s12 = smov 0  }
   0x3 LB: > { %s5920_s13 = sadd.s32 4294967295, %s5843_s12   ;;  %s4095_s14 = sadd.s32 4294967294, %s5843_s12   ;;  %s5843_s12 = sphi %s5905_s12, %s8287_s12   ;;  %s5839_s11 = sphi %s5903_s11, %s8286_s11   ;;  %s5835_s10 = sphi %s5901_s10, %s8285_s10   ;;  %s5831_s30 = sphi %s5899_s30, %s8284_s30  }
   0x4   : > { %s5924_s15 = sadd.s32 1, %s5843_s12   ;;  %s233_s16 = sadd.s32 1, %s5839_s11 }
   0x5   : > { %s230_s17 = ssub.s32 %s5843_s12, %s5924_s15  ;;  %p243_p0 = scmp.ne.s32.totalorder %s5839_s11, %s5835_s10 }
   0x6   : > { %p231_p1 = scmp.eq.s32.totalorder %s230_s17, 0  ;;  %p244_p2 = scmp.eq.s32.totalorder %s5920_s13, 1 }
   0x7   : > { %p249_p3 = scmp.ne.s32.totalorder %s5835_s10, %s5831_s30  ;;  %p250_p4 = scmp.eq.s32.totalorder %s4095_s14, 1 }
   0x8   : > { %s5935_s18 = scalar_select %p231_p1, %s5839_s11, %s233_s16  }
   0x9   : > { %p5937_p5 = por %p244_p2, %p243_p0  ;;  %p5941_p6 = por %p250_p4, %p249_p3 }
   0xa   : > { %p4098_p7 = scmp.ge.s32.totalorder %s5843_s12, 1  ;;  %p310_p8 = scmp.lt.s32.totalorder %s5843_s12, 3 }
   0xc   : > { %p311_p9 = pnand %p4098_p7, %p310_p8 }
   0xe   : > { %314 = sbr.rel (%p311_p9) target bundleno = 3673 (0xe59), region = 56 }
  0x13   : > { %v497_v0 = vld [vmem:[%s8042_s5 + $0x8] sm:$0xff]  ;;  %v496_v1 = vld [vmem:[%s8042_s5] sm:$0xff]  ;;  %p356_p10 = scmp.lt.s32.totalorder %s5920_s13, 1  ;;  %v376_v2 = vld [vmem:[%s8041_s4 + $0x18] sm:$0x7]  ;;  %vm385_vm0 = vcmask 1042432  }
  0x14   : > { %4950 = vmatprep.subr.mxu1 %v497_v0  ;;  %v375_v3 = vld [vmem:[%s8041_s4 + $0x10] sm:$0xff]  ;;  %4939 = vmatprep.subr.msk.mxu0 %vm385_vm0, %v376_v2  ;;  %v374_v4 = vld [vmem:[%s8041_s4 + $0x8] sm:$0xff]  ;;  %vm499_vm1 = vcmask 130048   ;;  %v373_v5 = vld [vmem:[%s8041_s4] sm:$0xff]  ;;  %vm378_vm2 = vcmask 220160   ;;  %vm1195_vm3 = vcmask 785408  }
  0x15   : > { %4951 = vmatpush3.msra.mxu1 %v497_v0  ;;  %s5961_s29 = scalar_select %p356_p10, %s5920_s13, 1  ;;  %4940 = vmatpush3.msk.msra.mxu0 %vm385_vm0, %v376_v2  ;;  %v1175_v40 = vld [vmem:[%s8043_s6 + $0x110] sm:$0xff]  ;;  %v1174_v41 = vld [vmem:[%s8043_s6 + $0x108] sm:$0xff]  ;;  %v1176_v42 = vld [vmem:[%s8043_s6 + $0x118] sm:$0xff] }
  0x16   : > { %4952 = vmatprep.subr.mxu1 %v496_v1  ;;  %4941 = vmatprep.subr.mxu0 %v375_v3  ;;  %v1172_v43 = vld [vmem:[%s8043_s6 + $0xf8] sm:$0xff]  ;;  %v1171_v44 = vld [vmem:[%s8043_s6 + $0xf0] sm:$0xff]  ;;  %v1173_v45 = vld [vmem:[%s8043_s6 + $0x100] sm:$0xff]  ;;  %s4476_s22 = sshll.u32 %s5920_s13, 8 }
  0x17   : > { %4953 = vmatpush3.msra.mxu1 %v496_v1  ;;  %s4474_s17 = sshll.u32 %s5961_s29, 8  ;;  %4942 = vmatpush3.msra.mxu0 %v375_v3  ;;  %s4473_s26 = sshll.u32 %s5961_s29, 4  ;;  %v1169_v46 = vld [vmem:[%s8043_s6 + $0xe0] sm:$0xff]  ;;  %v1168_v47 = vld [vmem:[%s8043_s6 + $0xd8] sm:$0xff]  ;;  %v1170_v48 = vld [vmem:[%s8043_s6 + $0xe8] sm:$0xff] }
  0x18   : > { %s5970_s23 = scalar_lea.vmem %s8038_s1, %s4474_s17  ;;  %4943 = vmatprep.subr.mxu0 %v374_v4  ;;  %s360_s14 = scalar_lea.vmem %s8037_s0, %s4473_s26  ;;  %5002 = vmatprep.subr.mxu1 %v1176_v42  ;;  %v1166_v49 = vld [vmem:[%s8043_s6 + $0xc8] sm:$0xff]  ;;  %v1165_v50 = vld [vmem:[%s8043_s6 + $0xc0] sm:$0xff]  ;;  %v1167_v51 = vld [vmem:[%s8043_s6 + $0xd0] sm:$0xff] }
  0x19   : > { %v464_v6 = vld [vmem:[%s5970_s23] sm:$0xff]  ;;  %v465_v7 = vld [vmem:[%s5970_s23 + $0x8] sm:$0xff]  ;;  %v466_v8 = vld [vmem:[%s5970_s23 + $0x10] sm:$0xff]  ;;  %4944 = vmatpush3.msra.mxu0 %v374_v4  ;;  %s4475_s28 = sshll.u32 %s5961_s29, 5  ;;  %s7994_s26 = scalar_lea.hbm %s8046_s9, %s4476_s22 }
  0x1a   : > { %4954 = vmatprep.mubr.msk.f32.mxu1 %vm499_vm1, %v464_v6  ;;  %4945 = vmatprep.subr.mxu0 %v373_v5  ;;  %v467_v9 = vld [vmem:[%s5970_s23 + $0x18] sm:$0xff]  ;;  %v468_v10 = vld [vmem:[%s5970_s23 + $0x20] sm:$0xff]  ;;  %v469_v11 = vld [vmem:[%s5970_s23 + $0x28] sm:$0xff]  ;;  %s7099_s17 = scalar_lea.vmem %s8039_s2, %s4475_s28 }
  0x1b   : > { %4955 = vmatmul.mubr.msk.f32.vlgmr.msra.gmra.mxu1 %vm499_vm1, %v465_v7  ;;  %4946 = vmatpush3.msra.mxu0 %v373_v5  ;;  %v470_v12 = vld [vmem:[%s5970_s23 + $0x30] sm:$0xff]  ;;  %v371_v13 = vld [vmem:[%s360_s14] sm:$0xff]  ;;  %v471_v14 = vld [vmem:[%s5970_s23 + $0x38] sm:$0xff] }
  0x1c   : > { %4957 = vmatprep.mubr.msk.f32.mxu1 %vm499_vm1, %v466_v8  ;;  %v372_v15 = vld [vmem:[%s360_s14 + $0x8] sm:$0xff]  ;;  %4947 = vmatprep.mubr.msk.f32.mxu0 %vm378_vm2, %v371_v13  ;;  %v472_v16 = vld [vmem:[%s5970_s23 + $0x40] sm:$0xff]  ;;  %v474_v18 = vld [vmem:[%s5970_s23 + $0x50] sm:$0xff] }
  0x1d   : > { %4948 = vmatmul.mubr.msk.f32.vlgmr.msra.gmra.mxu0 %vm378_vm2, %v372_v15  ;;  %v473_v17 = vld [vmem:[%s5970_s23 + $0x48] sm:$0xff]  ;;  %v475_v19 = vld [vmem:[%s5970_s23 + $0x58] sm:$0xff]  ;;  %v476_v20 = vld [vmem:[%s5970_s23 + $0x60] sm:$0xff]  ;;  %1300 = vmatprep.subr.mxu0 %v1175_v40 }
  0x1e   : > { %v477_v21 = vld [vmem:[%s5970_s23 + $0x68] sm:$0xff]  ;;  %v478_v22 = vld [vmem:[%s5970_s23 + $0x70] sm:$0xff]  ;;  %v479_v23 = vld [vmem:[%s5970_s23 + $0x78] sm:$0xff]  ;;  %1301 = vmatpush1.msra.mxu0 %v1174_v41  ;;  %5003 = vmatpush3.msra.mxu1 %v1176_v42 }
  0x1f   : > { %4958 = vmatmul.mubr.msk.f32.gmra.mxu1 %vm499_vm1, %v467_v9  ;;  %v480_v24 = vld [vmem:[%s5970_s23 + $0x80] sm:$0xff]  ;;  %v481_v25 = vld [vmem:[%s5970_s23 + $0x88] sm:$0xff]  ;;  %v482_v26 = vld [vmem:[%s5970_s23 + $0x90] sm:$0xff]  ;;  %1302 = vmatprep.subr.mxu0 %v1172_v43 }
  0x20   : > { %4960 = vmatprep.mubr.msk.f32.mxu1 %vm499_vm1, %v468_v10  ;;  %v483_v27 = vld [vmem:[%s5970_s23 + $0x98] sm:$0xff]  ;;  %v484_v28 = vld [vmem:[%s5970_s23 + $0xa0] sm:$0xff]  ;;  %v485_v29 = vld [vmem:[%s5970_s23 + $0xa8] sm:$0xff]  ;;  %1303 = vmatpush1.msra.mxu0 %v1171_v44 }
  0x21   : > { %v486_v30 = vld [vmem:[%s5970_s23 + $0xb0] sm:$0xff]  ;;  %v487_v31 = vld [vmem:[%s5970_s23 + $0xb8] sm:$0xff]  ;;  %v488_v32 = vld [vmem:[%s5970_s23 + $0xc0] sm:$0xff]  ;;  %5004 = vmatprep.subr.mxu1 %v1173_v45  ;;  %1304 = vmatprep.subr.mxu0 %v1169_v46 }
  0x22   : > { %v489_v33 = vld [vmem:[%s5970_s23 + $0xc8] sm:$0xff]  ;;  %v490_v34 = vld [vmem:[%s5970_s23 + $0xd0] sm:$0xff]  ;;  %v491_v35 = vld [vmem:[%s5970_s23 + $0xd8] sm:$0xff]  ;;  %5005 = vmatpush3.msra.mxu1 %v1173_v45  ;;  %1305 = vmatpush1.msra.mxu0 %v1168_v47 }
  0x23   : > { %4961 = vmatmul.mubr.msk.f32.gmra.mxu1 %vm499_vm1, %v469_v11  ;;  %v492_v36 = vld [vmem:[%s5970_s23 + $0xe0] sm:$0xff]  ;;  %v493_v37 = vld [vmem:[%s5970_s23 + $0xe8] sm:$0xff]  ;;  %v494_v38 = vld [vmem:[%s5970_s23 + $0xf0] sm:$0xff]  ;;  %5006 = vmatprep.subr.mxu1 %v1170_v48 }
  0x24   : > { %4963 = vmatprep.mubr.msk.f32.mxu1 %vm499_vm1, %v470_v12  ;;  %v495_v39 = vld [vmem:[%s5970_s23 + $0xf8] sm:$0xff]  ;;  %1306 = vmatprep.subr.mxu0 %v1166_v49  ;;  %v1163_v52 = vld [vmem:[%s8043_s6 + $0xb0] sm:$0xff]  ;;  %v1162_v53 = vld [vmem:[%s8043_s6 + $0xa8] sm:$0xff]  ;;  %v5845_v12 = vmov 0.0   ;;  %s5846_s23 = smov [#allocation3]  }
  0x25   : > { %5007 = vmatpush3.msra.mxu1 %v1170_v48  ;;  %1307 = vmatpush1.msra.mxu0 %v1165_v50  ;;  %v1164_v54 = vld [vmem:[%s8043_s6 + $0xb8] sm:$0xff]  ;;  %v1159_v56 = vld [vmem:[%s8043_s6 + $0x90] sm:$0xff]  ;;  %v1161_v57 = vld [vmem:[%s8043_s6 + $0xa0] sm:$0xff] }
  0x26   : > { %5008 = vmatprep.subr.mxu1 %v1167_v51  ;;  %1308 = vmatprep.subr.mxu0 %v1163_v52  ;;  %v1160_v55 = vld [vmem:[%s8043_s6 + $0x98] sm:$0xff]  ;;  %v1157_v58 = vld [vmem:[%s8043_s6 + $0x80] sm:$0xff]  ;;  %v1158_v60 = vld [vmem:[%s8043_s6 + $0x88] sm:$0xff] }
  0x27   : > { %4964 = vmatmul.mubr.msk.f32.gmra.mxu1 %vm499_vm1, %v471_v14  ;;  %1309 = vmatpush1.msra.mxu0 %v1162_v53  ;;  %v1156_v59 = vld [vmem:[%s8043_s6 + $0x78] sm:$0xff]  ;;  %v1154_v61 = vld [vmem:[%s8043_s6 + $0x68] sm:$0xff]  ;;  %v1153_v62 = vld [vmem:[%s8043_s6 + $0x60] sm:$0xff] }
  0x28   : > { %4966 = vmatprep.mubr.msk.f32.mxu1 %vm499_vm1, %v472_v16  ;;  %5009 = vmatpush3.msra.mxu1 %v1167_v51  ;;  %v1155_v63 = vld [vmem:[%s8043_s6 + $0x70] sm:$0xff]  ;;  %v1150_v1 = vld [vmem:[%s8043_s6 + $0x48] sm:$0xff]  ;;  %v1152_v2 = vld [vmem:[%s8043_s6 + $0x58] sm:$0xff] }
  0x29   : > { %5010 = vmatprep.subr.mxu1 %v1164_v54  ;;  %1310 = vmatprep.subr.mxu0 %v1160_v55  ;;  %v1151_v0 = vld [vmem:[%s8043_s6 + $0x50] sm:$0xff]  ;;  %v1148_v3 = vld [vmem:[%s8043_s6 + $0x38] sm:$0xff]  ;;  %v1149_v5 = vld [vmem:[%s8043_s6 + $0x40] sm:$0xff] }
  0x2a   : > { %5011 = vmatpush3.msra.mxu1 %v1164_v54  ;;  %1311 = vmatpush1.msra.mxu0 %v1159_v56  ;;  %v1147_v4 = vld [vmem:[%s8043_s6 + $0x30] sm:$0xff]  ;;  %v1145_v6 = vld [vmem:[%s8043_s6 + $0x20] sm:$0xff]  ;;  %v1144_v7 = vld [vmem:[%s8043_s6 + $0x18] sm:$0xff] }
  0x2b   : > { %4967 = vmatmul.mubr.msk.f32.gmra.mxu1 %vm499_vm1, %v473_v17  ;;  %5012 = vmatprep.subr.mxu1 %v1161_v57  ;;  %v1146_v8 = vld [vmem:[%s8043_s6 + $0x28] sm:$0xff]  ;;  %v1141_v10 = vld [vmem:[%s8043_s6] sm:$0xff]  ;;  %v1143_v11 = vld [vmem:[%s8043_s6 + $0x10] sm:$0xff] }
  0x2c   : > { %4969 = vmatprep.mubr.msk.f32.mxu1 %vm499_vm1, %v474_v18  ;;  %1312 = vmatprep.subr.mxu0 %v1157_v58  ;;  %v1142_v9 = vld [vmem:[%s8043_s6 + $0x8] sm:$0xff]  ;;  %v6155_v13 = vld [vmem:[%s8044_s7 + $0x78] sm:$0xff]  ;;  %v6161_v14 = vld [vmem:[%s8045_s8 + $0x1] ss:$0 sm:$0xff] }
  0x2d   : > { %5013 = vmatpush3.msra.mxu1 %v1161_v57  ;;  %1313 = vmatpush1.msra.mxu0 %v1156_v59 }
  0x2e   : > { %5014 = vmatprep.subr.mxu1 %v1158_v60  ;;  %1314 = vmatprep.subr.mxu0 %v1154_v61 }
  0x2f   : > { %4970 = vmatmul.mubr.msk.f32.gmra.mxu1 %vm499_vm1, %v475_v19  ;;  %1315 = vmatpush1.msra.mxu0 %v1153_v62 }
  0x30   : > { %4972 = vmatprep.mubr.msk.f32.mxu1 %vm499_vm1, %v476_v20  ;;  %5015 = vmatpush3.msra.mxu1 %v1158_v60 }
  0x31   : > { %5016 = vmatprep.subr.mxu1 %v1155_v63  ;;  %1316 = vmatprep.subr.mxu0 %v1151_v0 }
  0x32   : > { %5017 = vmatpush3.msra.mxu1 %v1155_v63  ;;  %1317 = vmatpush1.msra.mxu0 %v1150_v1 }
  0x33   : > { %4973 = vmatmul.mubr.msk.f32.gmra.mxu1 %vm499_vm1, %v477_v21  ;;  %5018 = vmatprep.subr.mxu1 %v1152_v2 }
  0x34   : > { %4975 = vmatprep.mubr.msk.f32.mxu1 %vm499_vm1, %v478_v22  ;;  %1318 = vmatprep.subr.mxu0 %v1148_v3 }
  0x35   : > { %5019 = vmatpush3.msra.mxu1 %v1152_v2  ;;  %1319 = vmatpush1.msra.mxu0 %v1147_v4 }
  0x36   : > { %5020 = vmatprep.subr.mxu1 %v1149_v5  ;;  %1320 = vmatprep.subr.mxu0 %v1145_v6 }
  0x37   : > { %4976 = vmatmul.mubr.msk.f32.gmra.mxu1 %vm499_vm1, %v479_v23  ;;  %1321 = vmatpush1.msra.mxu0 %v1144_v7 }
  0x38   : > { %4978 = vmatprep.mubr.msk.f32.mxu1 %vm499_vm1, %v480_v24  ;;  %5021 = vmatpush3.msra.mxu1 %v1149_v5 }
  0x39   : > { %5022 = vmatprep.subr.mxu1 %v1146_v8  ;;  %1322 = vmatprep.subr.mxu0 %v1142_v9 }
  0x3a   : > { %5023 = vmatpush3.msra.mxu1 %v1146_v8  ;;  %1323 = vmatpush1.msra.mxu0 %v1141_v10 }
  0x3b   : > { %4979 = vmatmul.mubr.msk.f32.gmra.mxu1 %vm499_vm1, %v481_v25  ;;  %1356 = vmatprep.mubr.f32.mxu0 %v5845_v12 }
  0x3c   : > { %4981 = vmatprep.mubr.msk.f32.mxu1 %vm499_vm1, %v482_v26  ;;  %5024 = vmatprep.subr.mxu1 %v1143_v11 }
  0x3d   : > { %5025 = vmatpush3.msra.mxu1 %v1143_v11 }
  0x3e   : > { %5074 = vmatprep.subr.mxu1 %v6155_v13 }
  0x3f   : > { %4982 = vmatmul.mubr.msk.f32.gmra.mxu1 %vm499_vm1, %v483_v27 }
  0x40   : > { %4984 = vmatprep.mubr.msk.f32.mxu1 %vm499_vm1, %v484_v28 }
  0x43   : > { %4985 = vmatmul.mubr.msk.f32.gmra.mxu1 %vm499_vm1, %v485_v29 }
  0x44   : > { %4987 = vmatprep.mubr.msk.f32.mxu1 %vm499_vm1, %v486_v30 }
  0x47   : > { %4988 = vmatmul.mubr.msk.f32.gmra.mxu1 %vm499_vm1, %v487_v31 }
  0x48   : > { %4990 = vmatprep.mubr.msk.f32.mxu1 %vm499_vm1, %v488_v32 }
  0x4b   : > { %4991 = vmatmul.mubr.msk.f32.gmra.mxu1 %vm499_vm1, %v489_v33 }
  0x4c   : > { %4993 = vmatprep.mubr.msk.f32.mxu1 %vm499_vm1, %v490_v34 }
  0x4f   : > { %4994 = vmatmul.mubr.msk.f32.gmra.mxu1 %vm499_vm1, %v491_v35 }
  0x50   : > { %4996 = vmatprep.mubr.msk.f32.mxu1 %vm499_vm1, %v492_v36 }
  0x53   : > { %4997 = vmatmul.mubr.msk.f32.gmra.mxu1 %vm499_vm1, %v493_v37 }
  0x54   : > { %4999 = vmatprep.mubr.msk.f32.mxu1 %vm499_vm1, %v494_v38 }
  0x57   : > { %5000 = vmatmul.mubr.msk.f32.gmra.mxu1 %vm499_vm1, %v495_v39 }
  0xdb   : > { %v4956_v15 = vpop.f32.mrf.mxu1 }
  0xdc   : > { %v6164_v16 = vadd.f32 %v4956_v15, %v6161_v14 }
  0xdd   : > { %v662_v17 = vpop.f32.mrf.mxu1 }
  0xde   : > { %v854_v18 = vand.u32 2147483647, %v6164_v16  ;;  %v6168_v19 = vadd.f32 %v662_v17, %v6161_v14 }
  0xdf   : > { %v4959_v20 = vpop.f32.mrf.mxu1 }
  0xe0   : > { %v886_v21 = vsub.f32 0.0, %v854_v18  ;;  %v853_v22 = vand.u32 2147483647, %v6168_v19  ;;  %v6172_v23 = vadd.f32 %v4959_v20, %v6161_v14 }
  0xe1   : > { %v672_v24 = vpop.f32.mrf.mxu1 }
  0xe2   : > { %v919_v25 = vmul.f32 1.442695, %v886_v21  ;;  %v885_v26 = vsub.f32 0.0, %v853_v22  ;;  %v856_v27 = vand.u32 2147483647, %v6172_v23  ;;  %v6176_v28 = vadd.f32 %v672_v24, %v6161_v14 }
  0xe3   : > { %v4962_v29 = vpop.f32.mrf.mxu1 }
  0xe4   : > { %5595 = vpow2.f32 %v919_v25  ;;  %v917_v30 = vmul.f32 1.442695, %v885_v26  ;;  %v888_v31 = vsub.f32 0.0, %v856_v27  ;;  %v6179_v32 = vadd.f32 %v4962_v29, %v6161_v14 }
  0xe5   : > { %v855_v33 = vand.u32 2147483647, %v6176_v28  ;;  %v682_v34 = vpop.f32.mrf.mxu1  ;;  %v822_v29 = vmax.f32 %v6164_v16, 0.0 }
  0xe6   : > { %5597 = vpow2.f32 %v917_v30  ;;  %v923_v35 = vmul.f32 1.442695, %v888_v31  ;;  %v858_v36 = vand.u32 2147483647, %v6179_v32  ;;  %v6184_v38 = vadd.f32 %v682_v34, %v6161_v14 }
  0xe7   : > { %v887_v37 = vsub.f32 0.0, %v855_v33  ;;  %v4965_v39 = vpop.f32.mrf.mxu1 }
  0xe8   : > { %5599 = vpow2.f32 %v923_v35  ;;  %v890_v40 = vsub.f32 0.0, %v858_v36  ;;  %v6187_v41 = vadd.f32 %v4965_v39, %v6161_v14  ;;  %v857_v43 = vand.u32 2147483647, %v6184_v38 }
  0xe9   : > { %v921_v42 = vmul.f32 1.442695, %v887_v37  ;;  %v692_v44 = vpop.f32.mrf.mxu1 }
  0xea   : > { %v927_v45 = vmul.f32 1.442695, %v890_v40  ;;  %v860_v46 = vand.u32 2147483647, %v6187_v41  ;;  %v6192_v47 = vadd.f32 %v692_v44, %v6161_v14  ;;  %v889_v48 = vsub.f32 0.0, %v857_v43 }
  0xeb   : > { %5601 = vpow2.f32 %v921_v42  ;;  %v4968_v49 = vpop.f32.mrf.mxu1  ;;  %v821_v44 = vmax.f32 %v6168_v19, 0.0 }
  0xec   : > { %5603 = vpow2.f32 %v927_v45  ;;  %v892_v50 = vsub.f32 0.0, %v860_v46  ;;  %v859_v51 = vand.u32 2147483647, %v6192_v47  ;;  %v925_v52 = vmul.f32 1.442695, %v889_v48 }
  0xed   : > { %v6196_v53 = vadd.f32 %v4968_v49, %v6161_v14  ;;  %v702_v54 = vpop.f32.mrf.mxu1  ;;  %v824_v45 = vmax.f32 %v6172_v23, 0.0 }
  0xee   : > { %v931_v55 = vmul.f32 1.442695, %v892_v50  ;;  %v891_v56 = vsub.f32 0.0, %v859_v51  ;;  %v6199_v57 = vadd.f32 %v702_v54, %v6161_v14  ;;  %5605 = vpow2.f32 %v925_v52 }
  0xef   : > { %v862_v58 = vand.u32 2147483647, %v6196_v53  ;;  %v4971_v59 = vpop.f32.mrf.mxu1  ;;  %v823_v50 = vmax.f32 %v6176_v28, 0.0 }
  0xf0   : > { %5607 = vpow2.f32 %v931_v55  ;;  %v929_v60 = vmul.f32 1.442695, %v891_v56  ;;  %v861_v61 = vand.u32 2147483647, %v6199_v57  ;;  %v6204_v0 = vadd.f32 %v4971_v59, %v6161_v14 }
  0xf1   : > { %v5596_v62 = vpop.eup %5595  ;;  %v894_v63 = vsub.f32 0.0, %v862_v58  ;;  %v712_v1 = vpop.f32.mrf.mxu1 }
  0xf2   : > { %v982_v2 = vadd.f32 1.0, %v5596_v62  ;;  %5609 = vpow2.f32 %v929_v60  ;;  %v893_v3 = vsub.f32 0.0, %v861_v61  ;;  %v6207_v4 = vadd.f32 %v712_v1, %v6161_v14 }
  0xf3   : > { %v5598_v5 = vpop.eup %5597  ;;  %v935_v6 = vmul.f32 1.442695, %v894_v63  ;;  %v864_v7 = vand.u32 2147483647, %v6204_v0  ;;  %v4974_v8 = vpop.f32.mrf.mxu1  ;;  %v826_v63 = vmax.f32 %v6179_v32, 0.0  ;;  %v1950_v32 = vld [vmem:[%s8044_s7 + $0x60] sm:$0xff] }
  0xf4   : > { %5611 = vlog2.f32 %v982_v2  ;;  %v981_v9 = vadd.f32 1.0, %v5598_v5  ;;  %v933_v10 = vmul.f32 1.442695, %v893_v3  ;;  %v863_v17 = vand.u32 2147483647, %v6207_v4 }
  0xf5   : > { %v5600_v11 = vpop.eup %5599  ;;  %5613 = vpow2.f32 %v935_v6  ;;  %v896_v15 = vsub.f32 0.0, %v864_v7  ;;  %v6212_v18 = vadd.f32 %v4974_v8, %v6161_v14  ;;  %v722_v20 = vpop.f32.mrf.mxu1  ;;  %v825_v5 = vmax.f32 %v6184_v38, 0.0 }
  0xf6   : > { %5615 = vlog2.f32 %v981_v9  ;;  %v984_v21 = vadd.f32 1.0, %v5600_v11  ;;  %v6215_v22 = vadd.f32 %v722_v20, %v6161_v14  ;;  %v895_v25 = vsub.f32 0.0, %v863_v17 }
  0xf7   : > { %5617 = vpow2.f32 %v933_v10  ;;  %v939_v24 = vmul.f32 1.442695, %v896_v15  ;;  %v4977_v26 = vpop.f32.mrf.mxu1  ;;  %v866_v30 = vand.u32 2147483647, %v6212_v18  ;;  %v828_v9 = vmax.f32 %v6187_v41, 0.0 }
  0xf8   : > { %v5602_v27 = vpop.eup %5601  ;;  %5619 = vlog2.f32 %v984_v21  ;;  %v865_v31 = vand.u32 2147483647, %v6215_v22  ;;  %v937_v35 = vmul.f32 1.442695, %v895_v25  ;;  %v6221_v36 = vadd.f32 %v4977_v26, %v6161_v14 }
  0xf9   : > { %v5604_v33 = vpop.eup %5603  ;;  %v983_v34 = vadd.f32 1.0, %v5602_v27  ;;  %5621 = vpow2.f32 %v939_v24  ;;  %v732_v37 = vpop.f32.mrf.mxu1  ;;  %v898_v40 = vsub.f32 0.0, %v866_v30 }
  0xfa   : > { %v986_v39 = vadd.f32 1.0, %v5604_v33  ;;  %v897_v42 = vsub.f32 0.0, %v865_v31  ;;  %v6224_v43 = vadd.f32 %v732_v37, %v6161_v14  ;;  %v868_v46 = vand.u32 2147483647, %v6221_v36 }
  0xfb   : > { %5623 = vlog2.f32 %v983_v34  ;;  %v4980_v48 = vpop.f32.mrf.mxu1  ;;  %v5606_v49 = vpop.eup %5605  ;;  %v943_v51 = vmul.f32 1.442695, %v898_v40  ;;  %v827_v40 = vmax.f32 %v6192_v47, 0.0 }
  0xfc   : > { %5625 = vlog2.f32 %v986_v39  ;;  %v941_v52 = vmul.f32 1.442695, %v897_v42  ;;  %v985_v55 = vadd.f32 1.0, %v5606_v49  ;;  %v900_v56 = vsub.f32 0.0, %v868_v46 }
  0xfd   : > { %v5608_v54 = vpop.eup %5607  ;;  %5627 = vpow2.f32 %v937_v35  ;;  %v867_v58 = vand.u32 2147483647, %v6224_v43  ;;  %v742_v59 = vpop.f32.mrf.mxu1  ;;  %v6232_v60 = vadd.f32 %v4980_v48, %v6161_v14 }
  0xfe   : > { %v988_v19 = vadd.f32 1.0, %v5608_v54  ;;  %5629 = vpow2.f32 %v943_v51  ;;  %v6235_v61 = vadd.f32 %v742_v59, %v6161_v14  ;;  %v947_v1 = vmul.f32 1.442695, %v900_v56 }
  0xff   : > { %v5610_v62 = vpop.eup %5609  ;;  %5631 = vlog2.f32 %v985_v55  ;;  %v899_v2 = vsub.f32 0.0, %v867_v58  ;;  %v4983_v3 = vpop.f32.mrf.mxu1  ;;  %v870_v7 = vand.u32 2147483647, %v6232_v60  ;;  %v830_v54 = vmax.f32 %v6196_v53, 0.0 }
 0x100   : > { %5633 = vlog2.f32 %v988_v19  ;;  %v987_v6 = vadd.f32 1.0, %v5610_v62  ;;  %v869_v11 = vand.u32 2147483647, %v6235_v61  ;;  %v6243_v24 = vadd.f32 %v4983_v3, %v6161_v14 }
 0x101   : > { %v5612_v8 = vpop.eup %5611  ;;  %5635 = vpow2.f32 %v941_v52  ;;  %v945_v10 = vmul.f32 1.442695, %v899_v2  ;;  %v752_v15 = vpop.f32.mrf.mxu1  ;;  %v902_v21 = vsub.f32 0.0, %v870_v7 }
 0x102   : > { %v5614_v17 = vpop.eup %5613  ;;  %v1016_v20 = vmul.f32 0.6931472, %v5612_v8  ;;  %5637 = vlog2.f32 %v987_v6  ;;  %v901_v27 = vsub.f32 0.0, %v869_v11  ;;  %v6246_v30 = vadd.f32 %v752_v15, %v6161_v14 }
 0x103   : > { %v5616_v25 = vpop.eup %5615  ;;  %v990_v26 = vadd.f32 1.0, %v5614_v17  ;;  %5639 = vpow2.f32 %v947_v1  ;;  %v4986_v31 = vpop.f32.mrf.mxu1  ;;  %v951_v37 = vmul.f32 1.442695, %v902_v21  ;;  %v832_v11 = vmax.f32 %v6204_v0, 0.0 }
 0x104   : > { %v5618_v33 = vpop.eup %5617  ;;  %v1078_v34 = vadd.f32 %v1016_v20, %v822_v29  ;;  %v1014_v35 = vmul.f32 0.6931472, %v5616_v25  ;;  %5641 = vpow2.f32 %v945_v10  ;;  %v949_v46 = vmul.f32 1.442695, %v901_v27  ;;  %v1951_v27 = vld [vmem:[%s8044_s7 + $0x68] sm:$0xff] }
 0x105   : > { %v5620_v39 = vpop.eup %5619  ;;  %5643 = vlog2.f32 %v990_v26  ;;  %v989_v42 = vadd.f32 1.0, %v5618_v33  ;;  %v762_v48 = vpop.f32.mrf.mxu1  ;;  %v872_v29 = vand.u32 2147483647, %v6243_v24  ;;  %v871_v62 = vand.u32 2147483647, %v6246_v30 }
 0x106   : > { %v5622_v49 = vpop.eup %5621  ;;  %v1077_v51 = vadd.f32 %v1014_v35, %v821_v44  ;;  %v1020_v52 = vmul.f32 0.6931472, %v5620_v39  ;;  %5645 = vpow2.f32 %v951_v37  ;;  %v4142_v55 = vadd.f32 -0.6931472, %v1078_v34 }
 0x107   : > { %5647 = vlog2.f32 %v989_v42  ;;  %v992_v16 = vadd.f32 1.0, %v5622_v49  ;;  %v6253_v56 = vpop.f32.mrf.mxu1  ;;  %v904_v2 = vsub.f32 0.0, %v872_v29  ;;  %v6259_v3 = vadd.f32 %v4986_v31, %v6161_v14 }
 0x108   : > { %v5624_v58 = vpop.eup %5623  ;;  %v4141_v59 = vadd.f32 -0.6931472, %v1077_v51  ;;  %v1080_v19 = vadd.f32 %v1020_v52, %v824_v45  ;;  %5649 = vpow2.f32 %v949_v46  ;;  %v829_v10 = vmax.f32 %v6199_v57, 0.0  ;;  %v1952_v45 = vld [vmem:[%s8044_s7 + $0x70] sm:$0xff] }
 0x109   : > { %v5626_v44 = vpop.eup %5625  ;;  %v1018_v1 = vmul.f32 0.6931472, %v5624_v58  ;;  %5651 = vlog2.f32 %v992_v16  ;;  %v6261_v6 = vpop.f32.mrf.mxu1  ;;  %v903_v23 = vsub.f32 0.0, %v871_v62  ;;  %v955_v21 = vmul.f32 1.442695, %v904_v2 }
 0x10a   : > { %v5628_v7 = vpop.eup %5627  ;;  %v1024_v8 = vmul.f32 0.6931472, %v5626_v44  ;;  %4174 = vmatmul.mubr.msk.f32.vlgmr.msra.gmra.mxu0 %vm1195_vm3, %v4141_v59  ;;  %5026 = vmatprep.mubr.msk.f32.mxu1 %vm1195_vm3, %v4141_v59  ;;  %v6273_v25 = vadd.f32 %v762_v48, %v6161_v14  ;;  %v831_v33 = vmax.f32 %v6207_v4, 0.0  ;;  %v874_v34 = vand.u32 2147483647, %v6259_v3 }
 0x10b   : > { %v5630_v15 = vpop.eup %5629  ;;  %v1079_v17 = vadd.f32 %v1018_v1, %v823_v50  ;;  %v991_v20 = vadd.f32 1.0, %v5628_v7  ;;  %v6275_v26 = vpop.f32.mrf.mxu1  ;;  %5027 = vmatmul.mubr.msk.f32.vlgmr.msra.gmra.mxu1 %vm1195_vm3, %v4142_v55  ;;  %1362 = vmatprep.mubr.f32.mxu0 %v5845_v12  ;;  %v953_v50 = vmul.f32 1.442695, %v903_v23  ;;  %v6285_v37 = vadd.f32 -0.6931472, %v1080_v19 }
 0x10c   : > { %v5632_v31 = vpop.eup %5631  ;;  %v994_v28 = vadd.f32 1.0, %v5630_v15  ;;  %5075 = vmatpush3.msra.mxu1 %v6155_v13  ;;  %v1082_v48 = vadd.f32 %v1024_v8, %v826_v63  ;;  %v906_v51 = vsub.f32 0.0, %v874_v34  ;;  %v873_v58 = vand.u32 2147483647, %v6273_v25 }
 0x10d   : > { %v5634_v35 = vpop.eup %5633  ;;  %v4143_v39 = vadd.f32 -0.6931472, %v1079_v17  ;;  %v1022_v42 = vmul.f32 0.6931472, %v5632_v31  ;;  %5653 = vlog2.f32 %v991_v20  ;;  %5076 = vmatprep.subr.mxu1 %v1952_v45  ;;  %v6289_v52 = vpop.f32.mrf.mxu1  ;;  %v6313_v15 = vadd.f32 %v6253_v56, %v6161_v14  ;;  %v1949_v56 = vld [vmem:[%s8044_s7 + $0x58] sm:$0xff] }
 0x10e   : > { %v5636_v46 = vpop.eup %5635  ;;  %v1028_v49 = vmul.f32 0.6931472, %v5634_v35  ;;  %5655 = vlog2.f32 %v994_v28  ;;  %4175 = vmatmul.mubr.msk.f32.gmra.mxu0 %vm1195_vm3, %v4142_v55  ;;  %5077 = vmatpush3.msra.mxu1 %v1952_v45  ;;  %v959_v38 = vmul.f32 1.442695, %v906_v51  ;;  %v905_v44 = vsub.f32 0.0, %v873_v58 }
 0x10f   : > { %v5638_v13 = vpop.eup %5637  ;;  %v1081_v16 = vadd.f32 %v1022_v42, %v825_v5  ;;  %v993_v29 = vadd.f32 1.0, %v5636_v46  ;;  %5657 = vpow2.f32 %v955_v21  ;;  %5029 = vmatprep.mubr.msk.f32.mxu1 %vm1195_vm3, %v4143_v39  ;;  %1368 = vmatprep.mubr.f32.mxu0 %v5845_v12  ;;  %v6306_v2 = vadd.f32 -0.6931472, %v1082_v48  ;;  %v4995_v7 = vpop.f32.mrf.mxu1 }
 0x110   : > { %v5640_v63 = vpop.eup %5639  ;;  %v1084_v55 = vadd.f32 %v1028_v49, %v828_v9  ;;  %v1026_v59 = vmul.f32 0.6931472, %v5638_v13  ;;  %5659 = vpow2.f32 %v953_v50  ;;  %5030 = vmatmul.mubr.msk.f32.gmra.mxu1 %vm1195_vm3, %v6285_v37  ;;  %5078 = vmatprep.subr.mxu1 %v1951_v27  ;;  %v957_v45 = vmul.f32 1.442695, %v905_v44 }
 0x111   : > { %v5642_v5 = vpop.eup %5641  ;;  %v6304_v19 = vadd.f32 -0.6931472, %v1081_v16  ;;  %5661 = vlog2.f32 %v993_v29  ;;  %v996_v62 = vadd.f32 1.0, %v5640_v63  ;;  %5079 = vmatpush3.msra.mxu1 %v1951_v27  ;;  %v6322_v20 = vadd.f32 %v6261_v6, %v6161_v14 }
 0x112   : > { %v5644_v1 = vpop.eup %5643  ;;  %v1083_v41 = vadd.f32 %v1026_v59, %v827_v40  ;;  %v995_v9 = vadd.f32 1.0, %v5642_v5  ;;  %5663 = vpow2.f32 %v959_v38  ;;  %4176 = vmatmul.mubr.msk.f32.gmra.mxu0 %vm1195_vm3, %v4143_v39  ;;  %5080 = vmatprep.subr.mxu1 %v1950_v32  ;;  %v6329_v27 = vadd.f32 -0.6931472, %v1084_v55  ;;  %v792_v39 = vpop.f32.mrf.mxu1  ;;  %v1947_v5 = vld [vmem:[%s8044_s7 + $0x48] sm:$0xff] }
 0x113   : > { %v5646_v8 = vpop.eup %5645  ;;  %v1032_v23 = vmul.f32 0.6931472, %v5644_v1  ;;  %5665 = vlog2.f32 %v996_v62  ;;  %5032 = vmatprep.mubr.msk.f32.mxu1 %vm1195_vm3, %v6304_v19  ;;  %1374 = vmatprep.mubr.f32.mxu0 %v5845_v12  ;;  %v834_v28 = vmax.f32 %v6212_v18, 0.0  ;;  %v876_v35 = vand.u32 2147483647, %v6313_v15 }
 0x114   : > { %v5648_v47 = vpop.eup %5647  ;;  %v6318_v40 = vadd.f32 -0.6931472, %v1083_v41  ;;  %5667 = vlog2.f32 %v995_v9  ;;  %v998_v17 = vadd.f32 1.0, %v5646_v8  ;;  %5033 = vmatmul.mubr.msk.f32.gmra.mxu1 %vm1195_vm3, %v6306_v2  ;;  %v833_v46 = vmax.f32 %v6215_v22, 0.0 }
 0x115   : > { %v5650_v21 = vpop.eup %5649  ;;  %v1030_v31 = vmul.f32 0.6931472, %v5648_v47  ;;  %5669 = vpow2.f32 %v957_v45  ;;  %5081 = vmatpush3.msra.mxu1 %v1950_v32  ;;  %v1086_v6 = vadd.f32 %v1032_v23, %v830_v54  ;;  %v875_v53 = vand.u32 2147483647, %v6322_v20  ;;  %v1948_v54 = vld [vmem:[%s8044_s7 + $0x50] sm:$0xff]  ;;  %v6364_v32 = vpop.f32.mrf.mxu1 }
 0x116   : > { %v5652_v50 = vpop.eup %5651  ;;  %5671 = vlog2.f32 %v998_v17  ;;  %v997_v34 = vadd.f32 1.0, %v5650_v21  ;;  %4177 = vmatmul.mubr.msk.f32.gmra.mxu0 %vm1195_vm3, %v6285_v37  ;;  %5035 = vmatprep.mubr.msk.f32.mxu1 %vm1195_vm3, %v6318_v40  ;;  %v908_v37 = vsub.f32 0.0, %v876_v35  ;;  %v6349_v48 = vadd.f32 %v6275_v26, %v6161_v14 }
 0x117   : > { %v1085_v18 = vadd.f32 %v1030_v31, %v829_v10  ;;  %v1036_v42 = vmul.f32 0.6931472, %v5652_v50  ;;  %1380 = vmatprep.mubr.f32.mxu0 %v5845_v12  ;;  %5082 = vmatprep.subr.mxu1 %v1949_v56  ;;  %v6353_v57 = vadd.f32 %v6289_v52, %v6161_v14  ;;  %v836_v49 = vmax.f32 %v6221_v36, 0.0 }
 0x118   : > { %5673 = vlog2.f32 %v997_v34  ;;  %5036 = vmatmul.mubr.msk.f32.gmra.mxu1 %vm1195_vm3, %v6329_v27  ;;  %v835_v51 = vmax.f32 %v6224_v43, 0.0  ;;  %v907_v13 = vsub.f32 0.0, %v875_v53  ;;  %v6361_v29 = vadd.f32 -0.6931472, %v1086_v6  ;;  %v1944_v53 = vld [vmem:[%s8044_s7 + $0x30] sm:$0xff]  ;;  %v1943_v43 = vld [vmem:[%s8044_s7 + $0x28] sm:$0xff] }
 0x119   : > { %v6357_v10 = vadd.f32 -0.6931472, %v1085_v18  ;;  %5083 = vmatpush3.msra.mxu1 %v1949_v56  ;;  %v963_v26 = vmul.f32 1.442695, %v908_v37  ;;  %v878_v58 = vand.u32 2147483647, %v6349_v48  ;;  %v1088_v63 = vadd.f32 %v1036_v42, %v832_v11  ;;  %v802_v56 = vpop.f32.mrf.mxu1 }
 0x11a   : > { %v5654_v16 = vpop.eup %5653  ;;  %4178 = vmatmul.mubr.msk.f32.gmra.mxu0 %vm1195_vm3, %v6304_v19  ;;  %5084 = vmatprep.subr.mxu1 %v1948_v54  ;;  %v961_v59 = vmul.f32 1.442695, %v907_v13  ;;  %v6371_v38 = vadd.f32 %v4995_v7, %v6161_v14  ;;  %v877_v0 = vand.u32 2147483647, %v6353_v57  ;;  %v6385_v9 = vadd.f32 %v792_v39, %v6161_v14  ;;  %v1946_v7 = vld [vmem:[%s8044_s7 + $0x40] sm:$0xff] }
 0x11b   : > { %v5656_v52 = vpop.eup %5655  ;;  %v1034_v55 = vmul.f32 0.6931472, %v5654_v16  ;;  %5038 = vmatprep.mubr.msk.f32.mxu1 %vm1195_vm3, %v6357_v10  ;;  %1386 = vmatprep.mubr.f32.mxu0 %v5845_v12  ;;  %5675 = vpow2.f32 %v963_v26  ;;  %v910_v44 = vsub.f32 0.0, %v878_v58  ;;  %v5001_v22 = vpop.f32.mrf.mxu1  ;;  %v6425_v36 = vadd.f32 %v6364_v32, %v6161_v14 }
 0x11c   : > { %v5658_v19 = vpop.eup %5657  ;;  %v1040_v62 = vmul.f32 0.6931472, %v5656_v52  ;;  %5039 = vmatmul.mubr.msk.f32.gmra.mxu1 %vm1195_vm3, %v6361_v29  ;;  %5677 = vpow2.f32 %v961_v59  ;;  %v909_v17 = vsub.f32 0.0, %v877_v0  ;;  %v880_v31 = vand.u32 2147483647, %v6371_v38 }
 0x11d   : > { %v5660_v11 = vpop.eup %5659  ;;  %v1087_v1 = vadd.f32 %v1034_v55, %v831_v33  ;;  %v1000_v41 = vadd.f32 1.0, %v5658_v19  ;;  %5085 = vmatpush3.msra.mxu1 %v1948_v54  ;;  %v967_v47 = vmul.f32 1.442695, %v910_v44  ;;  %v879_v16 = vand.u32 2147483647, %v6385_v9  ;;  %v812_v44 = vpop.f32.mrf.mxu1 }
 0x11e   : > { %v5662_v8 = vpop.eup %5661  ;;  %v1090_v23 = vadd.f32 %v1040_v62, %v834_v28  ;;  %v999_v45 = vadd.f32 1.0, %v5660_v11  ;;  %4179 = vmatmul.mubr.msk.f32.gmra.mxu0 %vm1195_vm3, %v6306_v2  ;;  %5086 = vmatprep.subr.mxu1 %v1947_v5  ;;  %v6396_v28 = vadd.f32 -0.6931472, %v1088_v63  ;;  %v965_v34 = vmul.f32 1.442695, %v909_v17  ;;  %v1945_v2 = vld [vmem:[%s8044_s7 + $0x38] sm:$0xff] }
 0x11f   : > { %v5664_v4 = vpop.eup %5663  ;;  %v6392_v33 = vadd.f32 -0.6931472, %v1087_v1  ;;  %v1038_v21 = vmul.f32 0.6931472, %v5662_v8  ;;  %5679 = vlog2.f32 %v1000_v41  ;;  %1392 = vmatprep.mubr.f32.mxu0 %v5845_v12  ;;  %5087 = vmatpush3.msra.mxu1 %v1947_v5  ;;  %v912_v42 = vsub.f32 0.0, %v880_v31 }
 0x120   : > { %v5666_v50 = vpop.eup %5665  ;;  %5681 = vlog2.f32 %v999_v45  ;;  %v1002_v6 = vadd.f32 1.0, %v5664_v4  ;;  %5088 = vmatprep.subr.mxu1 %v1946_v7  ;;  %v6408_v37 = vadd.f32 -0.6931472, %v1090_v23  ;;  %v911_v5 = vsub.f32 0.0, %v879_v16 }
 0x121   : > { %v5668_v35 = vpop.eup %5667  ;;  %v1089_v39 = vadd.f32 %v1038_v21, %v833_v46  ;;  %v1044_v18 = vmul.f32 0.6931472, %v5666_v50  ;;  %5683 = vpow2.f32 %v967_v47  ;;  %5041 = vmatprep.mubr.msk.f32.mxu1 %vm1195_vm3, %v6392_v33  ;;  %5089 = vmatpush3.msra.mxu1 %v1946_v7  ;;  %v971_v59 = vmul.f32 1.442695, %v912_v42  ;;  %v1941_v21 = vld [vmem:[%s8044_s7 + $0x18] sm:$0xff] }
 0x122   : > { %v5670_v54 = vpop.eup %5669  ;;  %v1042_v13 = vmul.f32 0.6931472, %v5668_v35  ;;  %5685 = vlog2.f32 %v1002_v6  ;;  %5042 = vmatmul.mubr.msk.f32.gmra.mxu1 %vm1195_vm3, %v6396_v28  ;;  %4180 = vmatmul.mubr.msk.f32.gmra.mxu0 %vm1195_vm3, %v6318_v40  ;;  %v838_v40 = vmax.f32 %v6232_v60, 0.0  ;;  %v837_v60 = vmax.f32 %v6235_v61, 0.0 }
 0x123   : > { %v5672_v46 = vpop.eup %5671  ;;  %v6415_v26 = vadd.f32 -0.6931472, %v1089_v39  ;;  %v1092_v58 = vadd.f32 %v1044_v18, %v836_v49  ;;  %v1001_v52 = vadd.f32 1.0, %v5670_v54  ;;  %5687 = vpow2.f32 %v965_v34  ;;  %1398 = vmatprep.mubr.f32.mxu0 %v5845_v12  ;;  %5090 = vmatprep.subr.mxu1 %v1945_v2 }
 0x124   : > { %v1091_v63 = vadd.f32 %v1042_v13, %v835_v51  ;;  %v1048_v55 = vmul.f32 0.6931472, %v5672_v46  ;;  %5091 = vmatpush3.msra.mxu1 %v1945_v2  ;;  %v6428_v49 = vadd.f32 %v802_v56, %v6161_v14  ;;  %v969_v0 = vmul.f32 1.442695, %v911_v5 }
 0x125   : > { %v5674_v19 = vpop.eup %5673  ;;  %5689 = vlog2.f32 %v1001_v52  ;;  %5044 = vmatprep.mubr.msk.f32.mxu1 %vm1195_vm3, %v6415_v26  ;;  %5092 = vmatprep.subr.mxu1 %v1944_v53  ;;  %v6442_v32 = vadd.f32 -0.6931472, %v1092_v58  ;;  %v882_v11 = vand.u32 2147483647, %v6425_v36  ;;  %v6448_v7 = vadd.f32 %v5001_v22, %v6161_v14 }
 0x126   : > { %v6435_v51 = vadd.f32 -0.6931472, %v1091_v63  ;;  %v1046_v62 = vmul.f32 0.6931472, %v5674_v19  ;;  %5691 = vpow2.f32 %v971_v59  ;;  %5045 = vmatmul.mubr.msk.f32.gmra.mxu1 %vm1195_vm3, %v6408_v37  ;;  %4181 = vmatmul.mubr.msk.f32.gmra.mxu0 %vm1195_vm3, %v6329_v27  ;;  %v1094_v1 = vadd.f32 %v1048_v55, %v838_v40  ;;  %v1942_v27 = vld [vmem:[%s8044_s7 + $0x20] sm:$0xff] }
 0x127   : > { %1404 = vmatprep.mubr.f32.mxu0 %v5845_v12  ;;  %5093 = vmatpush3.msra.mxu1 %v1944_v53  ;;  %v881_v61 = vand.u32 2147483647, %v6428_v49  ;;  %5693 = vpow2.f32 %v969_v0  ;;  %v914_v23 = vsub.f32 0.0, %v882_v11  ;;  %v6456_v45 = vadd.f32 %v812_v44, %v6161_v14  ;;  %v1940_v53 = vld [vmem:[%s8044_s7 + $0x10] sm:$0xff] }
 0x128   : > { %v1093_v41 = vadd.f32 %v1046_v62, %v837_v60  ;;  %5047 = vmatprep.mubr.msk.f32.mxu1 %vm1195_vm3, %v6435_v51  ;;  %5094 = vmatprep.subr.mxu1 %v1943_v43  ;;  %v5676_v8 = vpop.eup %5675  ;;  %v884_v14 = vand.u32 2147483647, %v6448_v7  ;;  %v6469_v34 = vadd.f32 -0.6931472, %v1094_v1  ;;  %v840_v39 = vmax.f32 %v6243_v24, 0.0 }
 0x129   : > { %5095 = vmatpush3.msra.mxu1 %v1943_v43  ;;  %v5678_v47 = vpop.eup %5677  ;;  %v1004_v56 = vadd.f32 1.0, %v5676_v8  ;;  %v913_v4 = vsub.f32 0.0, %v881_v61  ;;  %v975_v50 = vmul.f32 1.442695, %v914_v23  ;;  %v883_v35 = vand.u32 2147483647, %v6456_v45 }
 0x12a   : > { %v6458_v17 = vadd.f32 -0.6931472, %v1093_v41  ;;  %5048 = vmatmul.mubr.msk.f32.gmra.mxu1 %vm1195_vm3, %v6442_v32  ;;  %4182 = vmatmul.mubr.msk.f32.gmra.mxu0 %vm1195_vm3, %v6357_v10  ;;  %v1003_v31 = vadd.f32 1.0, %v5678_v47  ;;  %v916_v42 = vsub.f32 0.0, %v884_v14  ;;  %v839_v13 = vmax.f32 %v6246_v30, 0.0  ;;  %v1939_v30 = vld [vmem:[%s8044_s7 + $0x8] sm:$0xff] }
 0x12b   : > { %1410 = vmatprep.mubr.f32.mxu0 %v5845_v12  ;;  %5096 = vmatprep.subr.mxu1 %v1942_v27  ;;  %5695 = vlog2.f32 %v1004_v56  ;;  %v973_v2 = vmul.f32 1.442695, %v913_v4  ;;  %v915_v22 = vsub.f32 0.0, %v883_v35  ;;  %v842_v60 = vmax.f32 %v6259_v3, 0.0 }
 0x12c   : > { %v5680_v6 = vpop.eup %5679  ;;  %5050 = vmatprep.mubr.msk.f32.mxu1 %vm1195_vm3, %v6458_v17  ;;  %5097 = vmatpush3.msra.mxu1 %v1942_v27  ;;  %5697 = vlog2.f32 %v1003_v31  ;;  %v979_v52 = vmul.f32 1.442695, %v916_v42  ;;  %v841_v0 = vmax.f32 %v6273_v25, 0.0  ;;  %v844_v47 = vmax.f32 %v6313_v15, 0.0 }
 0x12d   : > { %v5682_v10 = vpop.eup %5681  ;;  %v1052_v18 = vmul.f32 0.6931472, %v5680_v6  ;;  %5098 = vmatprep.subr.mxu1 %v1941_v21  ;;  %5699 = vpow2.f32 %v975_v50  ;;  %v977_v5 = vmul.f32 1.442695, %v915_v22  ;;  %v843_v4 = vmax.f32 %v6322_v20, 0.0 }
 0x12e   : > { %v5684_v54 = vpop.eup %5683  ;;  %v1050_v16 = vmul.f32 0.6931472, %v5682_v10  ;;  %5051 = vmatmul.mubr.msk.f32.gmra.mxu1 %vm1195_vm3, %v6469_v34  ;;  %4183 = vmatmul.mubr.msk.f32.gmra.mxu0 %vm1195_vm3, %v6361_v29  ;;  %5701 = vpow2.f32 %v973_v2  ;;  %v1938_v29 = vld [vmem:[%s8044_s7] sm:$0xff] }
 0x12f   : > { %v5686_v24 = vpop.eup %5685  ;;  %v1096_v46 = vadd.f32 %v1052_v18, %v840_v39  ;;  %v1006_v58 = vadd.f32 1.0, %v5684_v54  ;;  %1416 = vmatprep.mubr.f32.mxu0 %v5845_v12  ;;  %5099 = vmatpush3.msra.mxu1 %v1941_v21  ;;  %v846_v18 = vmax.f32 %v6349_v48, 0.0  ;;  %v845_v54 = vmax.f32 %v6353_v57, 0.0 }
 0x130   : > { %v5688_v63 = vpop.eup %5687  ;;  %v1095_v55 = vadd.f32 %v1050_v16, %v839_v13  ;;  %v1056_v59 = vmul.f32 0.6931472, %v5686_v24  ;;  %5100 = vmatprep.subr.mxu1 %v1940_v53  ;;  %v1180_v48 = vlaneseq }
 0x131   : > { %5703 = vlog2.f32 %v1006_v58  ;;  %v1005_v19 = vadd.f32 1.0, %v5688_v63  ;;  %5101 = vmatpush3.msra.mxu1 %v1940_v53  ;;  %v6495_v44 = vadd.f32 -0.6931472, %v1096_v46  ;;  %v847_v63 = vmax.f32 %v6385_v9, 0.0 }
 0x132   : > { %v5690_v40 = vpop.eup %5689  ;;  %v6490_v43 = vadd.f32 -0.6931472, %v1095_v55  ;;  %5705 = vpow2.f32 %v979_v52  ;;  %4184 = vmatmul.mubr.msk.f32.gmra.mxu0 %vm1195_vm3, %v6392_v33  ;;  %5102 = vmatprep.subr.mxu1 %v1939_v30  ;;  %v1098_v1 = vadd.f32 %v1056_v59, %v842_v60  ;;  %v6546_v55 = vshrl.u32 %v1180_v48, 7 }
 0x133   : > { %v5692_v62 = vpop.eup %5691  ;;  %v1054_v11 = vmul.f32 0.6931472, %v5690_v40  ;;  %5707 = vlog2.f32 %v1005_v19  ;;  %1422 = vmatprep.mubr.f32.mxu0 %v5845_v12  ;;  %5103 = vmatpush3.msra.mxu1 %v1939_v30  ;;  %v848_v30 = vmax.f32 %v6371_v38, 0.0  ;;  %v6555_v38 = vld [vmem:[%s8045_s8 + $0x2] ss:$8 sm:$0x7] }
 0x134   : > { %v1008_v41 = vadd.f32 1.0, %v5692_v62  ;;  %5709 = vpow2.f32 %v977_v5  ;;  %5053 = vmatprep.mubr.msk.f32.mxu1 %vm1195_vm3, %v6490_v43  ;;  %5104 = vmatprep.subr.mxu1 %v1938_v29  ;;  %v5694_v33 = vpop.eup %5693  ;;  %v6508_v27 = vadd.f32 -0.6931472, %v1098_v1  ;;  %v1190_v19 = vsub.s32 2, %v6546_v55 }
 0x135   : > { %v1097_v3 = vadd.f32 %v1054_v11, %v841_v0  ;;  %5054 = vmatmul.mubr.msk.f32.gmra.mxu1 %vm1195_vm3, %v6495_v44  ;;  %v1007_v61 = vadd.f32 1.0, %v5694_v33  ;;  %v850_v60 = vmax.f32 %v6425_v36, 0.0  ;;  %v1186_v0 = vsub.s32 1, %v6546_v55 }
 0x136   : > { %5711 = vlog2.f32 %v1008_v41  ;;  %4185 = vmatmul.mubr.msk.f32.gmra.mxu0 %vm1195_vm3, %v6396_v28  ;;  %5105 = vmatpush3.msra.mxu1 %v1938_v29  ;;  %v6564_v1 = vrot.slane %v6555_v38, %v1190_v19 }
 0x137   : > { %v6505_v25 = vadd.f32 -0.6931472, %v1097_v3  ;;  %1428 = vmatprep.mubr.f32.mxu0 %v5845_v12  ;;  %5713 = vlog2.f32 %v1007_v61  ;;  %v6570_v3 = vrot.slane %v6555_v38, %v1186_v0  ;;  %v4949_v61 = vpop.f32.mrf.mxu0 }
 0x138   : > { %v5696_v8 = vpop.eup %5695 }
 0x139   : > { %5056 = vmatprep.mubr.msk.f32.mxu1 %vm1195_vm3, %v6505_v25  ;;  %v5698_v23 = vpop.eup %5697  ;;  %v1060_v56 = vmul.f32 0.6931472, %v5696_v8  ;;  %8084 = vst [vmem:[#allocation6_spill] sm:$0xff] %v6570_v3 }
 0x13a   : > { %5057 = vmatmul.mubr.msk.f32.gmra.mxu1 %vm1195_vm3, %v6508_v27  ;;  %4186 = vmatmul.mubr.msk.f32.gmra.mxu0 %vm1195_vm3, %v6415_v26  ;;  %v5700_v28 = vpop.eup %5699  ;;  %v1058_v21 = vmul.f32 0.6931472, %v5698_v23 }
 0x13b   : > { %1434 = vmatprep.mubr.f32.mxu0 %v5845_v12  ;;  %v5702_v31 = vpop.eup %5701  ;;  %v1100_v50 = vadd.f32 %v1060_v56, %v844_v47  ;;  %v1010_v14 = vadd.f32 1.0, %v5700_v28  ;;  %v852_v47 = vmax.f32 %v6448_v7, 0.0  ;;  %v851_v28 = vmax.f32 %v6456_v45, 0.0 }
 0x13c   : > { %v1099_v6 = vadd.f32 %v1058_v21, %v843_v4  ;;  %v1009_v2 = vadd.f32 1.0, %v5702_v31  ;;  %v377_v21 = vld [vmem:[%s8045_s8] ss:$0 sm:$0xff]  ;;  %v455_v31 = vpop.f32.mrf.mxu0 }
 0x13d   : > { %5715 = vlog2.f32 %v1010_v14  ;;  %v6524_v39 = vadd.f32 -0.6931472, %v1100_v50  ;;  %v6583_v14 = vadd.f32 %v455_v31, %v377_v21 }
 0x13e   : > { %v5704_v35 = vpop.eup %5703  ;;  %4187 = vmatmul.mubr.msk.f32.gmra.mxu0 %vm1195_vm3, %v6408_v37  ;;  %v6521_v10 = vadd.f32 -0.6931472, %v1099_v6  ;;  %5717 = vlog2.f32 %v1009_v2 }
 0x13f   : > { %v5706_v15 = vpop.eup %5705  ;;  %v1064_v26 = vmul.f32 0.6931472, %v5704_v35  ;;  %1440 = vmatprep.mubr.f32.mxu0 %v5845_v12  ;;  %8085 = vst [vmem:[#allocation7_spill] sm:$0xff] %v6583_v14 }
 0x140   : > { %v5708_v20 = vpop.eup %5707  ;;  %v1012_v42 = vadd.f32 1.0, %v5706_v15  ;;  %5059 = vmatprep.mubr.msk.f32.mxu1 %vm1195_vm3, %v6521_v10 }
 0x141   : > { %v5710_v53 = vpop.eup %5709  ;;  %v1062_v13 = vmul.f32 0.6931472, %v5708_v20  ;;  %v1102_v37 = vadd.f32 %v1064_v26, %v846_v18  ;;  %5060 = vmatmul.mubr.msk.f32.gmra.mxu1 %vm1195_vm3, %v6524_v39 }
 0x142   : > { %5719 = vlog2.f32 %v1012_v42  ;;  %v1011_v16 = vadd.f32 1.0, %v5710_v53  ;;  %4188 = vmatmul.mubr.msk.f32.gmra.mxu0 %vm1195_vm3, %v6435_v51 }
 0x143   : > { %v5712_v22 = vpop.eup %5711  ;;  %v1101_v24 = vadd.f32 %v1062_v13, %v845_v54  ;;  %1446 = vmatprep.mubr.f32.mxu0 %v5845_v12  ;;  %v6537_v52 = vadd.f32 -0.6931472, %v1102_v37 }
 0x144   : > { %v1068_v46 = vmul.f32 0.6931472, %v5712_v22  ;;  %5721 = vlog2.f32 %v1011_v16  ;;  %v5714_v58 = vpop.eup %5713 }
 0x145   : > { %v6535_v57 = vadd.f32 -0.6931472, %v1101_v24  ;;  %v1066_v51 = vmul.f32 0.6931472, %v5714_v58 }
 0x146   : > { %4189 = vmatmul.mubr.msk.f32.gmra.mxu0 %vm1195_vm3, %v6442_v32  ;;  %v1104_v59 = vadd.f32 %v1068_v46, %v848_v30 }
 0x147   : > { %5062 = vmatprep.mubr.msk.f32.mxu1 %vm1195_vm3, %v6535_v57  ;;  %1452 = vmatprep.mubr.f32.mxu0 %v5845_v12  ;;  %v1103_v5 = vadd.f32 %v1066_v51, %v847_v63 }
 0x148   : > { %5063 = vmatmul.mubr.msk.f32.gmra.mxu1 %vm1195_vm3, %v6537_v52  ;;  %v4168_v40 = vadd.f32 -0.6931472, %v1104_v59 }
 0x149   : > { %v4167_v32 = vadd.f32 -0.6931472, %v1103_v5 }
 0x14a   : > { %4190 = vmatmul.mubr.msk.f32.gmra.mxu0 %vm1195_vm3, %v6458_v17  ;;  %v5716_v9 = vpop.eup %5715  ;;  %v849_v17 = vmax.f32 %v6428_v49, 0.0 }
 0x14b   : > { %1458 = vmatprep.mubr.f32.mxu0 %v5845_v12  ;;  %v5718_v29 = vpop.eup %5717  ;;  %v1072_v62 = vmul.f32 0.6931472, %v5716_v9  ;;  %5065 = vmatprep.mubr.msk.f32.mxu1 %vm1195_vm3, %v4167_v32 }
 0x14c   : > { %v1070_v11 = vmul.f32 0.6931472, %v5718_v29  ;;  %5066 = vmatmul.mubr.msk.f32.gmra.mxu1 %vm1195_vm3, %v4168_v40 }
 0x14d   : > { %v1106_v41 = vadd.f32 %v1072_v62, %v850_v60 }
 0x14e   : > { %4191 = vmatmul.mubr.msk.f32.gmra.mxu0 %vm1195_vm3, %v6469_v34  ;;  %v1105_v33 = vadd.f32 %v1070_v11, %v849_v17 }
 0x14f   : > { %v5720_v36 = vpop.eup %5719  ;;  %1464 = vmatprep.mubr.f32.mxu0 %v5845_v12  ;;  %v4170_v56 = vadd.f32 -0.6931472, %v1106_v41 }
 0x150   : > { %v1076_v49 = vmul.f32 0.6931472, %v5720_v36  ;;  %v4169_v23 = vadd.f32 -0.6931472, %v1105_v33 }
 0x151   : > { %v5722_v8 = vpop.eup %5721 }
 0x152   : > { %v1074_v4 = vmul.f32 0.6931472, %v5722_v8  ;;  %4192 = vmatmul.mubr.msk.f32.gmra.mxu0 %vm1195_vm3, %v6490_v43  ;;  %v1108_v34 = vadd.f32 %v1076_v49, %v852_v47  ;;  %5068 = vmatprep.mubr.msk.f32.mxu1 %vm1195_vm3, %v4169_v23  ;;  %v6593_v43 = vadd.f32 %v4949_v61, %v377_v21 }
 0x153   : > { %1470 = vmatprep.mubr.f32.mxu0 %v5845_v12  ;;  %5069 = vmatmul.mubr.msk.f32.gmra.mxu1 %vm1195_vm3, %v4170_v56 }
 0x154   : > { %v1107_v50 = vadd.f32 %v1074_v4, %v851_v28  ;;  %v4172_v45 = vadd.f32 -0.6931472, %v1108_v34  ;;  %8086 = vst [vmem:[#allocation8_spill] sm:$0xff] %v6593_v43 }
 0x156   : > { %v4171_v7 = vadd.f32 -0.6931472, %v1107_v50  ;;  %4193 = vmatmul.mubr.msk.f32.gmra.mxu0 %vm1195_vm3, %v6495_v44  ;;  %v1874_v44 = vld [vmem:[%s8040_s3] sm:$0xff] }
 0x157   : > { %1476 = vmatprep.mubr.f32.mxu0 %v5845_v12 }
 0x158   : > { %5071 = vmatprep.mubr.msk.f32.mxu1 %vm1195_vm3, %v4171_v7 }
 0x159   : > { %5072 = vmatmul.mubr.msk.f32.gmra.mxu1 %vm1195_vm3, %v4172_v45 }
 0x15a   : > { %5106 = vmatprep.mubr.f32.mxu1 %v6583_v14  ;;  %4194 = vmatmul.mubr.msk.f32.gmra.mxu0 %vm1195_vm3, %v6505_v25 }
 0x15b   : > { %1482 = vmatprep.mubr.f32.mxu0 %v5845_v12 }
 0x15d   : > { %5107 = vmatmul.mubr.f32.vlgmr.msra.gmra.mxu1 %v6593_v43 }
 0x15e   : > { %4195 = vmatmul.mubr.msk.f32.gmra.mxu0 %vm1195_vm3, %v6508_v27  ;;  %5113 = vmatprep.mubr.msk.f32.mxu1 %vm499_vm1, %v1874_v44 }
 0x15f   : > { %1488 = vmatprep.mubr.f32.mxu0 %v5845_v12 }
 0x162   : > { %4196 = vmatmul.mubr.msk.f32.gmra.mxu0 %vm1195_vm3, %v6521_v10 }
 0x163   : > { %1494 = vmatprep.mubr.f32.mxu0 %v5845_v12 }
 0x166   : > { %4197 = vmatmul.mubr.msk.f32.gmra.mxu0 %vm1195_vm3, %v6524_v39 }
 0x167   : > { %1500 = vmatprep.mubr.f32.mxu0 %v5845_v12 }
 0x16a   : > { %4198 = vmatmul.mubr.msk.f32.gmra.mxu0 %vm1195_vm3, %v6535_v57 }
 0x16b   : > { %1506 = vmatprep.mubr.f32.mxu0 %v5845_v12 }
 0x16e   : > { %4199 = vmatmul.mubr.msk.f32.gmra.mxu0 %vm1195_vm3, %v6537_v52 }
 0x16f   : > { %1512 = vmatprep.mubr.f32.mxu0 %v5845_v12 }
 0x172   : > { %4200 = vmatmul.mubr.msk.f32.gmra.mxu0 %vm1195_vm3, %v4167_v32 }
 0x173   : > { %1518 = vmatprep.mubr.f32.mxu0 %v5845_v12 }
 0x176   : > { %4201 = vmatmul.mubr.msk.f32.gmra.mxu0 %vm1195_vm3, %v4168_v40 }
 0x177   : > { %1524 = vmatprep.mubr.f32.mxu0 %v5845_v12 }
 0x17a   : > { %4202 = vmatmul.mubr.msk.f32.gmra.mxu0 %vm1195_vm3, %v4169_v23 }
 0x17b   : > { %1530 = vmatprep.mubr.f32.mxu0 %v5845_v12 }
 0x17e   : > { %4203 = vmatmul.mubr.msk.f32.gmra.mxu0 %vm1195_vm3, %v4170_v56 }
 0x17f   : > { %1536 = vmatprep.mubr.f32.mxu0 %v5845_v12 }
 0x182   : > { %4204 = vmatmul.mubr.msk.f32.gmra.mxu0 %vm1195_vm3, %v4171_v7 }
 0x183   : > { %1542 = vmatprep.mubr.f32.mxu0 %v5845_v12 }
 0x186   : > { %4205 = vmatmul.mubr.msk.f32.gmra.mxu0 %vm1195_vm3, %v4172_v45 }
 0x1ca   : > { %v6627_v25 = vpop.f32.mrf.mxu0 }
 0x1cb   : > { %v5028_v27 = vpop.f32.mrf.mxu1 }
 0x1cc   : > { %v6630_v6 = vadd.f32 %v5028_v27, %v6564_v1  ;;  %v1360_v2 = vpop.f32.mrf.mxu0 }
 0x1cd   : > { %v6633_v35 = vadd.f32 %v1360_v2, %v6570_v3  ;;  %v1615_v15 = vpop.f32.mrf.mxu1 }
 0x1ce   : > { %8087 = vst [vmem:[#allocation9_spill] sm:$0xff] %v6630_v6  ;;  %v6636_v12 = vadd.f32 %v1615_v15, %v6564_v1  ;;  %v6638_v10 = vpop.f32.mrf.mxu0 }
 0x1cf   : > { %8088 = vst [vmem:[#allocation10_spill] sm:$0xff] %v6633_v35 }
 0x1d0   : > { %8089 = vst [vmem:[#allocation11_spill] sm:$0xff] %v6636_v12  ;;  %v5031_v26 = vpop.f32.mrf.mxu1  ;;  %v1366_v20 = vpop.f32.mrf.mxu0 }
 0x1d1   : > { %v6641_v39 = vadd.f32 %v5031_v26, %v6564_v1  ;;  %v6644_v18 = vadd.f32 %v1366_v20, %v6570_v3 }
 0x1d2   : > { %v1625_v42 = vpop.f32.mrf.mxu1  ;;  %v6646_v53 = vpop.f32.mrf.mxu0 }
 0x1d3   : > { %8090 = vst [vmem:[#allocation12_spill] sm:$0xff] %v6641_v39  ;;  %8091 = vst [vmem:[#allocation13_spill] sm:$0xff] %v6644_v18  ;;  %v6649_v54 = vadd.f32 %v1625_v42, %v6564_v1  ;;  %v6914_v18 = vld [vmem:[%s8040_s3 + $0x50] sm:$0xff] }
 0x1d4   : > { %v5034_v13 = vpop.f32.mrf.mxu1  ;;  %v1372_v37 = vpop.f32.mrf.mxu0  ;;  %8153 = vst [vmem:[#allocation75_spill] sm:$0xff] %v6914_v18 }
 0x1d5   : > { %8092 = vst [vmem:[#allocation14_spill] sm:$0xff] %v6649_v54  ;;  %v6652_v16 = vadd.f32 %v5034_v13, %v6564_v1  ;;  %v6655_v22 = vadd.f32 %v1372_v37, %v6570_v3 }
 0x1d6   : > { %v1635_v24 = vpop.f32.mrf.mxu1  ;;  %v6657_v48 = vpop.f32.mrf.mxu0 }
 0x1d7   : > { %8093 = vst [vmem:[#allocation15_spill] sm:$0xff] %v6652_v16  ;;  %8094 = vst [vmem:[#allocation16_spill] sm:$0xff] %v6655_v22  ;;  %v6660_v46 = vadd.f32 %v1635_v24, %v6564_v1 }
 0x1d8   : > { %v5037_v57 = vpop.f32.mrf.mxu1  ;;  %v1378_v58 = vpop.f32.mrf.mxu0 }
 0x1d9   : > { %8095 = vst [vmem:[#allocation17_spill] sm:$0xff] %v6660_v46  ;;  %v6663_v52 = vadd.f32 %v5037_v57, %v6564_v1  ;;  %v6666_v30 = vadd.f32 %v1378_v58, %v6570_v3 }
 0x1da   : > { %v1645_v63 = vpop.f32.mrf.mxu1  ;;  %v6668_v51 = vpop.f32.mrf.mxu0 }
 0x1db   : > { %8096 = vst [vmem:[#allocation18_spill] sm:$0xff] %v6663_v52  ;;  %8097 = vst [vmem:[#allocation19_spill] sm:$0xff] %v6666_v30  ;;  %v6671_v59 = vadd.f32 %v1645_v63, %v6564_v1  ;;  %v6933_v30 = vld [vmem:[%s8040_s3 + $0x60] sm:$0xff] }
 0x1dc   : > { %v5040_v5 = vpop.f32.mrf.mxu1  ;;  %v1384_v9 = vpop.f32.mrf.mxu0  ;;  %8156 = vst [vmem:[#allocation78_spill] sm:$0xff] %v6933_v30 }
 0x1dd   : > { %8098 = vst [vmem:[#allocation20_spill] sm:$0xff] %v6671_v59  ;;  %v6674_v32 = vadd.f32 %v5040_v5, %v6564_v1  ;;  %v6677_v19 = vadd.f32 %v1384_v9, %v6570_v3 }
 0x1de   : > { %v1655_v29 = vpop.f32.mrf.mxu1  ;;  %v6679_v40 = vpop.f32.mrf.mxu0 }
 0x1df   : > { %8099 = vst [vmem:[#allocation21_spill] sm:$0xff] %v6674_v32  ;;  %8100 = vst [vmem:[#allocation22_spill] sm:$0xff] %v6677_v19  ;;  %v6682_v60 = vadd.f32 %v1655_v29, %v6564_v1 }
 0x1e0   : > { %v1390_v62 = vpop.f32.mrf.mxu0 }
 0x1e1   : > { %8101 = vst [vmem:[#allocation23_spill] sm:$0xff] %v6682_v60  ;;  %v6685_v0 = vadd.f32 %v1390_v62, %v6570_v3 }
 0x1e2   : > { %v5043_v17 = vpop.f32.mrf.mxu1  ;;  %v6687_v11 = vpop.f32.mrf.mxu0 }
 0x1e3   : > { %8102 = vst [vmem:[#allocation24_spill] sm:$0xff] %v6685_v0  ;;  %v6690_v41 = vadd.f32 %v5043_v17, %v6564_v1  ;;  %v6952_v0 = vld [vmem:[%s8040_s3 + $0x70] sm:$0xff] }
 0x1e4   : > { %v1665_v36 = vpop.f32.mrf.mxu1  ;;  %v1396_v33 = vpop.f32.mrf.mxu0  ;;  %8159 = vst [vmem:[#allocation81_spill] sm:$0xff] %v6952_v0 }
 0x1e5   : > { %8103 = vst [vmem:[#allocation25_spill] sm:$0xff] %v6690_v41  ;;  %v6693_v61 = vadd.f32 %v1665_v36, %v6564_v1  ;;  %v6696_v49 = vadd.f32 %v1396_v33, %v6570_v3 }
 0x1e6   : > { %v5046_v8 = vpop.f32.mrf.mxu1  ;;  %v6698_v23 = vpop.f32.mrf.mxu0 }
 0x1e7   : > { %8104 = vst [vmem:[#allocation26_spill] sm:$0xff] %v6693_v61  ;;  %8105 = vst [vmem:[#allocation27_spill] sm:$0xff] %v6696_v49  ;;  %v6701_v47 = vadd.f32 %v5046_v8, %v6564_v1 }
 0x1e8   : > { %v1675_v56 = vpop.f32.mrf.mxu1  ;;  %v1402_v28 = vpop.f32.mrf.mxu0 }
 0x1e9   : > { %8106 = vst [vmem:[#allocation28_spill] sm:$0xff] %v6701_v47  ;;  %v6704_v4 = vadd.f32 %v1675_v56, %v6564_v1  ;;  %v6707_v34 = vadd.f32 %v1402_v28, %v6570_v3  ;;  %v6876_v47 = vld [vmem:[%s8040_s3 + $0x30] sm:$0xff] }
 0x1ea   : > { %v5049_v21 = vpop.f32.mrf.mxu1  ;;  %v6709_v31 = vpop.f32.mrf.mxu0  ;;  %8147 = vst [vmem:[#allocation69_spill] sm:$0xff] %v6876_v47 }
 0x1eb   : > { %8107 = vst [vmem:[#allocation29_spill] sm:$0xff] %v6704_v4  ;;  %8108 = vst [vmem:[#allocation30_spill] sm:$0xff] %v6707_v34  ;;  %v6712_v50 = vadd.f32 %v5049_v21, %v6564_v1  ;;  %v6971_v34 = vld [vmem:[%s8040_s3 + $0x80] sm:$0xff] }
 0x1ec   : > { %v1685_v7 = vpop.f32.mrf.mxu1  ;;  %v1408_v45 = vpop.f32.mrf.mxu0  ;;  %8162 = vst [vmem:[#allocation84_spill] sm:$0xff] %v6971_v34 }
 0x1ed   : > { %8109 = vst [vmem:[#allocation31_spill] sm:$0xff] %v6712_v50  ;;  %v6715_v44 = vadd.f32 %v1685_v7, %v6564_v1  ;;  %v6718_v27 = vadd.f32 %v1408_v45, %v6570_v3 }
 0x1ee   : > { %v5052_v2 = vpop.f32.mrf.mxu1  ;;  %v6720_v15 = vpop.f32.mrf.mxu0 }
 0x1ef   : > { %8110 = vst [vmem:[#allocation32_spill] sm:$0xff] %v6715_v44  ;;  %8111 = vst [vmem:[#allocation33_spill] sm:$0xff] %v6718_v27  ;;  %v6723_v26 = vadd.f32 %v5052_v2, %v6564_v1  ;;  %v6890_v44 = vld [vmem:[%s8040_s3 + $0x38] sm:$0xff] }
 0x1f0   : > { %v1695_v20 = vpop.f32.mrf.mxu1  ;;  %v1414_v42 = vpop.f32.mrf.mxu0  ;;  %8149 = vst [vmem:[#allocation71_spill] sm:$0xff] %v6890_v44 }
 0x1f1   : > { %8112 = vst [vmem:[#allocation34_spill] sm:$0xff] %v6723_v26  ;;  %v6726_v13 = vadd.f32 %v1695_v20, %v6564_v1  ;;  %v6729_v37 = vadd.f32 %v1414_v42, %v6570_v3 }
 0x1f2   : > { %v6731_v24 = vpop.f32.mrf.mxu0 }
 0x1f3   : > { %8113 = vst [vmem:[#allocation35_spill] sm:$0xff] %v6726_v13  ;;  %8114 = vst [vmem:[#allocation36_spill] sm:$0xff] %v6729_v37  ;;  %v6990_v37 = vld [vmem:[%s8040_s3 + $0x90] sm:$0xff] }
 0x1f4   : > { %v1420_v57 = vpop.f32.mrf.mxu0  ;;  %8165 = vst [vmem:[#allocation87_spill] sm:$0xff] %v6990_v37 }
 0x1f5   : > { %v5055_v58 = vpop.f32.mrf.mxu1  ;;  %v6734_v63 = vadd.f32 %v1420_v57, %v6570_v3 }
 0x1f6   : > { %v6737_v5 = vadd.f32 %v5055_v58, %v6564_v1  ;;  %v6739_v9 = vpop.f32.mrf.mxu0 }
 0x1f7   : > { %8115 = vst [vmem:[#allocation37_spill] sm:$0xff] %v6734_v63  ;;  %v1705_v29 = vpop.f32.mrf.mxu1 }
 0x1f8   : > { %8116 = vst [vmem:[#allocation38_spill] sm:$0xff] %v6737_v5  ;;  %v6742_v62 = vadd.f32 %v1705_v29, %v6564_v1  ;;  %v1426_v17 = vpop.f32.mrf.mxu0 }
 0x1f9   : > { %v6745_v36 = vadd.f32 %v1426_v17, %v6570_v3 }
 0x1fa   : > { %8117 = vst [vmem:[#allocation39_spill] sm:$0xff] %v6742_v62  ;;  %v5058_v33 = vpop.f32.mrf.mxu1  ;;  %v6747_v8 = vpop.f32.mrf.mxu0 }
 0x1fb   : > { %8118 = vst [vmem:[#allocation40_spill] sm:$0xff] %v6745_v36  ;;  %v6750_v56 = vadd.f32 %v5058_v33, %v6564_v1  ;;  %v7009_v36 = vld [vmem:[%s8040_s3 + $0xa0] sm:$0xff] }
 0x1fc   : > { %v1715_v28 = vpop.f32.mrf.mxu1  ;;  %v1432_v21 = vpop.f32.mrf.mxu0  ;;  %8168 = vst [vmem:[#allocation90_spill] sm:$0xff] %v7009_v36 }
 0x1fd   : > { %8119 = vst [vmem:[#allocation41_spill] sm:$0xff] %v6750_v56  ;;  %v6753_v7 = vadd.f32 %v1715_v28, %v6564_v1  ;;  %v6756_v45 = vadd.f32 %v1432_v21, %v6570_v3 }
 0x1fe   : > { %v6758_v2 = vpop.f32.mrf.mxu0 }
 0x1ff   : > { %8120 = vst [vmem:[#allocation42_spill] sm:$0xff] %v6753_v7  ;;  %8121 = vst [vmem:[#allocation43_spill] sm:$0xff] %v6756_v45  ;;  %v7021_v45 = vld [vmem:[%s8040_s3 + $0xa8] sm:$0xff] }
 0x200   : > { %v1438_v20 = vpop.f32.mrf.mxu0  ;;  %8170 = vst [vmem:[#allocation92_spill] sm:$0xff] %v7021_v45 }
 0x201   : > { %v6761_v42 = vadd.f32 %v1438_v20, %v6570_v3  ;;  %v5061_v57 = vpop.f32.mrf.mxu1 }
 0x202   : > { %v6763_v58 = vpop.f32.mrf.mxu0  ;;  %v6766_v29 = vadd.f32 %v5061_v57, %v6564_v1 }
 0x203   : > { %8122 = vst [vmem:[#allocation44_spill] sm:$0xff] %v6761_v42  ;;  %v1725_v17 = vpop.f32.mrf.mxu1  ;;  %v7040_v42 = vld [vmem:[%s8040_s3 + $0xc0] sm:$0xff] }
 0x204   : > { %8123 = vst [vmem:[#allocation45_spill] sm:$0xff] %v6766_v29  ;;  %v1444_v33 = vpop.f32.mrf.mxu0  ;;  %v6769_v28 = vadd.f32 %v1725_v17, %v6564_v1  ;;  %8173 = vst [vmem:[#allocation95_spill] sm:$0xff] %v7040_v42 }
 0x205   : > { %v6772_v21 = vadd.f32 %v1444_v33, %v6570_v3 }
 0x206   : > { %8124 = vst [vmem:[#allocation46_spill] sm:$0xff] %v6769_v28  ;;  %v6774_v12 = vpop.f32.mrf.mxu0 }
 0x207   : > { %8125 = vst [vmem:[#allocation47_spill] sm:$0xff] %v6772_v21  ;;  %v7063_v21 = vld [vmem:[%s8040_s3 + $0xd8] sm:$0xff] }
 0x208   : > { %v5064_v13 = vpop.f32.mrf.mxu1  ;;  %v1450_v6 = vpop.f32.mrf.mxu0  ;;  %8176 = vst [vmem:[#allocation98_spill] sm:$0xff] %v7063_v21 }
 0x209   : > { %v6777_v20 = vadd.f32 %v5064_v13, %v6564_v1  ;;  %v6780_v26 = vadd.f32 %v1450_v6, %v6570_v3 }
 0x20a   : > { %v1735_v57 = vpop.f32.mrf.mxu1  ;;  %v6782_v54 = vpop.f32.mrf.mxu0 }
 0x20b   : > { %8126 = vst [vmem:[#allocation48_spill] sm:$0xff] %v6777_v20  ;;  %8127 = vst [vmem:[#allocation49_spill] sm:$0xff] %v6780_v26  ;;  %v6785_v62 = vadd.f32 %v1735_v57, %v6564_v1  ;;  %v7068_v26 = vld [vmem:[%s8040_s3 + $0xe0] sm:$0xff] }
 0x20c   : > { %v1456_v17 = vpop.f32.mrf.mxu0  ;;  %v5067_v39 = vpop.f32.mrf.mxu1  ;;  %8177 = vst [vmem:[#allocation99_spill] sm:$0xff] %v7068_v26 }
 0x20d   : > { %8128 = vst [vmem:[#allocation50_spill] sm:$0xff] %v6785_v62  ;;  %v6788_v33 = vadd.f32 %v1456_v17, %v6570_v3  ;;  %v6793_v46 = vadd.f32 %v5067_v39, %v6564_v1 }
 0x20e   : > { %v6790_v5 = vpop.f32.mrf.mxu0  ;;  %v1745_v13 = vpop.f32.mrf.mxu1 }
 0x20f   : > { %8129 = vst [vmem:[#allocation51_spill] sm:$0xff] %v6788_v33  ;;  %8130 = vst [vmem:[#allocation52_spill] sm:$0xff] %v6793_v46  ;;  %v6796_v6 = vadd.f32 %v1745_v13, %v6564_v1  ;;  %v6909_v33 = vld [vmem:[%s8040_s3 + $0x48] sm:$0xff] }
 0x210   : > { %v1462_v7 = vpop.f32.mrf.mxu0  ;;  %8152 = vst [vmem:[#allocation74_spill] sm:$0xff] %v6909_v33 }
 0x211   : > { %8131 = vst [vmem:[#allocation53_spill] sm:$0xff] %v6796_v6  ;;  %v6799_v16 = vadd.f32 %v1462_v7, %v6570_v3 }
 0x212   : > { %v6801_v57 = vpop.f32.mrf.mxu0 }
 0x213   : > { %8132 = vst [vmem:[#allocation54_spill] sm:$0xff] %v6799_v16  ;;  %v5070_v56 = vpop.f32.mrf.mxu1 }
 0x214   : > { %v1468_v59 = vpop.f32.mrf.mxu0  ;;  %v6804_v17 = vadd.f32 %v5070_v56, %v6564_v1 }
 0x215   : > { %v6807_v28 = vadd.f32 %v1468_v59, %v6570_v3  ;;  %v1755_v39 = vpop.f32.mrf.mxu1 }
 0x216   : > { %8133 = vst [vmem:[#allocation55_spill] sm:$0xff] %v6804_v17  ;;  %v6809_v52 = vpop.f32.mrf.mxu0  ;;  %v6812_v29 = vadd.f32 %v1755_v39, %v6564_v1 }
 0x217   : > { %8134 = vst [vmem:[#allocation56_spill] sm:$0xff] %v6807_v28  ;;  %v6928_v28 = vld [vmem:[%s8040_s3 + $0x58] sm:$0xff] }
 0x218   : > { %8135 = vst [vmem:[#allocation57_spill] sm:$0xff] %v6812_v29  ;;  %v1474_v13 = vpop.f32.mrf.mxu0  ;;  %v6871_v29 = vld [vmem:[%s8040_s3 + $0x28] sm:$0xff]  ;;  %8155 = vst [vmem:[#allocation77_spill] sm:$0xff] %v6928_v28 }
 0x219   : > { %v5073_v60 = vpop.f32.mrf.mxu1  ;;  %v6815_v7 = vadd.f32 %v1474_v13, %v6570_v3  ;;  %8146 = vst [vmem:[#allocation68_spill] sm:$0xff] %v6871_v29 }
 0x21a   : > { %v6818_v62 = vadd.f32 %v5073_v60, %v6564_v1  ;;  %v6820_v32 = vpop.f32.mrf.mxu0  ;;  %v6833_v60 = vld [vmem:[%s8040_s3 + $0x8] sm:$0xff] }
 0x21b   : > { %8136 = vst [vmem:[#allocation58_spill] sm:$0xff] %v6815_v7  ;;  %v1765_v56 = vpop.f32.mrf.mxu1  ;;  %8140 = vst [vmem:[#allocation62_spill] sm:$0xff] %v6833_v60 }
 0x21c   : > { %8137 = vst [vmem:[#allocation59_spill] sm:$0xff] %v6818_v62  ;;  %v6823_v59 = vadd.f32 %v1765_v56, %v6564_v1  ;;  %v1480_v20 = vpop.f32.mrf.mxu0  ;;  %v6838_v1 = vld [vmem:[%s8040_s3 + $0x10] sm:$0xff]  ;;  %v6852_v56 = vld [vmem:[%s8040_s3 + $0x18] sm:$0xff]  ;;  %v6895_v62 = vld [vmem:[%s8040_s3 + $0x40] sm:$0xff] }
 0x21d   : > { %v5108_v61 = vpop.f32.mrf.mxu1  ;;  %v6826_v6 = vadd.f32 %v1480_v20, %v6570_v3  ;;  %8141 = vst [vmem:[#allocation63_spill] sm:$0xff] %v6838_v1  ;;  %8143 = vst [vmem:[#allocation65_spill] sm:$0xff] %v6852_v56 }
 0x21e   : > { %8138 = vst [vmem:[#allocation60_spill] sm:$0xff] %v6823_v59  ;;  %5109 = vmatprep.subr.mxu1 %v5108_v61  ;;  %v6828_v39 = vpop.f32.mrf.mxu0  ;;  %8150 = vst [vmem:[#allocation72_spill] sm:$0xff] %v6895_v62 }
 0x21f   : > { %8139 = vst [vmem:[#allocation61_spill] sm:$0xff] %v6826_v6  ;;  %v2020_v41 = vpop.f32.mrf.mxu1  ;;  %5110 = vmatpush3.msra.mxu1 %v5108_v61  ;;  %v6947_v6 = vld [vmem:[%s8040_s3 + $0x68] sm:$0xff] }
 0x220   : > { %5111 = vmatprep.subr.mxu1 %v2020_v41  ;;  %v1486_v13 = vpop.f32.mrf.mxu0  ;;  %8158 = vst [vmem:[#allocation80_spill] sm:$0xff] %v6947_v6 }
 0x221   : > { %5112 = vmatpush3.msra.mxu1 %v2020_v41  ;;  %v6841_v20 = vadd.f32 %v1486_v13, %v6570_v3  ;;  %v6857_v41 = vld [vmem:[%s8040_s3 + $0x20] sm:$0xff] }
 0x222   : > { %5114 = vmatmul.mubr.msk.f32.vlgmr.msra.gmra.mxu1 %vm499_vm1, %v6833_v60  ;;  %v6845_v61 = vpop.f32.mrf.mxu0  ;;  %8144 = vst [vmem:[#allocation66_spill] sm:$0xff] %v6857_v41 }
 0x223   : > { %8142 = vst [vmem:[#allocation64_spill] sm:$0xff] %v6841_v20  ;;  %5116 = vmatprep.mubr.msk.f32.mxu1 %vm499_vm1, %v6838_v1 }
 0x224   : > { %v1492_v13 = vpop.f32.mrf.mxu0 }
 0x225   : > { %v6860_v46 = vadd.f32 %v1492_v13, %v6570_v3 }
 0x226   : > { %5117 = vmatmul.mubr.msk.f32.gmra.mxu1 %vm499_vm1, %v6852_v56  ;;  %v6864_v4 = vpop.f32.mrf.mxu0 }
 0x227   : > { %8145 = vst [vmem:[#allocation67_spill] sm:$0xff] %v6860_v46  ;;  %5119 = vmatprep.mubr.msk.f32.mxu1 %vm499_vm1, %v6857_v41  ;;  %v6966_v46 = vld [vmem:[%s8040_s3 + $0x78] sm:$0xff] }
 0x228   : > { %v1498_v13 = vpop.f32.mrf.mxu0  ;;  %8161 = vst [vmem:[#allocation83_spill] sm:$0xff] %v6966_v46 }
 0x229   : > { %v6879_v17 = vadd.f32 %v1498_v13, %v6570_v3 }
 0x22a   : > { %5120 = vmatmul.mubr.msk.f32.gmra.mxu1 %vm499_vm1, %v6871_v29  ;;  %v6883_v59 = vpop.f32.mrf.mxu0 }
 0x22b   : > { %8148 = vst [vmem:[#allocation70_spill] sm:$0xff] %v6879_v17  ;;  %5122 = vmatprep.mubr.msk.f32.mxu1 %vm499_vm1, %v6876_v47 }
 0x22c   : > { %v1504_v13 = vpop.f32.mrf.mxu0 }
 0x22d   : > { %v6898_v50 = vadd.f32 %v1504_v13, %v6570_v3 }
 0x22e   : > { %5123 = vmatmul.mubr.msk.f32.gmra.mxu1 %vm499_vm1, %v6890_v44  ;;  %v6902_v35 = vpop.f32.mrf.mxu0 }
 0x22f   : > { %8151 = vst [vmem:[#allocation73_spill] sm:$0xff] %v6898_v50  ;;  %5125 = vmatprep.mubr.msk.f32.mxu1 %vm499_vm1, %v6895_v62  ;;  %v6985_v50 = vld [vmem:[%s8040_s3 + $0x88] sm:$0xff] }
 0x230   : > { %v1510_v13 = vpop.f32.mrf.mxu0  ;;  %8164 = vst [vmem:[#allocation86_spill] sm:$0xff] %v6985_v50 }
 0x231   : > { %v6917_v16 = vadd.f32 %v1510_v13, %v6570_v3 }
 0x232   : > { %5126 = vmatmul.mubr.msk.f32.gmra.mxu1 %vm499_vm1, %v6909_v33  ;;  %v6921_v22 = vpop.f32.mrf.mxu0 }
 0x233   : > { %8154 = vst [vmem:[#allocation76_spill] sm:$0xff] %v6917_v16  ;;  %5128 = vmatprep.mubr.msk.f32.mxu1 %vm499_vm1, %v6914_v18 }
 0x234   : > { %v1516_v13 = vpop.f32.mrf.mxu0 }
 0x235   : > { %v6936_v7 = vadd.f32 %v1516_v13, %v6570_v3 }
 0x236   : > { %5129 = vmatmul.mubr.msk.f32.gmra.mxu1 %vm499_vm1, %v6928_v28  ;;  %v6940_v19 = vpop.f32.mrf.mxu0 }
 0x237   : > { %8157 = vst [vmem:[#allocation79_spill] sm:$0xff] %v6936_v7  ;;  %5131 = vmatprep.mubr.msk.f32.mxu1 %vm499_vm1, %v6933_v30  ;;  %v7004_v7 = vld [vmem:[%s8040_s3 + $0x98] sm:$0xff] }
 0x238   : > { %v1522_v13 = vpop.f32.mrf.mxu0  ;;  %8167 = vst [vmem:[#allocation89_spill] sm:$0xff] %v7004_v7 }
 0x239   : > { %v6955_v20 = vadd.f32 %v1522_v13, %v6570_v3 }
 0x23a   : > { %5132 = vmatmul.mubr.msk.f32.gmra.mxu1 %vm499_vm1, %v6947_v6  ;;  %v6959_v49 = vpop.f32.mrf.mxu0  ;;  %v7102_v6 = vld [vmem:[%s7099_s17 + $0x8] sm:$0xff] }
 0x23b   : > { %8160 = vst [vmem:[#allocation82_spill] sm:$0xff] %v6955_v20  ;;  %5134 = vmatprep.mubr.msk.f32.mxu1 %vm499_vm1, %v6952_v0  ;;  %v7091_v0 = vld [vmem:[%s8040_s3 + $0xf8] sm:$0xff]  ;;  %8181 = vst [vmem:[#allocation103_spill] sm:$0xff] %v7102_v6  ;;  %2446 = vmatprep.mubr.f32.mxu0 %v7102_v6 }
 0x23c   : > { %v1528_v13 = vpop.f32.mrf.mxu0  ;;  %8180 = vst [vmem:[#allocation102_spill] sm:$0xff] %v7091_v0 }
 0x23d   : > { %v6974_v17 = vadd.f32 %v1528_v13, %v6570_v3 }
 0x23e   : > { %5135 = vmatmul.mubr.msk.f32.gmra.mxu1 %vm499_vm1, %v6966_v46  ;;  %v6978_v27 = vpop.f32.mrf.mxu0  ;;  %v7082_v46 = vld [vmem:[%s8040_s3 + $0xf0] sm:$0xff] }
 0x23f   : > { %8163 = vst [vmem:[#allocation85_spill] sm:$0xff] %v6974_v17  ;;  %5137 = vmatprep.mubr.msk.f32.mxu1 %vm499_vm1, %v6971_v34  ;;  %v7026_v17 = vld [vmem:[%s8040_s3 + $0xb0] sm:$0xff]  ;;  %8179 = vst [vmem:[#allocation101_spill] sm:$0xff] %v7082_v46 }
 0x240   : > { %v1534_v13 = vpop.f32.mrf.mxu0  ;;  %8171 = vst [vmem:[#allocation93_spill] sm:$0xff] %v7026_v17 }
 0x241   : > { %v6993_v16 = vadd.f32 %v1534_v13, %v6570_v3 }
 0x242   : > { %5138 = vmatmul.mubr.msk.f32.gmra.mxu1 %vm499_vm1, %v6985_v50  ;;  %v6997_v63 = vpop.f32.mrf.mxu0 }
 0x243   : > { %8166 = vst [vmem:[#allocation88_spill] sm:$0xff] %v6993_v16  ;;  %5140 = vmatprep.mubr.msk.f32.mxu1 %vm499_vm1, %v6990_v37  ;;  %v7049_v16 = vld [vmem:[%s8040_s3 + $0xc8] sm:$0xff] }
 0x244   : > { %v1540_v13 = vpop.f32.mrf.mxu0  ;;  %8174 = vst [vmem:[#allocation96_spill] sm:$0xff] %v7049_v16 }
 0x245   : > { %v7012_v20 = vadd.f32 %v1540_v13, %v6570_v3  ;;  %v7035_v13 = vld [vmem:[%s8040_s3 + $0xb8] sm:$0xff]  ;;  %v7077_v3 = vld [vmem:[%s8040_s3 + $0xe8] sm:$0xff] }
 0x246   : > { %5141 = vmatmul.mubr.msk.f32.gmra.mxu1 %vm499_vm1, %v7004_v7  ;;  %8172 = vst [vmem:[#allocation94_spill] sm:$0xff] %v7035_v13  ;;  %8178 = vst [vmem:[#allocation100_spill] sm:$0xff] %v7077_v3  ;;  %v1544_v29 = vpop.f32.mrf.mxu0 }
 0x247   : > { %8169 = vst [vmem:[#allocation91_spill] sm:$0xff] %v7012_v20  ;;  %5143 = vmatprep.mubr.msk.f32.mxu1 %vm499_vm1, %v7009_v36  ;;  %v7054_v20 = vld [vmem:[%s8040_s3 + $0xd0] sm:$0xff] }
 0x248   : > { %8175 = vst [vmem:[#allocation97_spill] sm:$0xff] %v7054_v20 }
 0x24a   : > { %5144 = vmatmul.mubr.msk.f32.gmra.mxu1 %vm499_vm1, %v7021_v45 }
 0x24b   : > { %5146 = vmatprep.mubr.msk.f32.mxu1 %vm499_vm1, %v7026_v17 }
 0x24e   : > { %5147 = vmatmul.mubr.msk.f32.gmra.mxu1 %vm499_vm1, %v7035_v13 }
 0x24f   : > { %5149 = vmatprep.mubr.msk.f32.mxu1 %vm499_vm1, %v7040_v42 }
 0x252   : > { %5150 = vmatmul.mubr.msk.f32.gmra.mxu1 %vm499_vm1, %v7049_v16 }
 0x253   : > { %5152 = vmatprep.mubr.msk.f32.mxu1 %vm499_vm1, %v7054_v20 }
 0x256   : > { %5153 = vmatmul.mubr.msk.f32.gmra.mxu1 %vm499_vm1, %v7063_v21 }
 0x257   : > { %5155 = vmatprep.mubr.msk.f32.mxu1 %vm499_vm1, %v7068_v26 }
 0x25a   : > { %5156 = vmatmul.mubr.msk.f32.gmra.mxu1 %vm499_vm1, %v7077_v3 }
 0x25b   : > { %5158 = vmatprep.mubr.msk.f32.mxu1 %vm499_vm1, %v7082_v46  ;;  %v1182_v46 = vsub.s32 0, %v6546_v55 }
 0x25d   : > { %v7107_v3 = vrot.slane %v6555_v38, %v1182_v46 }
 0x25e   : > { %5159 = vmatmul.mubr.msk.f32.gmra.mxu1 %vm499_vm1, %v7091_v0 }
 0x25f   : > { %v1365_v26 = vadd.f32 %v6638_v10, %v7107_v3  ;;  %v1359_v30 = vadd.f32 %v6627_v25, %v7107_v3  ;;  %v1377_v20 = vadd.f32 %v6657_v48, %v7107_v3  ;;  %v1371_v55 = vadd.f32 %v6646_v53, %v7107_v3 }
 0x260   : > { %v1389_v10 = vadd.f32 %v6679_v40, %v7107_v3  ;;  %v1545_v7 = vadd.f32 %v1544_v29, %v7107_v3  ;;  %v1449_v56 = vadd.f32 %v6774_v12, %v7107_v3  ;;  %v1539_v1 = vadd.f32 %v6997_v63, %v7107_v3 }
 0x261   : > { %v1443_v60 = vadd.f32 %v6763_v58, %v7107_v3  ;;  %v1533_v34 = vadd.f32 %v6978_v27, %v7107_v3  ;;  %v1437_v29 = vadd.f32 %v6758_v2, %v7107_v3  ;;  %v1527_v12 = vadd.f32 %v6959_v49, %v7107_v3 }
 0x262   : > { %v1521_v27 = vadd.f32 %v6940_v19, %v7107_v3  ;;  %v1509_v19 = vadd.f32 %v6902_v35, %v7107_v3  ;;  %v1497_v35 = vadd.f32 %v6864_v4, %v7107_v3  ;;  %v1479_v4 = vadd.f32 %v6820_v32, %v7107_v3 }
 0x263   : > { %v1461_v32 = vadd.f32 %v6790_v5, %v7107_v3  ;;  %v7220_v5 = vld [vmem:[%s7099_s17] sm:$0xff] }
 0x2e2   : > { %v5115_v0 = vpop.f32.mrf.mxu1 }
 0x2e3   : > { %v7113_v21 = vmul.f32 %v5115_v0, %v1365_v26  ;;  %v1383_v0 = vadd.f32 %v6668_v51, %v7107_v3 }
 0x2e4   : > { %v2191_v28 = vpop.f32.mrf.mxu1 }
 0x2e5   : > { %8182 = vst [vmem:[#allocation104_spill] sm:$0xff] %v7113_v21  ;;  %v7117_v18 = vmul.f32 %v2191_v28, %v1359_v30  ;;  %v1401_v30 = vadd.f32 %v6698_v23, %v7107_v3 }
 0x2e6   : > { %v5118_v6 = vpop.f32.mrf.mxu1 }
 0x2e7   : > { %8183 = vst [vmem:[#allocation105_spill] sm:$0xff] %v7117_v18  ;;  %v7121_v38 = vmul.f32 %v5118_v6, %v1377_v20  ;;  %v1395_v6 = vadd.f32 %v6687_v11, %v7107_v3 }
 0x2e8   : > { %v2201_v46 = vpop.f32.mrf.mxu1 }
 0x2e9   : > { %v7125_v16 = vmul.f32 %v2201_v46, %v1371_v55 }
 0x2ea   : > { %v5121_v25 = vpop.f32.mrf.mxu1 }
 0x2eb   : > { %v7129_v26 = vmul.f32 %v5121_v25, %v1389_v10 }
 0x2ec   : > { %v2211_v48 = vpop.f32.mrf.mxu1 }
 0x2ed   : > { %v7133_v28 = vmul.f32 %v2211_v48, %v1383_v0 }
 0x2ee   : > { %v5124_v53 = vpop.f32.mrf.mxu1 }
 0x2ef   : > { %v7137_v20 = vmul.f32 %v5124_v53, %v1401_v30 }
 0x2f0   : > { %v2221_v40 = vpop.f32.mrf.mxu1 }
 0x2f1   : > { %v7139_v55 = vmul.f32 %v2221_v40, %v1395_v6 }
 0x2f2   : > { %v7141_v46 = vpop.f32.mrf.mxu1 }
 0x2f4   : > { %v7143_v51 = vpop.f32.mrf.mxu1 }
 0x2f6   : > { %v5130_v10 = vpop.f32.mrf.mxu1 }
 0x2f8   : > { %v2241_v25 = vpop.f32.mrf.mxu1 }
 0x2fa   : > { %v5133_v33 = vpop.f32.mrf.mxu1 }
 0x2fb   : > { %v2363_v58 = vmul.f32 %v5133_v33, %v1437_v29 }
 0x2fc   : > { %v2251_v42 = vpop.f32.mrf.mxu1 }
 0x2fe   : > { %v5136_v23 = vpop.f32.mrf.mxu1 }
 0x2ff   : > { %v2365_v43 = vmul.f32 %v5136_v23, %v1449_v56  ;;  %v8184_v56 = vld [vmem:[#allocation104_spill] sm:$0xff]  ;;  %v4273_v23 = vld [vmem:[%s8044_s7 + $0x198] sm:$0xff] }
 0x300   : > { %v2261_v0 = vpop.f32.mrf.mxu1 }
 0x301   : > { %v2364_v21 = vmul.f32 %v2261_v0, %v1443_v60  ;;  %v4272_v0 = vld [vmem:[%s8044_s7 + $0x190] sm:$0xff] }
 0x302   : > { %v7145_v48 = vpop.f32.mrf.mxu1 }
 0x304   : > { %v7147_v62 = vpop.f32.mrf.mxu1 }
 0x306   : > { %v7149_v11 = vpop.f32.mrf.mxu1 }
 0x308   : > { %v7151_v30 = vpop.f32.mrf.mxu1 }
 0x30a   : > { %v7153_v53 = vpop.f32.mrf.mxu1 }
 0x30c   : > { %v7155_v6 = vpop.f32.mrf.mxu1 }
 0x30e   : > { %v5148_v40 = vpop.f32.mrf.mxu1 }
 0x30f   : > { %v2373_v33 = vmul.f32 %v5148_v40, %v1497_v35  ;;  %v4317_v35 = vld [vmem:[%s8044_s7 + $0xe8] sm:$0xff] }
 0x310   : > { %v2301_v13 = vpop.f32.mrf.mxu1 }
 0x312   : > { %v5151_v44 = vpop.f32.mrf.mxu1 }
 0x314   : > { %v2311_v17 = vpop.f32.mrf.mxu1 }
 0x316   : > { %v5154_v47 = vpop.f32.mrf.mxu1 }
 0x317   : > { %v2377_v49 = vmul.f32 %v5154_v47, %v1521_v27  ;;  %v2375_v47 = vmul.f32 %v5151_v44, %v1509_v19  ;;  %v4301_v27 = vld [vmem:[%s8044_s7 + $0x368] sm:$0xff] }
 0x318   : > { %v2321_v45 = vpop.f32.mrf.mxu1  ;;  %v4293_v19 = vld [vmem:[%s8044_s7 + $0x328] sm:$0xff] }
 0x31a   : > { %v5157_v36 = vpop.f32.mrf.mxu1 }
 0x31b   : > { %v2379_v63 = vmul.f32 %v5157_v36, %v1533_v34 }
 0x31c   : > { %v2331_v41 = vpop.f32.mrf.mxu1 }
 0x31e   : > { %v5160_v37 = vpop.f32.mrf.mxu1 }
 0x31f   : > { %v2381_v50 = vmul.f32 %v5160_v37, %v1545_v7  ;;  %v1431_v37 = vadd.f32 %v6747_v8, %v7107_v3  ;;  %v1473_v7 = vadd.f32 %v6809_v52, %v7107_v3 }
 0x320   : > { %v2341_v14 = vpop.f32.mrf.mxu1 }
 0x321   : > { %v2380_v18 = vmul.f32 %v2341_v14, %v1539_v1  ;;  %4613 = vmatprep.subr.mxu0 %v2381_v50  ;;  %v2378_v14 = vmul.f32 %v2331_v41, %v1527_v12  ;;  %v1425_v50 = vadd.f32 %v6739_v9, %v7107_v3  ;;  %v2362_v2 = vmul.f32 %v2251_v42, %v1431_v37  ;;  %v4285_v41 = vld [vmem:[%s8044_s7 + $0x1f8] sm:$0xff] }
 0x322   : > { %4614 = vmatpush3.msra.mxu0 %v2365_v43  ;;  %v1515_v43 = vadd.f32 %v6921_v22, %v7107_v3  ;;  %v1413_v9 = vadd.f32 %v6720_v15, %v7107_v3  ;;  %v1503_v22 = vadd.f32 %v6883_v59, %v7107_v3  ;;  %v2370_v59 = vmul.f32 %v7155_v6, %v1479_v4  ;;  %v4303_v37 = vld [vmem:[%s8044_s7 + $0x378] sm:$0xff]  ;;  %v4310_v4 = vld [vmem:[%s8044_s7 + $0xb0] sm:$0xff] }
 0x323   : > { %4615 = vmatprep.subr.mxu0 %v2380_v18  ;;  %v1419_v18 = vadd.f32 %v6731_v24, %v7107_v3  ;;  %v2361_v34 = vmul.f32 %v5130_v10, %v1425_v50  ;;  %v1407_v24 = vadd.f32 %v6709_v31, %v7107_v3  ;;  %v1485_v31 = vadd.f32 %v6828_v39, %v7107_v3  ;;  %v4275_v10 = vld [vmem:[%s8044_s7 + $0x1a8] sm:$0xff]  ;;  %v4299_v50 = vld [vmem:[%s8044_s7 + $0x358] sm:$0xff] }
 0x324   : > { %4616 = vmatpush3.msra.mxu0 %v2364_v21  ;;  %v2376_v36 = vmul.f32 %v2321_v45, %v1515_v43  ;;  %v2359_v42 = vmul.f32 %v7141_v46, %v1413_v9  ;;  %v2374_v45 = vmul.f32 %v2311_v17, %v1503_v22  ;;  %v1491_v21 = vadd.f32 %v6845_v61, %v7107_v3  ;;  %v4277_v46 = vld [vmem:[%s8044_s7 + $0x1b8] sm:$0xff]  ;;  %v4297_v43 = vld [vmem:[%s8044_s7 + $0x348] sm:$0xff] }
 0x325   : > { %4617 = vmatprep.subr.mxu0 %v2379_v63  ;;  %v2360_v8 = vmul.f32 %v2241_v25, %v1419_v18  ;;  %v2358_v15 = vmul.f32 %v7143_v51, %v1407_v24  ;;  %v2371_v17 = vmul.f32 %v7153_v53, %v1485_v31  ;;  %v1467_v39 = vadd.f32 %v6801_v57, %v7107_v3  ;;  %v4276_v51 = vld [vmem:[%s8044_s7 + $0x1b0] sm:$0xff]  ;;  %v4274_v25 = vld [vmem:[%s8044_s7 + $0x1a0] sm:$0xff]  ;;  %v4295_v18 = vld [vmem:[%s8044_s7 + $0x338] sm:$0xff] }
 0x326   : > { %4618 = vmatpush3.msra.mxu0 %v2363_v58  ;;  %v2372_v44 = vmul.f32 %v2301_v13, %v1491_v21  ;;  %v2369_v60 = vmul.f32 %v7149_v11, %v1473_v7  ;;  %v1455_v1 = vadd.f32 %v6782_v54, %v7107_v3  ;;  %v2367_v57 = vmul.f32 %v7145_v48, %v1461_v32  ;;  %v7226_v13 = vld [vmem:[%s7099_s17 + $0x18] sm:$0xff]  ;;  %v4284_v54 = vld [vmem:[%s8044_s7 + $0x1f0] sm:$0xff]  ;;  %v4271_v48 = vld [vmem:[%s8044_s7 + $0x188] sm:$0xff] }
 0x327   : > { %4619 = vmatprep.subr.mxu0 %v2378_v14  ;;  %v2368_v52 = vmul.f32 %v7151_v30, %v1467_v39  ;;  %v8185_v3 = vld [vmem:[#allocation105_spill] sm:$0xff]  ;;  %v4270_v11 = vld [vmem:[%s8044_s7 + $0x180] sm:$0xff]  ;;  %v7280_v30 = vpop.f32.mrf.mxu0  ;;  %5196 = vmatprep.subr.mxu1 %v4303_v37  ;;  %v4302_v58 = vld [vmem:[%s8044_s7 + $0x370] sm:$0xff] }
 0x328   : > { %4620 = vmatpush3.msra.mxu0 %v2362_v2  ;;  %v2366_v61 = vmul.f32 %v7147_v62, %v1455_v1  ;;  %v4283_v62 = vld [vmem:[%s8044_s7 + $0x1e8] sm:$0xff]  ;;  %5197 = vmatpush3.msra.mxu1 %v4303_v37  ;;  %v4300_v14 = vld [vmem:[%s8044_s7 + $0x360] sm:$0xff]  ;;  %v4298_v2 = vld [vmem:[%s8044_s7 + $0x350] sm:$0xff] }
 0x329   : > { %4621 = vmatprep.subr.mxu0 %v2377_v49  ;;  %5198 = vmatprep.subr.mxu1 %v4302_v58  ;;  %v4296_v49 = vld [vmem:[%s8044_s7 + $0x340] sm:$0xff]  ;;  %v4291_v9 = vld [vmem:[%s8044_s7 + $0x318] sm:$0xff]  ;;  %v4289_v22 = vld [vmem:[%s8044_s7 + $0x308] sm:$0xff] }
 0x32a   : > { %4622 = vmatpush3.msra.mxu0 %v2361_v34  ;;  %5199 = vmatpush3.msra.mxu1 %v4302_v58  ;;  %v4294_v34 = vld [vmem:[%s8044_s7 + $0x330] sm:$0xff]  ;;  %v4319_v24 = vld [vmem:[%s8044_s7 + $0xf8] sm:$0xff]  ;;  %v4312_v31 = vld [vmem:[%s8044_s7 + $0xc0] sm:$0xff] }
 0x32b   : > { %4623 = vmatprep.subr.mxu0 %v2376_v36  ;;  %5200 = vmatprep.subr.mxu1 %v4301_v27  ;;  %v4292_v36 = vld [vmem:[%s8044_s7 + $0x320] sm:$0xff]  ;;  %v4314_v21 = vld [vmem:[%s8044_s7 + $0xd0] sm:$0xff] }
 0x32c   : > { %4624 = vmatpush3.msra.mxu0 %v2360_v8  ;;  %5201 = vmatpush3.msra.mxu1 %v4301_v27  ;;  %v4290_v8 = vld [vmem:[%s8044_s7 + $0x310] sm:$0xff]  ;;  %v4308_v7 = vld [vmem:[%s8044_s7 + $0xa0] sm:$0xff] }
 0x32d   : > { %4625 = vmatprep.subr.mxu0 %v2375_v47  ;;  %5202 = vmatprep.subr.mxu1 %v4300_v14  ;;  %v4288_v47 = vld [vmem:[%s8044_s7 + $0x300] sm:$0xff] }
 0x32e   : > { %4626 = vmatpush3.msra.mxu0 %v2359_v42  ;;  %5203 = vmatpush3.msra.mxu1 %v4300_v14  ;;  %v4318_v42 = vld [vmem:[%s8044_s7 + $0xf0] sm:$0xff]  ;;  %v8187_v14 = vld [vmem:[#allocation7_spill] sm:$0xff] }
 0x32f   : > { %4627 = vmatprep.subr.mxu0 %v2374_v45  ;;  %5204 = vmatprep.subr.mxu1 %v4299_v50  ;;  %v4316_v45 = vld [vmem:[%s8044_s7 + $0xe0] sm:$0xff] }
 0x330   : > { %4628 = vmatpush3.msra.mxu0 %v2358_v15  ;;  %5205 = vmatpush3.msra.mxu1 %v4299_v50  ;;  %v4315_v15 = vld [vmem:[%s8044_s7 + $0xd8] sm:$0xff] }
 0x331   : > { %4629 = vmatprep.subr.mxu0 %v2373_v33  ;;  %5206 = vmatprep.subr.mxu1 %v4298_v2  ;;  %v4313_v33 = vld [vmem:[%s8044_s7 + $0xc8] sm:$0xff] }
 0x332   : > { %4630 = vmatpush3.msra.mxu0 %v7137_v20  ;;  %v4279_v20 = vld [vmem:[%s8044_s7 + $0x1c8] sm:$0xff]  ;;  %5207 = vmatpush3.msra.mxu1 %v4298_v2  ;;  %v8188_v2 = vld [vmem:[#allocation8_spill] sm:$0xff] }
 0x333   : > { %4631 = vmatprep.subr.mxu0 %v2372_v44  ;;  %5208 = vmatprep.subr.mxu1 %v4297_v43  ;;  %v4311_v44 = vld [vmem:[%s8044_s7 + $0xb8] sm:$0xff] }
 0x334   : > { %4632 = vmatpush3.msra.mxu0 %v7139_v55  ;;  %v4278_v55 = vld [vmem:[%s8044_s7 + $0x1c0] sm:$0xff]  ;;  %5209 = vmatpush3.msra.mxu1 %v4297_v43 }
 0x335   : > { %4633 = vmatprep.subr.mxu0 %v2371_v17  ;;  %5210 = vmatprep.subr.mxu1 %v4296_v49  ;;  %v4309_v17 = vld [vmem:[%s8044_s7 + $0xa8] sm:$0xff] }
 0x336   : > { %4634 = vmatpush3.msra.mxu0 %v7129_v26  ;;  %v4281_v26 = vld [vmem:[%s8044_s7 + $0x1d8] sm:$0xff]  ;;  %5211 = vmatpush3.msra.mxu1 %v4296_v49  ;;  %v7397_v49 = vld [vmem:[%s8040_s3] sm:$0xff] }
 0x337   : > { %4635 = vmatprep.subr.mxu0 %v2370_v59  ;;  %5212 = vmatprep.subr.mxu1 %v4295_v18  ;;  %v2474_v59 = vld [vmem:[%s8045_s8 + $0x3] ss:$0 sm:$0xff] }
 0x338   : > { %4636 = vmatpush3.msra.mxu0 %v7133_v28  ;;  %v4280_v28 = vld [vmem:[%s8044_s7 + $0x1d0] sm:$0xff]  ;;  %5213 = vmatpush3.msra.mxu1 %v4295_v18 }
 0x339   : > { %4637 = vmatprep.subr.mxu0 %v2369_v60  ;;  %5214 = vmatprep.subr.mxu1 %v4294_v34 }
 0x33a   : > { %4638 = vmatpush3.msra.mxu0 %v7121_v38  ;;  %v4282_v38 = vld [vmem:[%s8044_s7 + $0x1e0] sm:$0xff]  ;;  %5215 = vmatpush3.msra.mxu1 %v4294_v34 }
 0x33b   : > { %4639 = vmatprep.subr.mxu0 %v2368_v52  ;;  %5216 = vmatprep.subr.mxu1 %v4293_v19 }
 0x33c   : > { %4640 = vmatpush3.msra.mxu0 %v7125_v16  ;;  %v7235_v16 = vld [vmem:[%s7099_s17 + $0x10] sm:$0xff]  ;;  %5217 = vmatpush3.msra.mxu1 %v4293_v19  ;;  %v8189_v19 = vld [vmem:[#allocation62_spill] sm:$0xff] }
 0x33d   : > { %4641 = vmatprep.subr.mxu0 %v2367_v57  ;;  %5218 = vmatprep.subr.mxu1 %v4292_v36 }
 0x33e   : > { %4642 = vmatpush3.msra.mxu0 %v8184_v56  ;;  %5219 = vmatpush3.msra.mxu1 %v4292_v36  ;;  %v8190_v36 = vld [vmem:[#allocation86_spill] sm:$0xff] }
 0x33f   : > { %4643 = vmatprep.subr.mxu0 %v2366_v61  ;;  %5220 = vmatprep.subr.mxu1 %v4291_v9 }
 0x340   : > { %4644 = vmatpush3.msra.mxu0 %v8185_v3  ;;  %5221 = vmatpush3.msra.mxu1 %v4291_v9  ;;  %v8191_v9 = vld [vmem:[#allocation63_spill] sm:$0xff] }
 0x341   : > { %2447 = vmatmul.mubr.f32.vlgmr.msra.gmra.mxu0 %v7220_v5  ;;  %5161 = vmatprep.subr.mxu0 %v4285_v41 }
 0x342   : > { %2451 = vmatprep.mubr.f32.mxu0 %v7226_v13  ;;  %5162 = vmatpush3.msra.mxu0 %v4285_v41 }
 0x343   : > { %5163 = vmatprep.subr.mxu0 %v4284_v54  ;;  %5222 = vmatprep.subr.mxu1 %v4290_v8 }
 0x344   : > { %5164 = vmatpush3.msra.mxu0 %v4284_v54  ;;  %5223 = vmatpush3.msra.mxu1 %v4290_v8  ;;  %v8192_v8 = vld [vmem:[#allocation87_spill] sm:$0xff] }
 0x345   : > { %2452 = vmatmul.mubr.f32.gmra.mxu0 %v7235_v16  ;;  %5165 = vmatprep.subr.mxu0 %v4283_v62 }
 0x346   : > { %5166 = vmatpush3.msra.mxu0 %v4283_v62  ;;  %5224 = vmatprep.subr.mxu1 %v4289_v22 }
 0x347   : > { %5167 = vmatprep.subr.mxu0 %v4282_v38  ;;  %5225 = vmatpush3.msra.mxu1 %v4289_v22  ;;  %v8193_v22 = vld [vmem:[#allocation65_spill] sm:$0xff] }
 0x348   : > { %5168 = vmatpush3.msra.mxu0 %v4282_v38  ;;  %5226 = vmatprep.subr.mxu1 %v4288_v47 }
 0x349   : > { %5169 = vmatprep.subr.mxu0 %v4281_v26  ;;  %5227 = vmatpush3.msra.mxu1 %v4288_v47  ;;  %v8194_v47 = vld [vmem:[#allocation89_spill] sm:$0xff] }
 0x34a   : > { %5170 = vmatpush3.msra.mxu0 %v4281_v26 }
 0x34b   : > { %5171 = vmatprep.subr.mxu0 %v4280_v28 }
 0x34c   : > { %5172 = vmatpush3.msra.mxu0 %v4280_v28 }
 0x34d   : > { %5173 = vmatprep.subr.mxu0 %v4279_v20 }
 0x34e   : > { %5174 = vmatpush3.msra.mxu0 %v4279_v20 }
 0x34f   : > { %5175 = vmatprep.subr.mxu0 %v4278_v55 }
 0x350   : > { %5176 = vmatpush3.msra.mxu0 %v4278_v55 }
 0x351   : > { %5177 = vmatprep.subr.mxu0 %v4277_v46 }
 0x352   : > { %5178 = vmatpush3.msra.mxu0 %v4277_v46 }
 0x353   : > { %5179 = vmatprep.subr.mxu0 %v4276_v51 }
 0x354   : > { %5180 = vmatpush3.msra.mxu0 %v4276_v51 }
 0x355   : > { %5181 = vmatprep.subr.mxu0 %v4275_v10 }
 0x356   : > { %5182 = vmatpush3.msra.mxu0 %v4275_v10 }
 0x357   : > { %5183 = vmatprep.subr.mxu0 %v4274_v25 }
 0x358   : > { %5184 = vmatpush3.msra.mxu0 %v4274_v25 }
 0x359   : > { %5185 = vmatprep.subr.mxu0 %v4273_v23 }
 0x35a   : > { %5186 = vmatpush3.msra.mxu0 %v4273_v23 }
 0x35b   : > { %5187 = vmatprep.subr.mxu0 %v4272_v0 }
 0x35c   : > { %5188 = vmatpush3.msra.mxu0 %v4272_v0 }
 0x35d   : > { %5189 = vmatprep.subr.mxu0 %v4271_v48 }
 0x35e   : > { %5190 = vmatpush3.msra.mxu0 %v4271_v48 }
 0x35f   : > { %5191 = vmatprep.subr.mxu0 %v4270_v11 }
 0x360   : > { %5192 = vmatpush3.msra.mxu0 %v4270_v11  ;;  %v8186_v11 = vld [vmem:[#allocation84_spill] sm:$0xff] }
 0x361   : > { %5231 = vmatprep.subr.mxu0 %v4319_v24 }
 0x401   : > { %v4645_v53 = vpop.f32.mrf.mxu0 }
 0x403   : > { %v4646_v6 = vpop.f32.mrf.mxu0 }
 0x404   : > { %v4647_v40 = vadd.f32 %v4646_v6, %v4645_v53  ;;  %v4307_v53 = vld [vmem:[%s8044_s7 + $0x98] sm:$0xff]  ;;  %v4306_v6 = vld [vmem:[%s8044_s7 + $0x90] sm:$0xff] }
 0x405   : > { %v4648_v29 = vpop.f32.mrf.mxu0 }
 0x406   : > { %5193 = vmatprep.mubr.f32.mxu0 %v4647_v40  ;;  %v4305_v40 = vld [vmem:[%s8044_s7 + $0x88] sm:$0xff] }
 0x407   : > { %v4649_v12 = vpop.f32.mrf.mxu0 }
 0x408   : > { %v4650_v63 = vadd.f32 %v4649_v12, %v4648_v29  ;;  %v4304_v29 = vld [vmem:[%s8044_s7 + $0x80] sm:$0xff] }
 0x409   : > { %v2587_v12 = vld [vmem:[%s8045_s8 + $0x6] ss:$0 sm:$0xff] }
 0x40a   : > { %5194 = vmatmul.mubr.f32.vlgmr.msra.gmra.mxu0 %v4650_v63 }
 0x40b   : > { %5232 = vmatpush3.msra.mxu0 %v4319_v24  ;;  %v8195_v24 = vld [vmem:[#allocation66_spill] sm:$0xff] }
 0x40c   : > { %5233 = vmatprep.subr.mxu0 %v4318_v42 }
 0x40d   : > { %5234 = vmatpush3.msra.mxu0 %v4318_v42  ;;  %v8196_v42 = vld [vmem:[#allocation90_spill] sm:$0xff] }
 0x40e   : > { %5235 = vmatprep.subr.mxu0 %v4317_v35 }
 0x40f   : > { %5236 = vmatpush3.msra.mxu0 %v4317_v35  ;;  %v8197_v35 = vld [vmem:[#allocation68_spill] sm:$0xff] }
 0x410   : > { %5237 = vmatprep.subr.mxu0 %v4316_v45 }
 0x411   : > { %5238 = vmatpush3.msra.mxu0 %v4316_v45  ;;  %v8198_v45 = vld [vmem:[#allocation92_spill] sm:$0xff] }
 0x412   : > { %5239 = vmatprep.subr.mxu0 %v4315_v15 }
 0x413   : > { %5240 = vmatpush3.msra.mxu0 %v4315_v15  ;;  %v8199_v15 = vld [vmem:[#allocation69_spill] sm:$0xff] }
 0x414   : > { %5241 = vmatprep.subr.mxu0 %v4314_v21 }
 0x415   : > { %5242 = vmatpush3.msra.mxu0 %v4314_v21  ;;  %v8200_v21 = vld [vmem:[#allocation93_spill] sm:$0xff] }
 0x416   : > { %5243 = vmatprep.subr.mxu0 %v4313_v33 }
 0x417   : > { %5244 = vmatpush3.msra.mxu0 %v4313_v33  ;;  %v8201_v33 = vld [vmem:[#allocation71_spill] sm:$0xff] }
 0x418   : > { %5245 = vmatprep.subr.mxu0 %v4312_v31 }
 0x419   : > { %5246 = vmatpush3.msra.mxu0 %v4312_v31  ;;  %v8202_v31 = vld [vmem:[#allocation94_spill] sm:$0xff] }
 0x41a   : > { %5247 = vmatprep.subr.mxu0 %v4311_v44 }
 0x41b   : > { %5248 = vmatpush3.msra.mxu0 %v4311_v44  ;;  %v8203_v44 = vld [vmem:[#allocation72_spill] sm:$0xff] }
 0x41c   : > { %5249 = vmatprep.subr.mxu0 %v4310_v4 }
 0x41d   : > { %5250 = vmatpush3.msra.mxu0 %v4310_v4  ;;  %v8204_v4 = vld [vmem:[#allocation95_spill] sm:$0xff] }
 0x41e   : > { %5251 = vmatprep.subr.mxu0 %v4309_v17 }
 0x41f   : > { %5252 = vmatpush3.msra.mxu0 %v4309_v17  ;;  %v8205_v17 = vld [vmem:[#allocation74_spill] sm:$0xff] }
 0x420   : > { %5253 = vmatprep.subr.mxu0 %v4308_v7 }
 0x421   : > { %5254 = vmatpush3.msra.mxu0 %v4308_v7  ;;  %v8206_v7 = vld [vmem:[#allocation96_spill] sm:$0xff] }
 0x422   : > { %5255 = vmatprep.subr.mxu0 %v4307_v53 }
 0x423   : > { %5256 = vmatpush3.msra.mxu0 %v4307_v53 }
 0x424   : > { %5257 = vmatprep.subr.mxu0 %v4306_v6 }
 0x425   : > { %5258 = vmatpush3.msra.mxu0 %v4306_v6 }
 0x426   : > { %5259 = vmatprep.subr.mxu0 %v4305_v40 }
 0x427   : > { %5260 = vmatpush3.msra.mxu0 %v4305_v40 }
 0x428   : > { %5261 = vmatprep.subr.mxu0 %v4304_v29 }
 0x429   : > { %5262 = vmatpush3.msra.mxu0 %v4304_v29 }
 0x4ca   : > { %v5195_v39 = vpop.f32.mrf.mxu0 }
 0x4cb   : > { %v2547_v60 = vadd.f32 %v5195_v39, %v2474_v59  ;;  %v8208_v39 = vld [vmem:[#allocation97_spill] sm:$0xff] }
 0x4cc   : > { %v2541_v32 = vpop.f32.mrf.mxu0 }
 0x4cd   : > { %v2553_v52 = vand.u32 2147483647, %v2547_v60  ;;  %v2542_v1 = vadd.f32 %v2541_v32, %v2474_v59  ;;  %v2551_v46 = vmax.f32 %v2547_v60, 0.0  ;;  %v8207_v59 = vld [vmem:[#allocation75_spill] sm:$0xff]  ;;  %v8209_v60 = vld [vmem:[#allocation77_spill] sm:$0xff]  ;;  %v8210_v32 = vld [vmem:[#allocation98_spill] sm:$0xff] }
 0x4cf   : > { %v2555_v57 = vsub.f32 0.0, %v2553_v52  ;;  %v2552_v61 = vand.u32 2147483647, %v2542_v1  ;;  %v2550_v51 = vmax.f32 %v2542_v1, 0.0  ;;  %v8211_v52 = vld [vmem:[#allocation78_spill] sm:$0xff]  ;;  %v8212_v1 = vld [vmem:[#allocation99_spill] sm:$0xff] }
 0x4d1   : > { %v2558_v56 = vmul.f32 1.442695, %v2555_v57  ;;  %v2554_v41 = vsub.f32 0.0, %v2552_v61  ;;  %v8213_v57 = vld [vmem:[#allocation80_spill] sm:$0xff] }
 0x4d2   : > { %v8214_v61 = vld [vmem:[#allocation100_spill] sm:$0xff] }
 0x4d3   : > { %5723 = vpow2.f32 %v2558_v56  ;;  %v2556_v3 = vmul.f32 1.442695, %v2554_v41  ;;  %v8215_v56 = vld [vmem:[#allocation81_spill] sm:$0xff] }
 0x4d4   : > { %v8216_v41 = vld [vmem:[#allocation101_spill] sm:$0xff] }
 0x4d5   : > { %5725 = vpow2.f32 %v2556_v3  ;;  %v8217_v3 = vld [vmem:[#allocation83_spill] sm:$0xff] }
 0x4e0   : > { %v5724_v54 = vpop.eup %5723 }
 0x4e1   : > { %v2561_v62 = vadd.f32 1.0, %v5724_v54  ;;  %v8218_v54 = vld [vmem:[#allocation102_spill] sm:$0xff] }
 0x4e2   : > { %v5726_v38 = vpop.eup %5725 }
 0x4e3   : > { %5727 = vlog2.f32 %v2561_v62  ;;  %v2560_v26 = vadd.f32 1.0, %v5726_v38  ;;  %v8219_v62 = vld [vmem:[#allocation103_spill] sm:$0xff]  ;;  %v4367_v38 = vld [vmem:[%s8044_s7 + $0x278] sm:$0xff] }
 0x4e5   : > { %5729 = vlog2.f32 %v2560_v26  ;;  %v4366_v26 = vld [vmem:[%s8044_s7 + $0x270] sm:$0xff] }
 0x4f0   : > { %v5728_v28 = vpop.eup %5727 }
 0x4f1   : > { %v2565_v20 = vmul.f32 0.6931472, %v5728_v28  ;;  %v4365_v28 = vld [vmem:[%s8044_s7 + $0x268] sm:$0xff] }
 0x4f2   : > { %v5730_v55 = vpop.eup %5729 }
 0x4f3   : > { %v2563_v10 = vmul.f32 0.6931472, %v5730_v55  ;;  %v2567_v25 = vadd.f32 %v2565_v20, %v2551_v46  ;;  %v4364_v20 = vld [vmem:[%s8044_s7 + $0x260] sm:$0xff]  ;;  %v4363_v55 = vld [vmem:[%s8044_s7 + $0x258] sm:$0xff]  ;;  %v4362_v46 = vld [vmem:[%s8044_s7 + $0x250] sm:$0xff] }
 0x4f5   : > { %v2566_v23 = vadd.f32 %v2563_v10, %v2550_v51  ;;  %v4287_v48 = vadd.f32 -0.6931472, %v2567_v25  ;;  %v4361_v51 = vld [vmem:[%s8044_s7 + $0x248] sm:$0xff]  ;;  %v4360_v10 = vld [vmem:[%s8044_s7 + $0x240] sm:$0xff]  ;;  %v4359_v25 = vld [vmem:[%s8044_s7 + $0x238] sm:$0xff] }
 0x4f7   : > { %v4286_v0 = vadd.f32 -0.6931472, %v2566_v23  ;;  %v4358_v23 = vld [vmem:[%s8044_s7 + $0x230] sm:$0xff] }
 0x4f9   : > { %5228 = vmatprep.mubr.f32.mxu1 %v4286_v0  ;;  %v4357_v0 = vld [vmem:[%s8044_s7 + $0x228] sm:$0xff] }
 0x4fa   : > { %5229 = vmatmul.mubr.f32.vlgmr.msra.gmra.mxu1 %v4287_v48  ;;  %v4356_v48 = vld [vmem:[%s8044_s7 + $0x220] sm:$0xff] }
 0x4fb   : > { %5294 = vmatprep.mubr.msk.f32.mxu1 %vm499_vm1, %v8186_v11 }
 0x5ba   : > { %v5230_v63 = vpop.f32.mrf.mxu1 }
 0x5bb   : > { %v2660_v37 = vadd.f32 %v5230_v63, %v2587_v12 }
 0x5bc   : > { %v2654_v58 = vpop.f32.mrf.mxu1 }
 0x5bd   : > { %v2655_v27 = vadd.f32 %v2654_v58, %v2587_v12  ;;  %v7390_v43 = vadd.f32 %v2660_v37, %v8188_v2 }
 0x5bf   : > { %v7387_v50 = vadd.f32 %v2655_v27, %v8187_v14 }
 0x5c1   : > { %5263 = vmatprep.mubr.f32.mxu0 %v7387_v50 }
 0x5c2   : > { %5264 = vmatmul.mubr.f32.vlgmr.msra.gmra.mxu0 %v7390_v43 }
 0x5c3   : > { %5270 = vmatprep.mubr.msk.f32.mxu0 %vm499_vm1, %v7397_v49 }
 0x682   : > { %v5265_v18 = vpop.f32.mrf.mxu0 }
 0x683   : > { %5266 = vmatprep.subr.mxu0 %v5265_v18  ;;  %5545 = vmatprep.subr.mxu1 %v5265_v18 }
 0x684   : > { %v2780_v34 = vpop.f32.mrf.mxu0  ;;  %5267 = vmatpush3.msra.mxu0 %v5265_v18  ;;  %5547 = vmatpush3.msra.mxu1 %v5265_v18 }
 0x685   : > { %5268 = vmatprep.subr.mxu0 %v2780_v34  ;;  %5546 = vmatprep.subr.mxu1 %v2780_v34 }
 0x686   : > { %5269 = vmatpush3.msra.mxu0 %v2780_v34  ;;  %5548 = vmatpush3.msra.mxu1 %v2780_v34 }
 0x687   : > { %5271 = vmatmul.mubr.msk.f32.vlgmr.msra.gmra.mxu0 %vm499_vm1, %v8189_v19  ;;  %5295 = vmatmul.mubr.msk.f32.vlgmr.msra.gmra.mxu1 %vm499_vm1, %v8190_v36 }
 0x688   : > { %5273 = vmatprep.mubr.msk.f32.mxu0 %vm499_vm1, %v8191_v9  ;;  %5297 = vmatprep.mubr.msk.f32.mxu1 %vm499_vm1, %v8192_v8 }
 0x689   : > { %5318 = vmatprep.subr.mxu1 %v4367_v38 }
 0x68a   : > { %5319 = vmatpush3.msra.mxu1 %v4367_v38 }
 0x68b   : > { %5274 = vmatmul.mubr.msk.f32.gmra.mxu0 %vm499_vm1, %v8193_v22  ;;  %5298 = vmatmul.mubr.msk.f32.gmra.mxu1 %vm499_vm1, %v8194_v47 }
 0x68c   : > { %5276 = vmatprep.mubr.msk.f32.mxu0 %vm499_vm1, %v8195_v24  ;;  %5300 = vmatprep.mubr.msk.f32.mxu1 %vm499_vm1, %v8196_v42 }
 0x68d   : > { %5320 = vmatprep.subr.mxu1 %v4366_v26 }
 0x68e   : > { %5321 = vmatpush3.msra.mxu1 %v4366_v26  ;;  %v8227_v26 = vld [vmem:[#allocation43_spill] sm:$0xff] }
 0x68f   : > { %5277 = vmatmul.mubr.msk.f32.gmra.mxu0 %vm499_vm1, %v8197_v35  ;;  %5301 = vmatmul.mubr.msk.f32.gmra.mxu1 %vm499_vm1, %v8198_v45 }
 0x690   : > { %5279 = vmatprep.mubr.msk.f32.mxu0 %vm499_vm1, %v8199_v15  ;;  %5303 = vmatprep.mubr.msk.f32.mxu1 %vm499_vm1, %v8200_v21 }
 0x691   : > { %5322 = vmatprep.subr.mxu1 %v4365_v28 }
 0x692   : > { %5323 = vmatpush3.msra.mxu1 %v4365_v28 }
 0x693   : > { %5280 = vmatmul.mubr.msk.f32.gmra.mxu0 %vm499_vm1, %v8201_v33  ;;  %5304 = vmatmul.mubr.msk.f32.gmra.mxu1 %vm499_vm1, %v8202_v31 }
 0x694   : > { %5282 = vmatprep.mubr.msk.f32.mxu0 %vm499_vm1, %v8203_v44  ;;  %5306 = vmatprep.mubr.msk.f32.mxu1 %vm499_vm1, %v8204_v4  ;;  %v8220_v44 = vld [vmem:[#allocation6_spill] sm:$0xff] }
 0x695   : > { %5324 = vmatprep.subr.mxu1 %v4364_v20  ;;  %v1547_v4 = vadd.f32 %v7280_v30, %v8220_v44  ;;  %v8226_v30 = vld [vmem:[#allocation85_spill] sm:$0xff] }
 0x696   : > { %5325 = vmatpush3.msra.mxu1 %v4364_v20  ;;  %v8228_v20 = vld [vmem:[#allocation82_spill] sm:$0xff] }
 0x697   : > { %5283 = vmatmul.mubr.msk.f32.gmra.mxu0 %vm499_vm1, %v8205_v17  ;;  %5307 = vmatmul.mubr.msk.f32.gmra.mxu1 %vm499_vm1, %v8206_v7 }
 0x698   : > { %5285 = vmatprep.mubr.msk.f32.mxu0 %vm499_vm1, %v8207_v59  ;;  %5309 = vmatprep.mubr.msk.f32.mxu1 %vm499_vm1, %v8208_v39  ;;  %v8221_v59 = vld [vmem:[#allocation49_spill] sm:$0xff] }
 0x699   : > { %5326 = vmatprep.subr.mxu1 %v4363_v55 }
 0x69a   : > { %5327 = vmatpush3.msra.mxu1 %v4363_v55 }
 0x69b   : > { %5286 = vmatmul.mubr.msk.f32.gmra.mxu0 %vm499_vm1, %v8209_v60  ;;  %5310 = vmatmul.mubr.msk.f32.gmra.mxu1 %vm499_vm1, %v8210_v32 }
 0x69c   : > { %5288 = vmatprep.mubr.msk.f32.mxu0 %vm499_vm1, %v8211_v52  ;;  %5312 = vmatprep.mubr.msk.f32.mxu1 %vm499_vm1, %v8212_v1  ;;  %v8222_v1 = vld [vmem:[#allocation47_spill] sm:$0xff] }
 0x69d   : > { %5328 = vmatprep.subr.mxu1 %v4362_v46 }
 0x69e   : > { %5329 = vmatpush3.msra.mxu1 %v4362_v46  ;;  %v8229_v46 = vld [vmem:[#allocation40_spill] sm:$0xff] }
 0x69f   : > { %5289 = vmatmul.mubr.msk.f32.gmra.mxu0 %vm499_vm1, %v8213_v57  ;;  %5313 = vmatmul.mubr.msk.f32.gmra.mxu1 %vm499_vm1, %v8214_v61  ;;  %v8223_v61 = vld [vmem:[#allocation91_spill] sm:$0xff] }
 0x6a0   : > { %5291 = vmatprep.mubr.msk.f32.mxu0 %vm499_vm1, %v8215_v56  ;;  %5315 = vmatprep.mubr.msk.f32.mxu1 %vm499_vm1, %v8216_v41  ;;  %v8224_v41 = vld [vmem:[#allocation88_spill] sm:$0xff] }
 0x6a1   : > { %5330 = vmatprep.subr.mxu1 %v4361_v51 }
 0x6a2   : > { %5331 = vmatpush3.msra.mxu1 %v4361_v51 }
 0x6a3   : > { %5292 = vmatmul.mubr.msk.f32.gmra.mxu0 %vm499_vm1, %v8217_v3  ;;  %5316 = vmatmul.mubr.msk.f32.gmra.mxu1 %vm499_vm1, %v8218_v54  ;;  %v8225_v54 = vld [vmem:[#allocation44_spill] sm:$0xff] }
 0x6a4   : > { %3110 = vmatprep.mubr.f32.mxu0 %v8219_v62  ;;  %5332 = vmatprep.subr.mxu1 %v4360_v10 }
 0x6a5   : > { %5333 = vmatpush3.msra.mxu1 %v4360_v10  ;;  %v8230_v10 = vld [vmem:[#allocation79_spill] sm:$0xff] }
 0x6a6   : > { %5334 = vmatprep.subr.mxu1 %v4359_v25 }
 0x6a7   : > { %5335 = vmatpush3.msra.mxu1 %v4359_v25 }
 0x6a8   : > { %5336 = vmatprep.subr.mxu1 %v4358_v23 }
 0x6a9   : > { %5337 = vmatpush3.msra.mxu1 %v4358_v23  ;;  %v8231_v23 = vld [vmem:[#allocation37_spill] sm:$0xff] }
 0x6aa   : > { %5338 = vmatprep.subr.mxu1 %v4357_v0 }
 0x6ab   : > { %5339 = vmatpush3.msra.mxu1 %v4357_v0 }
 0x6ac   : > { %5340 = vmatprep.subr.mxu1 %v4356_v48 }
 0x6ad   : > { %5341 = vmatpush3.msra.mxu1 %v4356_v48  ;;  %v8232_v48 = vld [vmem:[#allocation76_spill] sm:$0xff] }
 0x747   : > { %v7498_v11 = vpop.f32.mrf.mxu0  ;;  %v7500_v53 = vpop.f32.mrf.mxu1 }
 0x749   : > { %v7502_v6 = vpop.f32.mrf.mxu0  ;;  %v7504_v40 = vpop.f32.mrf.mxu1 }
 0x74b   : > { %v7506_v29 = vpop.f32.mrf.mxu0  ;;  %v7508_v12 = vpop.f32.mrf.mxu1 }
 0x74d   : > { %v7510_v63 = vpop.f32.mrf.mxu0  ;;  %v7512_v37 = vpop.f32.mrf.mxu1 }
 0x74f   : > { %v7514_v58 = vpop.f32.mrf.mxu0  ;;  %v5302_v27 = vpop.f32.mrf.mxu1 }
 0x751   : > { %v7516_v14 = vpop.f32.mrf.mxu0  ;;  %v7518_v2 = vpop.f32.mrf.mxu1 }
 0x753   : > { %v5281_v18 = vpop.f32.mrf.mxu0  ;;  %v5305_v34 = vpop.f32.mrf.mxu1 }
 0x755   : > { %v2885_v19 = vpop.f32.mrf.mxu0  ;;  %v2965_v36 = vpop.f32.mrf.mxu1 }
 0x757   : > { %v5284_v9 = vpop.f32.mrf.mxu0  ;;  %v5308_v8 = vpop.f32.mrf.mxu1 }
 0x759   : > { %v2895_v22 = vpop.f32.mrf.mxu0  ;;  %v2975_v47 = vpop.f32.mrf.mxu1 }
 0x75b   : > { %v5287_v24 = vpop.f32.mrf.mxu0  ;;  %v5311_v42 = vpop.f32.mrf.mxu1 }
 0x75c   : > { %v3041_v55 = vmul.f32 %v5311_v42, %v8228_v20  ;;  %v3025_v51 = vmul.f32 %v5287_v24, %v8229_v46  ;;  %v8235_v42 = vld [vmem:[#allocation33_spill] sm:$0xff]  ;;  %v8236_v24 = vld [vmem:[#allocation70_spill] sm:$0xff]  ;;  %v4380_v46 = vld [vmem:[%s8044_s7 + $0x3d0] sm:$0xff] }
 0x75d   : > { %v2905_v35 = vpop.f32.mrf.mxu0  ;;  %v2985_v45 = vpop.f32.mrf.mxu1  ;;  %v4382_v20 = vld [vmem:[%s8044_s7 + $0x3e0] sm:$0xff] }
 0x75e   : > { %v3040_v25 = vmul.f32 %v2985_v45, %v8230_v10  ;;  %v3024_v0 = vmul.f32 %v2905_v35, %v8231_v23  ;;  %v8237_v45 = vld [vmem:[#allocation30_spill] sm:$0xff]  ;;  %v8238_v35 = vld [vmem:[#allocation67_spill] sm:$0xff]  ;;  %v4376_v23 = vld [vmem:[%s8044_s7 + $0x3b0] sm:$0xff] }
 0x75f   : > { %v5290_v15 = vpop.f32.mrf.mxu0  ;;  %v5314_v21 = vpop.f32.mrf.mxu1  ;;  %v4378_v10 = vld [vmem:[%s8044_s7 + $0x3c0] sm:$0xff] }
 0x760   : > { %v3043_v3 = vmul.f32 %v5314_v21, %v8224_v41  ;;  %v3027_v62 = vmul.f32 %v5290_v15, %v8225_v54  ;;  %v3039_v15 = vmul.f32 %v5308_v8, %v8232_v48  ;;  %v8233_v21 = vld [vmem:[#allocation36_spill] sm:$0xff]  ;;  %v8239_v8 = vld [vmem:[#allocation27_spill] sm:$0xff]  ;;  %v8249_v41 = vld [vmem:[#allocation13_spill] sm:$0xff] }
 0x761   : > { %v2915_v33 = vpop.f32.mrf.mxu0  ;;  %v2995_v31 = vpop.f32.mrf.mxu1  ;;  %v8251_v54 = vld [vmem:[#allocation10_spill] sm:$0xff] }
 0x762   : > { %v3042_v38 = vmul.f32 %v2995_v31, %v8226_v30  ;;  %v3026_v28 = vmul.f32 %v2915_v33, %v8227_v26  ;;  %v3023_v31 = vmul.f32 %v5284_v9, %v8233_v21  ;;  %v8234_v33 = vld [vmem:[#allocation73_spill] sm:$0xff]  ;;  %v8240_v9 = vld [vmem:[#allocation64_spill] sm:$0xff]  ;;  %v4374_v48 = vld [vmem:[%s8044_s7 + $0x3a0] sm:$0xff] }
 0x763   : > { %v5293_v17 = vpop.f32.mrf.mxu0  ;;  %v5317_v7 = vpop.f32.mrf.mxu1  ;;  %v3038_v44 = vmul.f32 %v2975_v47, %v8234_v33  ;;  %v8241_v47 = vld [vmem:[#allocation24_spill] sm:$0xff]  ;;  %v4370_v33 = vld [vmem:[%s8044_s7 + $0x380] sm:$0xff] }
 0x764   : > { %v3029_v39 = vmul.f32 %v5293_v17, %v8221_v59  ;;  %v3045_v60 = vmul.f32 %v5317_v7, %v1547_v4  ;;  %v3022_v4 = vmul.f32 %v2895_v22, %v8235_v42  ;;  %v3037_v17 = vmul.f32 %v5305_v34, %v8236_v24  ;;  %v8242_v22 = vld [vmem:[#allocation61_spill] sm:$0xff]  ;;  %v4384_v26 = vld [vmem:[%s8044_s7 + $0x3f0] sm:$0xff]  ;;  %v4398_v24 = vld [vmem:[%s8044_s7 + $0x160] sm:$0xff] }
 0x765   : > { %v2925_v32 = vpop.f32.mrf.mxu0  ;;  %v3005_v52 = vpop.f32.mrf.mxu1  ;;  %v3021_v7 = vmul.f32 %v5281_v18, %v8237_v45  ;;  %v3036_v59 = vmul.f32 %v2965_v36, %v8238_v35  ;;  %v3034_v34 = vmul.f32 %v7518_v2, %v8242_v22  ;;  %v8244_v36 = vld [vmem:[#allocation58_spill] sm:$0xff]  ;;  %v4372_v21 = vld [vmem:[%s8044_s7 + $0x390] sm:$0xff] }
 0x766   : > { %v3028_v57 = vmul.f32 %v2925_v32, %v8222_v1  ;;  %v3044_v56 = vmul.f32 %v3005_v52, %v8223_v61  ;;  %4739 = vmatprep.subr.mxu0 %v3045_v60  ;;  %v3035_v60 = vmul.f32 %v5302_v27, %v8240_v9  ;;  %v3019_v32 = vmul.f32 %v7514_v58, %v8241_v47  ;;  %v8243_v52 = vld [vmem:[#allocation22_spill] sm:$0xff]  ;;  %v8247_v61 = vld [vmem:[#allocation16_spill] sm:$0xff] }
 0x767   : > { %4740 = vmatpush3.msra.mxu0 %v3029_v39  ;;  %v3020_v39 = vmul.f32 %v2885_v19, %v8239_v8  ;;  %v3018_v18 = vmul.f32 %v7516_v14, %v8243_v52  ;;  %v3033_v1 = vmul.f32 %v7508_v12, %v8244_v36  ;;  %v8245_v19 = vld [vmem:[#allocation19_spill] sm:$0xff]  ;;  %v3016_v2 = vmul.f32 %v7510_v63, %v8247_v61  ;;  %v4400_v42 = vld [vmem:[%s8044_s7 + $0x170] sm:$0xff]  ;;  %v4394_v35 = vld [vmem:[%s8044_s7 + $0x140] sm:$0xff] }
 0x768   : > { %4741 = vmatprep.subr.mxu0 %v3044_v56  ;;  %v3017_v27 = vmul.f32 %v7506_v29, %v8245_v19  ;;  %v8248_v56 = vld [vmem:[#allocation54_spill] sm:$0xff]  ;;  %v3015_v12 = vmul.f32 %v7498_v11, %v8249_v41  ;;  %v4355_v11 = vld [vmem:[%s8044_s7 + $0x218] sm:$0xff]  ;;  %v4396_v45 = vld [vmem:[%s8044_s7 + $0x150] sm:$0xff] }
 0x769   : > { %4742 = vmatpush3.msra.mxu0 %v3028_v57  ;;  %v8246_v57 = vld [vmem:[#allocation56_spill] sm:$0xff]  ;;  %v3031_v14 = vmul.f32 %v7500_v53, %v8248_v56  ;;  %5342 = vmatprep.subr.mxu1 %v4355_v11  ;;  %v4390_v9 = vld [vmem:[%s8044_s7 + $0x120] sm:$0xff] }
 0x76a   : > { %4743 = vmatprep.subr.mxu0 %v3043_v3  ;;  %v3032_v58 = vmul.f32 %v7512_v37, %v8246_v57  ;;  %v8250_v3 = vld [vmem:[#allocation51_spill] sm:$0xff]  ;;  %v3014_v37 = vmul.f32 %v7502_v6, %v8251_v54  ;;  %5343 = vmatpush3.msra.mxu1 %v4355_v11  ;;  %v4354_v53 = vld [vmem:[%s8044_s7 + $0x210] sm:$0xff] }
 0x76b   : > { %4744 = vmatpush3.msra.mxu0 %v3027_v62  ;;  %v3030_v29 = vmul.f32 %v7504_v40, %v8250_v3  ;;  %5344 = vmatprep.subr.mxu1 %v4354_v53  ;;  %v4392_v8 = vld [vmem:[%s8044_s7 + $0x130] sm:$0xff] }
 0x76c   : > { %4745 = vmatprep.subr.mxu0 %v3042_v38  ;;  %5345 = vmatpush3.msra.mxu1 %v4354_v53  ;;  %v4385_v38 = vld [vmem:[%s8044_s7 + $0x3f8] sm:$0xff] }
 0x76d   : > { %4746 = vmatpush3.msra.mxu0 %v3026_v28  ;;  %v4383_v28 = vld [vmem:[%s8044_s7 + $0x3e8] sm:$0xff] }
 0x76e   : > { %4747 = vmatprep.subr.mxu0 %v3041_v55  ;;  %v4381_v55 = vld [vmem:[%s8044_s7 + $0x3d8] sm:$0xff] }
 0x76f   : > { %4748 = vmatpush3.msra.mxu0 %v3025_v51  ;;  %v4379_v51 = vld [vmem:[%s8044_s7 + $0x3c8] sm:$0xff] }
 0x770   : > { %4749 = vmatprep.subr.mxu0 %v3040_v25  ;;  %v4377_v25 = vld [vmem:[%s8044_s7 + $0x3b8] sm:$0xff] }
 0x771   : > { %4750 = vmatpush3.msra.mxu0 %v3024_v0  ;;  %v4375_v0 = vld [vmem:[%s8044_s7 + $0x3a8] sm:$0xff] }
 0x772   : > { %4751 = vmatprep.subr.mxu0 %v3039_v15  ;;  %v4373_v15 = vld [vmem:[%s8044_s7 + $0x398] sm:$0xff] }
 0x773   : > { %4752 = vmatpush3.msra.mxu0 %v3023_v31  ;;  %v4371_v31 = vld [vmem:[%s8044_s7 + $0x388] sm:$0xff] }
 0x774   : > { %4753 = vmatprep.subr.mxu0 %v3038_v44  ;;  %v4401_v44 = vld [vmem:[%s8044_s7 + $0x178] sm:$0xff] }
 0x775   : > { %4754 = vmatpush3.msra.mxu0 %v3022_v4  ;;  %v4399_v4 = vld [vmem:[%s8044_s7 + $0x168] sm:$0xff] }
 0x776   : > { %4755 = vmatprep.subr.mxu0 %v3037_v17  ;;  %v4397_v17 = vld [vmem:[%s8044_s7 + $0x158] sm:$0xff] }
 0x777   : > { %4756 = vmatpush3.msra.mxu0 %v3021_v7  ;;  %v4395_v7 = vld [vmem:[%s8044_s7 + $0x148] sm:$0xff] }
 0x778   : > { %4757 = vmatprep.subr.mxu0 %v3036_v59  ;;  %v4393_v59 = vld [vmem:[%s8044_s7 + $0x138] sm:$0xff] }
 0x779   : > { %4758 = vmatpush3.msra.mxu0 %v3020_v39  ;;  %v4391_v39 = vld [vmem:[%s8044_s7 + $0x128] sm:$0xff] }
 0x77a   : > { %4759 = vmatprep.subr.mxu0 %v3035_v60  ;;  %v3138_v60 = vld [vmem:[%s8045_s8 + $0x4] ss:$0 sm:$0xff] }
 0x77b   : > { %4760 = vmatpush3.msra.mxu0 %v3019_v32 }
 0x77c   : > { %4761 = vmatprep.subr.mxu0 %v3034_v34 }
 0x77d   : > { %4762 = vmatpush3.msra.mxu0 %v3018_v18 }
 0x77e   : > { %4763 = vmatprep.subr.mxu0 %v3033_v1 }
 0x77f   : > { %4764 = vmatpush3.msra.mxu0 %v3017_v27 }
 0x780   : > { %4765 = vmatprep.subr.mxu0 %v3032_v58 }
 0x781   : > { %4766 = vmatpush3.msra.mxu0 %v3016_v2 }
 0x782   : > { %4767 = vmatprep.subr.mxu0 %v3031_v14 }
 0x783   : > { %4768 = vmatpush3.msra.mxu0 %v3015_v12 }
 0x784   : > { %4769 = vmatprep.subr.mxu0 %v3030_v29 }
 0x785   : > { %4770 = vmatpush3.msra.mxu0 %v3014_v37 }
 0x786   : > { %3111 = vmatmul.mubr.f32.vlgmr.msra.gmra.mxu0 %v7220_v5  ;;  %v4353_v5 = vld [vmem:[%s8044_s7 + $0x208] sm:$0xff]  ;;  %5353 = vmatprep.subr.mxu0 %v4385_v38 }
 0x787   : > { %3115 = vmatprep.mubr.f32.mxu0 %v7226_v13  ;;  %5346 = vmatprep.subr.mxu1 %v4353_v5  ;;  %v4352_v13 = vld [vmem:[%s8044_s7 + $0x200] sm:$0xff] }
 0x788   : > { %5347 = vmatpush3.msra.mxu1 %v4353_v5  ;;  %5354 = vmatpush3.msra.mxu0 %v4385_v38  ;;  %v4389_v5 = vld [vmem:[%s8044_s7 + $0x118] sm:$0xff] }
 0x789   : > { %5348 = vmatprep.subr.mxu1 %v4352_v13  ;;  %5355 = vmatprep.subr.mxu0 %v4384_v26 }
 0x78a   : > { %3116 = vmatmul.mubr.f32.gmra.mxu0 %v7235_v16  ;;  %5349 = vmatpush3.msra.mxu1 %v4352_v13  ;;  %v4388_v13 = vld [vmem:[%s8044_s7 + $0x110] sm:$0xff] }
 0x78b   : > { %5356 = vmatpush3.msra.mxu0 %v4384_v26  ;;  %5388 = vmatprep.subr.mxu1 %v4401_v44 }
 0x78c   : > { %5357 = vmatprep.subr.mxu0 %v4383_v28 }
 0x78d   : > { %5358 = vmatpush3.msra.mxu0 %v4383_v28  ;;  %v5748_v28 = vld [vmem:[%s8040_s3 + $0x80] sm:$0xff] }
 0x78e   : > { %5359 = vmatprep.subr.mxu0 %v4382_v20 }
 0x78f   : > { %5360 = vmatpush3.msra.mxu0 %v4382_v20 }
 0x790   : > { %5361 = vmatprep.subr.mxu0 %v4381_v55 }
 0x791   : > { %5362 = vmatpush3.msra.mxu0 %v4381_v55 }
 0x792   : > { %5363 = vmatprep.subr.mxu0 %v4380_v46 }
 0x793   : > { %5364 = vmatpush3.msra.mxu0 %v4380_v46  ;;  %v5751_v46 = vld [vmem:[%s8040_s3 + $0x10] sm:$0xff] }
 0x794   : > { %5365 = vmatprep.subr.mxu0 %v4379_v51 }
 0x795   : > { %5366 = vmatpush3.msra.mxu0 %v4379_v51  ;;  %v5752_v51 = vld [vmem:[%s8040_s3 + $0x90] sm:$0xff] }
 0x796   : > { %5367 = vmatprep.subr.mxu0 %v4378_v10 }
 0x797   : > { %5368 = vmatpush3.msra.mxu0 %v4378_v10  ;;  %v5753_v10 = vld [vmem:[%s8040_s3 + $0x18] sm:$0xff] }
 0x798   : > { %5369 = vmatprep.subr.mxu0 %v4377_v25 }
 0x799   : > { %5370 = vmatpush3.msra.mxu0 %v4377_v25  ;;  %v5754_v25 = vld [vmem:[%s8040_s3 + $0x98] sm:$0xff] }
 0x79a   : > { %5371 = vmatprep.subr.mxu0 %v4376_v23 }
 0x79b   : > { %5372 = vmatpush3.msra.mxu0 %v4376_v23  ;;  %v5755_v23 = vld [vmem:[%s8040_s3 + $0x20] sm:$0xff] }
 0x79c   : > { %5373 = vmatprep.subr.mxu0 %v4375_v0 }
 0x79d   : > { %5374 = vmatpush3.msra.mxu0 %v4375_v0  ;;  %v5756_v0 = vld [vmem:[%s8040_s3 + $0xa0] sm:$0xff] }
 0x79e   : > { %5375 = vmatprep.subr.mxu0 %v4374_v48 }
 0x79f   : > { %5376 = vmatpush3.msra.mxu0 %v4374_v48  ;;  %v5757_v48 = vld [vmem:[%s8040_s3 + $0x28] sm:$0xff] }
 0x7a0   : > { %5377 = vmatprep.subr.mxu0 %v4373_v15 }
 0x7a1   : > { %5378 = vmatpush3.msra.mxu0 %v4373_v15  ;;  %v5758_v15 = vld [vmem:[%s8040_s3 + $0xa8] sm:$0xff] }
 0x7a2   : > { %5379 = vmatprep.subr.mxu0 %v4372_v21 }
 0x7a3   : > { %5380 = vmatpush3.msra.mxu0 %v4372_v21  ;;  %v5759_v21 = vld [vmem:[%s8040_s3 + $0x30] sm:$0xff] }
 0x7a4   : > { %5381 = vmatprep.subr.mxu0 %v4371_v31 }
 0x7a5   : > { %5382 = vmatpush3.msra.mxu0 %v4371_v31  ;;  %v5760_v31 = vld [vmem:[%s8040_s3 + $0xb0] sm:$0xff] }
 0x7a6   : > { %5383 = vmatprep.subr.mxu0 %v4370_v33 }
 0x7a7   : > { %5384 = vmatpush3.msra.mxu0 %v4370_v33  ;;  %v5761_v33 = vld [vmem:[%s8040_s3 + $0x38] sm:$0xff] }
 0x846   : > { %v4771_v16 = vpop.f32.mrf.mxu0 }
 0x848   : > { %v4772_v6 = vpop.f32.mrf.mxu0 }
 0x849   : > { %v4773_v40 = vadd.f32 %v4772_v6, %v4771_v16  ;;  %v4387_v16 = vld [vmem:[%s8044_s7 + $0x108] sm:$0xff]  ;;  %v3251_v6 = vld [vmem:[%s8045_s8 + $0x7] ss:$0 sm:$0xff] }
 0x84a   : > { %v4774_v63 = vpop.f32.mrf.mxu0 }
 0x84b   : > { %5350 = vmatprep.mubr.f32.mxu1 %v4773_v40 }
 0x84c   : > { %v4775_v62 = vpop.f32.mrf.mxu0 }
 0x84d   : > { %v4776_v30 = vadd.f32 %v4775_v62, %v4774_v63 }
 0x84f   : > { %5351 = vmatmul.mubr.f32.vlgmr.msra.gmra.mxu1 %v4776_v30 }
 0x850   : > { %5389 = vmatpush3.msra.mxu1 %v4401_v44  ;;  %v5762_v44 = vld [vmem:[%s8040_s3 + $0xb8] sm:$0xff] }
 0x851   : > { %5390 = vmatprep.subr.mxu1 %v4400_v42 }
 0x852   : > { %5391 = vmatpush3.msra.mxu1 %v4400_v42  ;;  %v5763_v42 = vld [vmem:[%s8040_s3 + $0x40] sm:$0xff] }
 0x853   : > { %5392 = vmatprep.subr.mxu1 %v4399_v4 }
 0x854   : > { %5393 = vmatpush3.msra.mxu1 %v4399_v4  ;;  %v5764_v4 = vld [vmem:[%s8040_s3 + $0xc0] sm:$0xff] }
 0x855   : > { %5394 = vmatprep.subr.mxu1 %v4398_v24 }
 0x856   : > { %5395 = vmatpush3.msra.mxu1 %v4398_v24  ;;  %v5765_v24 = vld [vmem:[%s8040_s3 + $0x48] sm:$0xff] }
 0x857   : > { %5396 = vmatprep.subr.mxu1 %v4397_v17 }
 0x858   : > { %5397 = vmatpush3.msra.mxu1 %v4397_v17  ;;  %v5766_v17 = vld [vmem:[%s8040_s3 + $0xc8] sm:$0xff] }
 0x859   : > { %5398 = vmatprep.subr.mxu1 %v4396_v45 }
 0x85a   : > { %5399 = vmatpush3.msra.mxu1 %v4396_v45  ;;  %v5767_v45 = vld [vmem:[%s8040_s3 + $0x50] sm:$0xff] }
 0x85b   : > { %5400 = vmatprep.subr.mxu1 %v4395_v7 }
 0x85c   : > { %5401 = vmatpush3.msra.mxu1 %v4395_v7  ;;  %v5768_v7 = vld [vmem:[%s8040_s3 + $0xd0] sm:$0xff] }
 0x85d   : > { %5402 = vmatprep.subr.mxu1 %v4394_v35 }
 0x85e   : > { %5403 = vmatpush3.msra.mxu1 %v4394_v35  ;;  %v5769_v35 = vld [vmem:[%s8040_s3 + $0x58] sm:$0xff] }
 0x85f   : > { %5404 = vmatprep.subr.mxu1 %v4393_v59 }
 0x860   : > { %5405 = vmatpush3.msra.mxu1 %v4393_v59  ;;  %v5770_v59 = vld [vmem:[%s8040_s3 + $0xd8] sm:$0xff] }
 0x861   : > { %5406 = vmatprep.subr.mxu1 %v4392_v8 }
 0x862   : > { %5407 = vmatpush3.msra.mxu1 %v4392_v8  ;;  %v5771_v8 = vld [vmem:[%s8040_s3 + $0x60] sm:$0xff] }
 0x863   : > { %5408 = vmatprep.subr.mxu1 %v4391_v39 }
 0x864   : > { %5409 = vmatpush3.msra.mxu1 %v4391_v39  ;;  %v5772_v39 = vld [vmem:[%s8040_s3 + $0xe0] sm:$0xff] }
 0x865   : > { %5410 = vmatprep.subr.mxu1 %v4390_v9 }
 0x866   : > { %5411 = vmatpush3.msra.mxu1 %v4390_v9  ;;  %v5773_v9 = vld [vmem:[%s8040_s3 + $0x68] sm:$0xff] }
 0x867   : > { %5412 = vmatprep.subr.mxu1 %v4389_v5 }
 0x868   : > { %5413 = vmatpush3.msra.mxu1 %v4389_v5 }
 0x869   : > { %5414 = vmatprep.subr.mxu1 %v4388_v13 }
 0x86a   : > { %5415 = vmatpush3.msra.mxu1 %v4388_v13 }
 0x86b   : > { %5416 = vmatprep.subr.mxu1 %v4387_v16 }
 0x86c   : > { %5417 = vmatpush3.msra.mxu1 %v4387_v16 }
 0x90f   : > { %v5352_v47 = vpop.f32.mrf.mxu1 }
 0x910   : > { %v3211_v32 = vadd.f32 %v5352_v47, %v3138_v60  ;;  %v5775_v47 = vld [vmem:[%s8040_s3 + $0x70] sm:$0xff] }
 0x911   : > { %v3205_v22 = vpop.f32.mrf.mxu1 }
 0x912   : > { %v3217_v34 = vand.u32 2147483647, %v3211_v32  ;;  %v3206_v52 = vadd.f32 %v3205_v22, %v3138_v60  ;;  %v3215_v12 = vmax.f32 %v3211_v32, 0.0  ;;  %v5774_v60 = vld [vmem:[%s8040_s3 + $0xe8] sm:$0xff]  ;;  %v5776_v32 = vld [vmem:[%s8040_s3 + $0xf0] sm:$0xff]  ;;  %v5777_v22 = vld [vmem:[%s8040_s3 + $0x78] sm:$0xff] }
 0x914   : > { %v3219_v18 = vsub.f32 0.0, %v3217_v34  ;;  %v3216_v36 = vand.u32 2147483647, %v3206_v52  ;;  %v3214_v3 = vmax.f32 %v3206_v52, 0.0  ;;  %v5778_v34 = vld [vmem:[%s8040_s3 + $0xf8] sm:$0xff]  ;;  %v5779_v52 = vld [vmem:[%s7099_s17 + $0x8] sm:$0xff] }
 0x916   : > { %v3222_v1 = vmul.f32 1.442695, %v3219_v18  ;;  %v3218_v19 = vsub.f32 0.0, %v3216_v36  ;;  %v4449_v18 = vld [vmem:[%s8044_s7 + $0x2f8] sm:$0xff]  ;;  %v4448_v36 = vld [vmem:[%s8044_s7 + $0x2f0] sm:$0xff] }
 0x918   : > { %5731 = vpow2.f32 %v3222_v1  ;;  %v3220_v27 = vmul.f32 1.442695, %v3218_v19  ;;  %v4447_v1 = vld [vmem:[%s8044_s7 + $0x2e8] sm:$0xff]  ;;  %v4446_v19 = vld [vmem:[%s8044_s7 + $0x2e0] sm:$0xff] }
 0x91a   : > { %5733 = vpow2.f32 %v3220_v27  ;;  %v4445_v27 = vld [vmem:[%s8044_s7 + $0x2d8] sm:$0xff] }
 0x925   : > { %v5732_v57 = vpop.eup %5731 }
 0x926   : > { %v3225_v58 = vadd.f32 1.0, %v5732_v57  ;;  %v4444_v57 = vld [vmem:[%s8044_s7 + $0x2d0] sm:$0xff] }
 0x927   : > { %v5734_v61 = vpop.eup %5733 }
 0x928   : > { %5735 = vlog2.f32 %v3225_v58  ;;  %v3224_v2 = vadd.f32 1.0, %v5734_v61  ;;  %v4443_v58 = vld [vmem:[%s8044_s7 + $0x2c8] sm:$0xff]  ;;  %v4442_v61 = vld [vmem:[%s8044_s7 + $0x2c0] sm:$0xff] }
 0x92a   : > { %5737 = vlog2.f32 %v3224_v2  ;;  %v4441_v2 = vld [vmem:[%s8044_s7 + $0x2b8] sm:$0xff] }
 0x935   : > { %v5736_v56 = vpop.eup %5735 }
 0x936   : > { %v3229_v14 = vmul.f32 0.6931472, %v5736_v56  ;;  %v4440_v56 = vld [vmem:[%s8044_s7 + $0x2b0] sm:$0xff] }
 0x937   : > { %v5738_v41 = vpop.eup %5737 }
 0x938   : > { %v3227_v29 = vmul.f32 0.6931472, %v5738_v41  ;;  %v3231_v54 = vadd.f32 %v3229_v14, %v3215_v12  ;;  %v4439_v14 = vld [vmem:[%s8044_s7 + $0x2a8] sm:$0xff]  ;;  %v4438_v41 = vld [vmem:[%s8044_s7 + $0x2a0] sm:$0xff] }
 0x93a   : > { %v3230_v37 = vadd.f32 %v3227_v29, %v3214_v3  ;;  %v4369_v53 = vadd.f32 -0.6931472, %v3231_v54 }
 0x93c   : > { %v4368_v11 = vadd.f32 -0.6931472, %v3230_v37 }
 0x93e   : > { %5385 = vmatprep.mubr.f32.mxu0 %v4368_v11 }
 0x93f   : > { %5386 = vmatmul.mubr.f32.vlgmr.msra.gmra.mxu0 %v4369_v53 }
 0x940   : > { %5427 = vmatprep.mubr.msk.f32.mxu0 %vm499_vm1, %v7397_v49  ;;  %v4386_v49 = vld [vmem:[%s8044_s7 + $0x100] sm:$0xff] }
 0x941   : > { %5418 = vmatprep.subr.mxu1 %v4386_v49 }
 0x942   : > { %5419 = vmatpush3.msra.mxu1 %v4386_v49 }
 0x9ff   : > { %v5387_v40 = vpop.f32.mrf.mxu0 }
 0xa00   : > { %v3324_v63 = vadd.f32 %v5387_v40, %v3251_v6 }
 0xa01   : > { %v3318_v62 = vpop.f32.mrf.mxu0 }
 0xa02   : > { %v3319_v30 = vadd.f32 %v3318_v62, %v3251_v6  ;;  %v7687_v26 = vadd.f32 %v3324_v63, %v7390_v43  ;;  %v5750_v43 = vld [vmem:[%s8040_s3 + $0x88] sm:$0xff] }
 0xa04   : > { %v7684_v38 = vadd.f32 %v3319_v30, %v7387_v50  ;;  %v5749_v50 = vld [vmem:[%s8040_s3 + $0x8] sm:$0xff] }
 0xa06   : > { %5420 = vmatprep.mubr.f32.mxu1 %v7684_v38 }
 0xa07   : > { %5421 = vmatmul.mubr.f32.vlgmr.msra.gmra.mxu1 %v7687_v26 }
 0xa08   : > { %5451 = vmatprep.mubr.msk.f32.mxu1 %vm499_vm1, %v5748_v28 }
 0xac7   : > { %v5422_v20 = vpop.f32.mrf.mxu1 }
 0xac8   : > { %5423 = vmatprep.subr.mxu0 %v5422_v20  ;;  %5549 = vmatprep.subr.mxu1 %v5422_v20 }
 0xac9   : > { %v3444_v55 = vpop.f32.mrf.mxu1  ;;  %5424 = vmatpush3.msra.mxu0 %v5422_v20  ;;  %5551 = vmatpush3.msra.mxu1 %v5422_v20 }
 0xaca   : > { %5425 = vmatprep.subr.mxu0 %v3444_v55  ;;  %5550 = vmatprep.subr.mxu1 %v3444_v55 }
 0xacb   : > { %5426 = vmatpush3.msra.mxu0 %v3444_v55  ;;  %5552 = vmatpush3.msra.mxu1 %v3444_v55 }
 0xacc   : > { %5428 = vmatmul.mubr.msk.f32.vlgmr.msra.gmra.mxu0 %vm499_vm1, %v5749_v50  ;;  %5452 = vmatmul.mubr.msk.f32.vlgmr.msra.gmra.mxu1 %vm499_vm1, %v5750_v43 }
 0xacd   : > { %5430 = vmatprep.mubr.msk.f32.mxu0 %vm499_vm1, %v5751_v46  ;;  %5454 = vmatprep.mubr.msk.f32.mxu1 %vm499_vm1, %v5752_v51 }
 0xace   : > { %5475 = vmatprep.subr.mxu0 %v4449_v18 }
 0xacf   : > { %5476 = vmatpush3.msra.mxu0 %v4449_v18  ;;  %v8261_v18 = vld [vmem:[#allocation25_spill] sm:$0xff] }
 0xad0   : > { %5431 = vmatmul.mubr.msk.f32.gmra.mxu0 %vm499_vm1, %v5753_v10  ;;  %5455 = vmatmul.mubr.msk.f32.gmra.mxu1 %vm499_vm1, %v5754_v25 }
 0xad1   : > { %5433 = vmatprep.mubr.msk.f32.mxu0 %vm499_vm1, %v5755_v23  ;;  %5457 = vmatprep.mubr.msk.f32.mxu1 %vm499_vm1, %v5756_v0 }
 0xad2   : > { %5477 = vmatprep.subr.mxu0 %v4448_v36 }
 0xad3   : > { %5478 = vmatpush3.msra.mxu0 %v4448_v36 }
 0xad4   : > { %5434 = vmatmul.mubr.msk.f32.gmra.mxu0 %vm499_vm1, %v5757_v48  ;;  %5458 = vmatmul.mubr.msk.f32.gmra.mxu1 %vm499_vm1, %v5758_v15 }
 0xad5   : > { %5436 = vmatprep.mubr.msk.f32.mxu0 %vm499_vm1, %v5759_v21  ;;  %5460 = vmatprep.mubr.msk.f32.mxu1 %vm499_vm1, %v5760_v31  ;;  %v8252_v31 = vld [vmem:[#allocation31_spill] sm:$0xff] }
 0xad6   : > { %5479 = vmatprep.subr.mxu0 %v4447_v1 }
 0xad7   : > { %5480 = vmatpush3.msra.mxu0 %v4447_v1  ;;  %v8262_v1 = vld [vmem:[#allocation53_spill] sm:$0xff] }
 0xad8   : > { %5437 = vmatmul.mubr.msk.f32.gmra.mxu0 %vm499_vm1, %v5761_v33  ;;  %5461 = vmatmul.mubr.msk.f32.gmra.mxu1 %vm499_vm1, %v5762_v44  ;;  %v8253_v44 = vld [vmem:[#allocation59_spill] sm:$0xff] }
 0xad9   : > { %5439 = vmatprep.mubr.msk.f32.mxu0 %vm499_vm1, %v5763_v42  ;;  %5463 = vmatprep.mubr.msk.f32.mxu1 %vm499_vm1, %v5764_v4 }
 0xada   : > { %5481 = vmatprep.subr.mxu0 %v4446_v19 }
 0xadb   : > { %5482 = vmatpush3.msra.mxu0 %v4446_v19 }
 0xadc   : > { %5440 = vmatmul.mubr.msk.f32.gmra.mxu0 %vm499_vm1, %v5765_v24  ;;  %5464 = vmatmul.mubr.msk.f32.gmra.mxu1 %vm499_vm1, %v5766_v17  ;;  %v8254_v17 = vld [vmem:[#allocation32_spill] sm:$0xff] }
 0xadd   : > { %5442 = vmatprep.mubr.msk.f32.mxu0 %vm499_vm1, %v5767_v45  ;;  %5466 = vmatprep.mubr.msk.f32.mxu1 %vm499_vm1, %v5768_v7  ;;  %v8255_v7 = vld [vmem:[#allocation60_spill] sm:$0xff] }
 0xade   : > { %5483 = vmatprep.subr.mxu0 %v4445_v27 }
 0xadf   : > { %5484 = vmatpush3.msra.mxu0 %v4445_v27  ;;  %v8263_v27 = vld [vmem:[#allocation26_spill] sm:$0xff] }
 0xae0   : > { %5443 = vmatmul.mubr.msk.f32.gmra.mxu0 %vm499_vm1, %v5769_v35  ;;  %5467 = vmatmul.mubr.msk.f32.gmra.mxu1 %vm499_vm1, %v5770_v59  ;;  %v8256_v59 = vld [vmem:[#allocation55_spill] sm:$0xff] }
 0xae1   : > { %5445 = vmatprep.mubr.msk.f32.mxu0 %vm499_vm1, %v5771_v8  ;;  %5469 = vmatprep.mubr.msk.f32.mxu1 %vm499_vm1, %v5772_v39  ;;  %v8257_v39 = vld [vmem:[#allocation28_spill] sm:$0xff] }
 0xae2   : > { %5485 = vmatprep.subr.mxu0 %v4444_v57 }
 0xae3   : > { %5486 = vmatpush3.msra.mxu0 %v4444_v57 }
 0xae4   : > { %5446 = vmatmul.mubr.msk.f32.gmra.mxu0 %vm499_vm1, %v5773_v9  ;;  %5470 = vmatmul.mubr.msk.f32.gmra.mxu1 %vm499_vm1, %v5774_v60  ;;  %v8258_v60 = vld [vmem:[#allocation57_spill] sm:$0xff] }
 0xae5   : > { %5448 = vmatprep.mubr.msk.f32.mxu0 %vm499_vm1, %v5775_v47  ;;  %5472 = vmatprep.mubr.msk.f32.mxu1 %vm499_vm1, %v5776_v32  ;;  %v8259_v32 = vld [vmem:[#allocation29_spill] sm:$0xff] }
 0xae6   : > { %5487 = vmatprep.subr.mxu0 %v4443_v58 }
 0xae7   : > { %5488 = vmatpush3.msra.mxu0 %v4443_v58  ;;  %v8264_v58 = vld [vmem:[#allocation48_spill] sm:$0xff] }
 0xae8   : > { %5449 = vmatmul.mubr.msk.f32.gmra.mxu0 %vm499_vm1, %v5777_v22  ;;  %5473 = vmatmul.mubr.msk.f32.gmra.mxu1 %vm499_vm1, %v5778_v34  ;;  %v8260_v34 = vld [vmem:[#allocation52_spill] sm:$0xff] }
 0xae9   : > { %3774 = vmatprep.mubr.f32.mxu1 %v5779_v52  ;;  %5489 = vmatprep.subr.mxu0 %v4442_v61 }
 0xaea   : > { %5490 = vmatpush3.msra.mxu0 %v4442_v61 }
 0xaeb   : > { %5491 = vmatprep.subr.mxu0 %v4441_v2 }
 0xaec   : > { %5492 = vmatpush3.msra.mxu0 %v4441_v2  ;;  %v8265_v2 = vld [vmem:[#allocation21_spill] sm:$0xff] }
 0xaed   : > { %5493 = vmatprep.subr.mxu0 %v4440_v56 }
 0xaee   : > { %5494 = vmatpush3.msra.mxu0 %v4440_v56 }
 0xaef   : > { %5495 = vmatprep.subr.mxu0 %v4439_v14 }
 0xaf0   : > { %5496 = vmatpush3.msra.mxu0 %v4439_v14  ;;  %v8266_v14 = vld [vmem:[#allocation50_spill] sm:$0xff] }
 0xaf1   : > { %5497 = vmatprep.subr.mxu0 %v4438_v41 }
 0xaf2   : > { %5498 = vmatpush3.msra.mxu0 %v4438_v41 }
 0xb8c   : > { %v7852_v12 = vpop.f32.mrf.mxu0  ;;  %v7854_v3 = vpop.f32.mrf.mxu1 }
 0xb8e   : > { %v7856_v29 = vpop.f32.mrf.mxu0  ;;  %v7858_v54 = vpop.f32.mrf.mxu1 }
 0xb90   : > { %v7860_v37 = vpop.f32.mrf.mxu0  ;;  %v7862_v11 = vpop.f32.mrf.mxu1 }
 0xb92   : > { %v7864_v53 = vpop.f32.mrf.mxu0  ;;  %v7866_v5 = vpop.f32.mrf.mxu1 }
 0xb94   : > { %v7868_v13 = vpop.f32.mrf.mxu0  ;;  %v5459_v16 = vpop.f32.mrf.mxu1 }
 0xb96   : > { %v7870_v49 = vpop.f32.mrf.mxu0  ;;  %v7872_v6 = vpop.f32.mrf.mxu1 }
 0xb98   : > { %v5438_v40 = vpop.f32.mrf.mxu0  ;;  %v5462_v63 = vpop.f32.mrf.mxu1 }
 0xb9a   : > { %v3549_v62 = vpop.f32.mrf.mxu0  ;;  %v3629_v30 = vpop.f32.mrf.mxu1 }
 0xb9c   : > { %v5441_v28 = vpop.f32.mrf.mxu0  ;;  %v5465_v20 = vpop.f32.mrf.mxu1 }
 0xb9d   : > { %v3703_v61 = vmul.f32 %v5465_v20, %v8264_v58  ;;  %v3687_v56 = vmul.f32 %v5441_v28, %v8265_v2  ;;  %v8271_v20 = vld [vmem:[#allocation20_spill] sm:$0xff]  ;;  %v8272_v28 = vld [vmem:[#allocation41_spill] sm:$0xff]  ;;  %v4456_v2 = vld [vmem:[%s8044_s7 + $0x420] sm:$0xff] }
 0xb9e   : > { %v3559_v55 = vpop.f32.mrf.mxu0  ;;  %v3639_v50 = vpop.f32.mrf.mxu1  ;;  %v4458_v58 = vld [vmem:[%s8044_s7 + $0x430] sm:$0xff] }
 0xb9f   : > { %v3702_v41 = vmul.f32 %v3639_v50, %v8266_v14  ;;  %v8273_v50 = vld [vmem:[#allocation15_spill] sm:$0xff]  ;;  %v4454_v14 = vld [vmem:[%s8044_s7 + $0x410] sm:$0xff] }
 0xba0   : > { %v5444_v43 = vpop.f32.mrf.mxu0  ;;  %v5468_v46 = vpop.f32.mrf.mxu1 }
 0xba1   : > { %v3705_v52 = vmul.f32 %v5468_v46, %v8260_v34  ;;  %v3689_v36 = vmul.f32 %v5444_v43, %v8261_v18  ;;  %v8267_v46 = vld [vmem:[#allocation23_spill] sm:$0xff]  ;;  %v8268_v43 = vld [vmem:[#allocation45_spill] sm:$0xff]  ;;  %v4466_v34 = vld [vmem:[%s8044_s7 + $0x470] sm:$0xff] }
 0xba2   : > { %v3569_v51 = vpop.f32.mrf.mxu0  ;;  %v3649_v10 = vpop.f32.mrf.mxu1  ;;  %v4464_v18 = vld [vmem:[%s8044_s7 + $0x460] sm:$0xff] }
 0xba3   : > { %v3704_v19 = vmul.f32 %v3649_v10, %v8262_v1  ;;  %v3688_v57 = vmul.f32 %v3569_v51, %v8263_v27  ;;  %v8269_v10 = vld [vmem:[#allocation18_spill] sm:$0xff]  ;;  %v4462_v1 = vld [vmem:[%s8044_s7 + $0x450] sm:$0xff] }
 0xba4   : > { %v5447_v25 = vpop.f32.mrf.mxu0  ;;  %v5471_v23 = vpop.f32.mrf.mxu1  ;;  %v8270_v51 = vld [vmem:[#allocation46_spill] sm:$0xff] }
 0xba5   : > { %v3707_v8 = vmul.f32 %v5471_v23, %v8256_v59  ;;  %v3691_v9 = vmul.f32 %v5447_v25, %v8257_v39  ;;  %v3686_v25 = vmul.f32 %v3559_v55, %v8267_v46  ;;  %v3701_v23 = vmul.f32 %v5462_v63, %v8268_v43  ;;  %v8274_v55 = vld [vmem:[#allocation42_spill] sm:$0xff] }
 0xba6   : > { %v3579_v0 = vpop.f32.mrf.mxu0  ;;  %v3659_v48 = vpop.f32.mrf.mxu1  ;;  %v3698_v63 = vmul.f32 %v7872_v6, %v8274_v55  ;;  %v8279_v6 = vld [vmem:[#allocation14_spill] sm:$0xff] }
 0xba7   : > { %v3706_v47 = vmul.f32 %v3659_v48, %v8258_v60  ;;  %v3690_v22 = vmul.f32 %v3579_v0, %v8259_v32  ;;  %v3685_v0 = vmul.f32 %v5438_v40, %v8269_v10  ;;  %v3700_v48 = vmul.f32 %v3629_v30, %v8270_v51  ;;  %v8276_v30 = vld [vmem:[#allocation38_spill] sm:$0xff] }
 0xba8   : > { %v5450_v15 = vpop.f32.mrf.mxu0  ;;  %v5474_v21 = vpop.f32.mrf.mxu1  ;;  %v4434_v59 = vld [vmem:[%s8044_s7 + $0x280] sm:$0xff] }
 0xba9   : > { %v3693_v33 = vmul.f32 %v5450_v15, %v8252_v31  ;;  %v3709_v42 = vmul.f32 %v5474_v21, %v8253_v44  ;;  %v3684_v15 = vmul.f32 %v3549_v62, %v8271_v20  ;;  %v3699_v21 = vmul.f32 %v5459_v16, %v8272_v28  ;;  %v8277_v62 = vld [vmem:[#allocation12_spill] sm:$0xff]  ;;  %v4460_v27 = vld [vmem:[%s8044_s7 + $0x440] sm:$0xff] }
 0xbaa   : > { %v3589_v4 = vpop.f32.mrf.mxu0  ;;  %v3669_v24 = vpop.f32.mrf.mxu1  ;;  %v3683_v31 = vmul.f32 %v7868_v13, %v8273_v50  ;;  %v3697_v44 = vmul.f32 %v7862_v11, %v8276_v30  ;;  %v3681_v16 = vmul.f32 %v7860_v37, %v8277_v62  ;;  %v8281_v11 = vld [vmem:[#allocation9_spill] sm:$0xff]  ;;  %v8282_v37 = vld [vmem:[#allocation35_spill] sm:$0xff]  ;;  %v4452_v46 = vld [vmem:[%s8044_s7 + $0x400] sm:$0xff] }
 0xbab   : > { %v3692_v45 = vmul.f32 %v3589_v4, %v8254_v17  ;;  %v3708_v35 = vmul.f32 %v3669_v24, %v8255_v7  ;;  %4865 = vmatprep.subr.mxu1 %v3709_v42  ;;  %v8278_v42 = vld [vmem:[#allocation39_spill] sm:$0xff]  ;;  %v3680_v4 = vmul.f32 %v7864_v53, %v8279_v6  ;;  %v3679_v17 = vmul.f32 %v7852_v12, %v8281_v11  ;;  %v5780_v53 = vld [vmem:[%s7099_s17] sm:$0xff]  ;;  %v4437_v12 = vld [vmem:[%s8044_s7 + $0x298] sm:$0xff] }
 0xbac   : > { %4866 = vmatpush3.msra.mxu1 %v3693_v33  ;;  %v8275_v33 = vld [vmem:[#allocation17_spill] sm:$0xff]  ;;  %v3696_v13 = vmul.f32 %v7866_v5, %v8278_v42  ;;  %v8283_v5 = vld [vmem:[#allocation11_spill] sm:$0xff]  ;;  %5499 = vmatprep.subr.mxu0 %v4437_v12 }
 0xbad   : > { %4867 = vmatprep.subr.mxu1 %v3708_v35  ;;  %v3682_v40 = vmul.f32 %v7870_v49, %v8275_v33  ;;  %v8280_v49 = vld [vmem:[#allocation34_spill] sm:$0xff]  ;;  %v3678_v7 = vmul.f32 %v7856_v29, %v8283_v5  ;;  %v5781_v35 = vld [vmem:[%s7099_s17 + $0x18] sm:$0xff]  ;;  %5500 = vmatpush3.msra.mxu0 %v4437_v12  ;;  %v4435_v29 = vld [vmem:[%s8044_s7 + $0x288] sm:$0xff] }
 0xbae   : > { %4868 = vmatpush3.msra.mxu1 %v3692_v45  ;;  %v3695_v24 = vmul.f32 %v7854_v3, %v8280_v49  ;;  %v3694_v45 = vmul.f32 %v7858_v54, %v8282_v37  ;;  %v5782_v3 = vld [vmem:[%s7099_s17 + $0x10] sm:$0xff]  ;;  %s353_s17 = sand.u32 1, %s5835_s10   ;;  %v3915_v49 = vld [vmem:[%s8045_s8 + $0x18] ss:$0 sm:$0xff] }
 0xbaf   : > { %4869 = vmatprep.subr.mxu1 %v3707_v8  ;;  %v4436_v54 = vld [vmem:[%s8044_s7 + $0x290] sm:$0xff]  ;;  %s4099_s28 = sshll.u32 %s353_s17, 4  ;;  %s7997_s27 = scalar_lea.sflag [#allocation4], %s353_s17 }
 0xbb0   : > { %4870 = vmatpush3.msra.mxu1 %v3691_v9  ;;  %5501 = vmatprep.subr.mxu0 %v4436_v54  ;;  %s355_s29 = scalar_lea.vmem [#allocation3], %s4099_s28  ;;  %s5787_s28 = sshll.u32 %s5846_s23, 4  ;;  %s5788_s28 = int_to_ptr.vmem [resolvable:$false] %s5787_s28 }
 0xbb1   : > { %4871 = vmatprep.subr.mxu1 %v3706_v47  ;;  %5502 = vmatpush3.msra.mxu0 %v4436_v54  ;;  %s4009_s21 = sshll.u32 %s355_s29, 4  ;;  %s5789_s14 = scalar_lea.vmem %s5788_s28, 512  ;;  %s7989_s21 = int_to_ptr.vmem [resolvable:$true] %s4009_s21 }
 0xbb2   : > { %4872 = vmatpush3.msra.mxu1 %v3690_v22  ;;  %5503 = vmatprep.subr.mxu0 %v4435_v29  ;;  %v4467_v22 = vld [vmem:[%s8044_s7 + $0x478] sm:$0xff]  ;;  %s5783_s13 = scalar_lea.vmem %s7989_s21, 256  ;;  %p5790_p0 = scmp.lt.s32.totalorder %s7989_s21, %s5788_s28 }
 0xbb3   : > { %4873 = vmatprep.subr.mxu1 %v3705_v52  ;;  %5504 = vmatpush3.msra.mxu0 %v4435_v29  ;;  %v4465_v52 = vld [vmem:[%s8044_s7 + $0x468] sm:$0xff]  ;;  %p5784_p11 = scmp.ne.s32.totalorder %s7989_s21, %s5783_s13  ;;  %p5791_p1 = scmp.lt.s32.totalorder %s5789_s14, %s5783_s13 }
 0xbb4   : > { %4874 = vmatpush3.msra.mxu1 %v3689_v36  ;;  %5505 = vmatprep.subr.mxu0 %v4434_v59  ;;  %v4463_v36 = vld [vmem:[%s8044_s7 + $0x458] sm:$0xff] }
 0xbb5   : > { %4875 = vmatprep.subr.mxu1 %v3704_v19  ;;  %5506 = vmatpush3.msra.mxu0 %v4434_v59  ;;  %v4461_v19 = vld [vmem:[%s8044_s7 + $0x448] sm:$0xff]  ;;  %p5785_p12 = pnand %p5784_p11, %p5937_p5  ;;  %p5792_p2 = por %p5791_p1, %p5790_p0 }
 0xbb6   : > { %4876 = vmatpush3.msra.mxu1 %v3688_v57  ;;  %v4459_v57 = vld [vmem:[%s8044_s7 + $0x438] sm:$0xff] }
 0xbb7   : > { %4877 = vmatprep.subr.mxu1 %v3703_v61  ;;  %v4457_v61 = vld [vmem:[%s8044_s7 + $0x428] sm:$0xff]  ;;  %p5786_p13 = pneg %p5785_p12 }
 0xbb8   : > { %4878 = vmatpush3.msra.mxu1 %v3687_v56  ;;  %v4455_v56 = vld [vmem:[%s8044_s7 + $0x418] sm:$0xff] }
 0xbb9   : > { %4879 = vmatprep.subr.mxu1 %v3702_v41  ;;  %v4453_v41 = vld [vmem:[%s8044_s7 + $0x408] sm:$0xff]  ;;  %p5793_p3 = pnand %p5792_p2, %p5786_p13 }
 0xbba   : > { %4880 = vmatpush3.msra.mxu1 %v3686_v25  ;;  %v3802_v25 = vld [vmem:[%s8045_s8 + $0x5] ss:$0 sm:$0xff] }
 0xbbb   : > { %4881 = vmatprep.subr.mxu1 %v3701_v23 }
 0xbbc   : > { %4882 = vmatpush3.msra.mxu1 %v3685_v0 }
 0xbbd   : > { %4883 = vmatprep.subr.mxu1 %v3700_v48 }
 0xbbe   : > { %4884 = vmatpush3.msra.mxu1 %v3684_v15 }
 0xbbf   : > { %4885 = vmatprep.subr.mxu1 %v3699_v21 }
 0xbc0   : > { %4886 = vmatpush3.msra.mxu1 %v3683_v31 }
 0xbc1   : > { %4887 = vmatprep.subr.mxu1 %v3698_v63 }
 0xbc2   : > { %4888 = vmatpush3.msra.mxu1 %v3682_v40 }
 0xbc3   : > { %4889 = vmatprep.subr.mxu1 %v3697_v44 }
 0xbc4   : > { %4890 = vmatpush3.msra.mxu1 %v3681_v16 }
 0xbc5   : > { %4891 = vmatprep.subr.mxu1 %v3696_v13 }
 0xbc6   : > { %4892 = vmatpush3.msra.mxu1 %v3680_v4 }
 0xbc7   : > { %4893 = vmatprep.subr.mxu1 %v3695_v24 }
 0xbc8   : > { %4894 = vmatpush3.msra.mxu1 %v3679_v17 }
 0xbc9   : > { %4895 = vmatprep.subr.mxu1 %v3694_v45 }
 0xbca   : > { %4896 = vmatpush3.msra.mxu1 %v3678_v7 }
 0xbcb   : > { %3775 = vmatmul.mubr.f32.vlgmr.msra.gmra.mxu1 %v5780_v53  ;;  %5510 = vmatprep.subr.mxu1 %v4467_v22 }
 0xbcc   : > { %3779 = vmatprep.mubr.f32.mxu1 %v5781_v35  ;;  %5511 = vmatpush3.msra.mxu1 %v4467_v22 }
 0xbcd   : > { %5512 = vmatprep.subr.mxu1 %v4466_v34 }
 0xbce   : > { %5513 = vmatpush3.msra.mxu1 %v4466_v34 }
 0xbcf   : > { %3780 = vmatmul.mubr.f32.gmra.mxu1 %v5782_v3  ;;  %5514 = vmatprep.subr.mxu1 %v4465_v52 }
 0xbd0   : > { %5515 = vmatpush3.msra.mxu1 %v4465_v52 }
 0xbd1   : > { %5516 = vmatprep.subr.mxu1 %v4464_v18 }
 0xbd2   : > { %5517 = vmatpush3.msra.mxu1 %v4464_v18 }
 0xbd3   : > { %5518 = vmatprep.subr.mxu1 %v4463_v36 }
 0xbd4   : > { %5519 = vmatpush3.msra.mxu1 %v4463_v36 }
 0xbd5   : > { %5520 = vmatprep.subr.mxu1 %v4462_v1 }
 0xbd6   : > { %5521 = vmatpush3.msra.mxu1 %v4462_v1 }
 0xbd7   : > { %5522 = vmatprep.subr.mxu1 %v4461_v19 }
 0xbd8   : > { %5523 = vmatpush3.msra.mxu1 %v4461_v19 }
 0xbd9   : > { %5524 = vmatprep.subr.mxu1 %v4460_v27 }
 0xbda   : > { %5525 = vmatpush3.msra.mxu1 %v4460_v27 }
 0xbdb   : > { %5526 = vmatprep.subr.mxu1 %v4459_v57 }
 0xbdc   : > { %5527 = vmatpush3.msra.mxu1 %v4459_v57 }
 0xbdd   : > { %5528 = vmatprep.subr.mxu1 %v4458_v58 }
 0xbde   : > { %5529 = vmatpush3.msra.mxu1 %v4458_v58 }
 0xbdf   : > { %5530 = vmatprep.subr.mxu1 %v4457_v61 }
 0xbe0   : > { %5531 = vmatpush3.msra.mxu1 %v4457_v61 }
 0xbe1   : > { %5532 = vmatprep.subr.mxu1 %v4456_v2 }
 0xbe2   : > { %5533 = vmatpush3.msra.mxu1 %v4456_v2 }
 0xbe3   : > { %5534 = vmatprep.subr.mxu1 %v4455_v56 }
 0xbe4   : > { %5535 = vmatpush3.msra.mxu1 %v4455_v56 }
 0xbe5   : > { %5536 = vmatprep.subr.mxu1 %v4454_v14 }
 0xbe6   : > { %5537 = vmatpush3.msra.mxu1 %v4454_v14 }
 0xbe7   : > { %5538 = vmatprep.subr.mxu1 %v4453_v41 }
 0xbe8   : > { %5539 = vmatpush3.msra.mxu1 %v4453_v41 }
 0xbe9   : > { %5540 = vmatprep.subr.mxu1 %v4452_v46 }
 0xbea   : > { %5541 = vmatpush3.msra.mxu1 %v4452_v46 }
 0xc8b   : > { %v4897_v8 = vpop.f32.mrf.mxu1 }
 0xc8d   : > { %v4898_v39 = vpop.f32.mrf.mxu1 }
 0xc8e   : > { %v4899_v9 = vadd.f32 %v4898_v39, %v4897_v8 }
 0xc8f   : > { %v4900_v60 = vpop.f32.mrf.mxu1 }
 0xc90   : > { %5507 = vmatprep.mubr.f32.mxu0 %v4899_v9 }
 0xc91   : > { %v4901_v47 = vpop.f32.mrf.mxu1 }
 0xc92   : > { %v4902_v32 = vadd.f32 %v4901_v47, %v4900_v60 }
 0xc94   : > { %5508 = vmatmul.mubr.f32.vlgmr.msra.gmra.mxu0 %v4902_v32 }
 0xd54   : > { %v5509_v43 = vpop.f32.mrf.mxu0 }
 0xd55   : > { %v3875_v23 = vadd.f32 %v5509_v43, %v3802_v25 }
 0xd56   : > { %v3869_v10 = vpop.f32.mrf.mxu0 }
 0xd57   : > { %v3881_v0 = vand.u32 2147483647, %v3875_v23  ;;  %v3870_v51 = vadd.f32 %v3869_v10, %v3802_v25  ;;  %v3879_v44 = vmax.f32 %v3875_v23, 0.0 }
 0xd59   : > { %v3883_v48 = vsub.f32 0.0, %v3881_v0  ;;  %v3880_v20 = vand.u32 2147483647, %v3870_v51  ;;  %v3878_v62 = vmax.f32 %v3870_v51, 0.0 }
 0xd5b   : > { %v3886_v15 = vmul.f32 1.442695, %v3883_v48  ;;  %v3882_v28 = vsub.f32 0.0, %v3880_v20 }
 0xd5d   : > { %5739 = vpow2.f32 %v3886_v15  ;;  %v3884_v21 = vmul.f32 1.442695, %v3882_v28 }
 0xd5f   : > { %5741 = vpow2.f32 %v3884_v21 }
 0xd6a   : > { %v5740_v50 = vpop.eup %5739 }
 0xd6b   : > { %v3889_v31 = vadd.f32 1.0, %v5740_v50 }
 0xd6c   : > { %v5742_v55 = vpop.eup %5741 }
 0xd6d   : > { %5743 = vlog2.f32 %v3889_v31  ;;  %v3888_v63 = vadd.f32 1.0, %v5742_v55 }
 0xd6f   : > { %5745 = vlog2.f32 %v3888_v63 }
 0xd7a   : > { %v5744_v33 = vpop.eup %5743 }
 0xd7b   : > { %v3893_v40 = vmul.f32 0.6931472, %v5744_v33 }
 0xd7c   : > { %v5746_v30 = vpop.eup %5745 }
 0xd7d   : > { %v3891_v16 = vmul.f32 0.6931472, %v5746_v30  ;;  %v3895_v42 = vadd.f32 %v3893_v40, %v3879_v44 }
 0xd7f   : > { %v3894_v13 = vadd.f32 %v3891_v16, %v3878_v62  ;;  %v4451_v4 = vadd.f32 -0.6931472, %v3895_v42 }
 0xd81   : > { %v4450_v6 = vadd.f32 -0.6931472, %v3894_v13 }
 0xd83   : > { %5542 = vmatprep.mubr.f32.mxu1 %v4450_v6 }
 0xd84   : > { %5543 = vmatmul.mubr.f32.vlgmr.msra.gmra.mxu1 %v4451_v4 }
 0xe44   : > { %v5544_v24 = vpop.f32.mrf.mxu1 }
 0xe45   : > { %v3988_v11 = vadd.f32 %v5544_v24, %v3915_v49 }
 0xe46   : > { %v3982_v17 = vpop.f32.mrf.mxu1 }
 0xe47   : > { %v3992_v37 = vadd.f32 %v3988_v11, %v7687_v26  ;;  %v3983_v45 = vadd.f32 %v3982_v17, %v3915_v49 }
 0xe49   : > { %3994 = vst [vmem:[%s355_s29 + $0x8] sm:$0xff] %v3992_v37  ;;  %v3991_v5 = vadd.f32 %v3983_v45, %v7684_v38 }
 0xe4b   : > { %3993 = vst [vmem:[%s355_s29] sm:$0xff] %v3991_v5 }
 0xe4c   : > { %5796 = shalt.err (!%p5793_p3)
}
 0xe4d   : > { %s5797_s17 = scalar_lea.hbm %s7994_s26, 256  ;;  %s5801_s22 = scalar_lea.hbm %s8046_s9, 512 }
 0xe4e   : > { %p5798_p4 = scmp.ne.s32.totalorder %s7994_s26, %s5797_s17  ;;  %p5802_p9 = scmp.lt.s32.totalorder %s7994_s26, %s8046_s9 }
 0xe4f   : > { %p5803_p10 = scmp.lt.s32.totalorder %s5801_s22, %s5797_s17 }
 0xe50   : > { %p5799_p7 = pnand %p5798_p4, %p5937_p5 }
 0xe51   : > { %p5804_p11 = por %p5803_p10, %p5802_p9 }
 0xe52   : > { %p5800_p8 = pneg %p5799_p7 }
 0xe54   : > { %p5805_p12 = pnand %p5804_p11, %p5800_p8 }
 0xe56   : > { %5808 = shalt.err (!%p5805_p12)
}
 0xe57   : > { %s5847_s13 = smov 128   ;;  %s5848_s23 = smov 8  }
 0xe58   : > { %5553 = dma.vmem_to_hbm [thread:$0]  (%p5937_p5), %s7989_s21, 256, %s7994_s26, %s7997_s27, %s5847_s13, %s5847_s13, %s5848_s23  }
 0xe59 PF: > { %p5559_p13 = scmp.ge.s32.totalorder %s5843_s12, 2  ;;  %s4024_s28 = sand.u32 1, %s5831_s30  }
 0xe5a   : > { %s4025_s14 = scalar_lea.sflag [#allocation4], %s4024_s28 }
 0xe5b   : > { %p5556_p0 = pnand %p5559_p13, %p5941_p6 }
 0xe5d   : > { %p5557_p1 = pneg %p5556_p0 }
 0xe5f   : > { %5826 = dma.done.wait (%p5557_p1), %s4025_s14, 256  }
 0xe60   : > { %5828 = vsyncadd (%p5557_p1), %s4025_s14, 4294967040  ;;  %p19_p2 = scmp.ge.s32.totalorder %s5924_s15, 4   ;;  %s8284_s30 = smov %s5835_s10 }
 0xe61   : > { %s8285_s10 = smov %s5839_s11  ;;  %s8286_s11 = smov %s5935_s18 }
 0xe62   : > { %s8287_s12 = smov %s5924_s15  ;;  %21 = sbr.rel (!%p19_p2) target bundleno = 3 (0x3), region = 106 }
 0xe67   :  { %4030 = vsyncpa [#allocation4], 1 }
 0xe68   :  { %4032 = vsyncpa [#allocation4 + $0x1], 1 }

</bundles_post_ra>
